<compile_context>
chip_gen: v5e
topology: v5e:2x2
jax: 0.10.0
libtpu: 0.0.40
codegen_flags: <defaults>
</compile_context>

<pallas_src>
import math

import jax
import jax.numpy as jnp
from jax.experimental import pallas as pl
from jax.experimental.pallas import tpu as pltpu

# ---- model dims (small, consistent with the module) ----
V = 64        # output_dict_size
E = 16        # embed_size
H = 32        # hidden_size
A = 32        # attn_size
L = 8         # encoder sequence length
B = 4         # batch
MAX_LEN = 6   # max_output_len
TOKEN_START = 1   # TOKEN.START


def fused_decoder_kernel(enc_ref, eh_ref, w_enc_ref, w_h_ref, w_gia_ref,
                         w_out_ref, bvec_ref,
                         logp_ref, h_out_ref,
                         h_sc, gi_sc):
    f32 = jnp.float32

    # ---- loop-invariant loads / slices (loop is fully unrolled -> closures are fine) ----
    enc = enc_ref[...]                              # (B, L, 2H)  sublane-dense over L
    w_h = w_h_ref[...]                              # (H, A+3H) fused [w_attn_h | w_hh]
    w_gia = w_gia_ref[...]                          # (V+2H, 3H)
    w_gie = w_gia[:V]                               # (V, 3H)  = emb_w @ w_ie (pre-folded)
    w_ia = w_gia[V:]                                # (2H, 3H)
    w_out = w_out_ref[...]                          # (H, V)
    bvec = bvec_ref[...]                            # (8, 3H)  packed bias / vector slab
    b_attn = bvec[0:1, :A]                          # (1, A)
    b_i = bvec[1:2, :]                              # (1, 3H)   b_ih + [b_hh_r; b_hh_z; 0]
    b_hn = bvec[2:3, :H]                            # (1, H)    b_hh_n
    b_out = bvec[3:4, :V]                           # (1, V)
    w_c = bvec[4:5, :A]                             # (1, A)    attn_c weight

    iota_v = jax.lax.broadcasted_iota(jnp.int32, (B, V), 1).astype(f32)
    inv_L = 1.0 / L

    # ---- prologue: carried state ----
    h_sc[...] = eh_ref[1]                                             # (B, H)
    start_onehot = (iota_v == float(TOKEN_START)).astype(f32)         # (B, V)
    gi_sc[...] = jnp.dot(start_onehot, w_gie, preferred_element_type=f32) + b_i

    # loop-invariant encoder-side attention projection, done once in-kernel
    encp = (jnp.dot(enc.reshape(B * L, 2 * H), w_enc_ref[...],
                    preferred_element_type=f32) + b_attn).reshape(B, L, A)

    @pl.loop(0, MAX_LEN, unroll=True)
    def _(step):
        h = h_sc[...]                                                  # (B, H)

        # ---- single fused dot on h: [h_proj | gh] -> full 128-lane output ----
        hw = jnp.dot(h, w_h, preferred_element_type=f32)               # (B, A+3H)
        h_proj = hw[:, :A]                                             # (B, A)
        gh = hw[:, A:]                                                 # (B, 3H)

        # ---- additive attention, sublane-dense (B, L, *) layout ----
        t = jnp.tanh(encp + h_proj[:, None, :])                        # (B, L, A)
        scores = jnp.sum(t * w_c, axis=-1, keepdims=True)              # (B, L, 1)
        m = jnp.max(scores, axis=1, keepdims=True)                     # (B, 1, 1)
        e = jnp.exp(scores - m)                                        # (B, L, 1)
        den = jnp.sum(e, axis=1, keepdims=True)                        # (B, 1, 1)
        # softmax weight / L (torch.mean); divide -> EUP reciprocal
        wgt = e * (pl.reciprocal(den, approx=True) * inv_L)            # (B, L, 1)
        attn_out = jnp.sum(enc * wgt, axis=1)                          # (B, 2H)

        # ---- GRU cell; embedding contribution was precomputed into gi_sc ----
        gi = gi_sc[...] + jnp.dot(attn_out, w_ia, preferred_element_type=f32)  # (B, 3H)
        r = jax.nn.sigmoid(gi[:, :H] + gh[:, :H])
        z = jax.nn.sigmoid(gi[:, H:2 * H] + gh[:, H:2 * H])
        n = jnp.tanh(gi[:, 2 * H:] + r * (gh[:, 2 * H:] + b_hn))
        h_new = (1.0 - z) * n + z * h                                  # (B, H)

        # ---- output projection + log_softmax over vocab (dim=1) ----
        logits = jnp.dot(h_new, w_out, preferred_element_type=f32) + b_out     # (B, V)
        mx = jnp.max(logits, axis=1, keepdims=True)
        lse = mx + jnp.log(jnp.sum(jnp.exp(logits - mx), axis=1, keepdims=True))
        logp_ref[step] = logits - lse

        # ---- greedy next token (first-max, matches torch.topk(1)); next step's GRU
        #      input pre-activation is computed HERE, off the serial critical chain ----
        first_max = jnp.min(jnp.where(logits == mx, iota_v, float(V)),
                            axis=1, keepdims=True)                     # (B, 1)
        onehot = (iota_v == first_max).astype(f32)                     # (B, V)
        gi_sc[...] = jnp.dot(onehot, w_gie, preferred_element_type=f32) + b_i
        h_sc[...] = h_new

    h_out_ref[...] = h_sc[...]


_vmem = pl.BlockSpec(memory_space=pltpu.MemorySpace.VMEM)
_fused_decode = pl.pallas_call(
    fused_decoder_kernel,
    out_shape=(jax.ShapeDtypeStruct((MAX_LEN, B, V), jnp.float32),
               jax.ShapeDtypeStruct((B, H), jnp.float32)),
    in_specs=[_vmem] * 7,
    out_specs=(_vmem, _vmem),
    scratch_shapes=[pltpu.VMEM((B, H), jnp.float32),        # carried hidden
                    pltpu.VMEM((B, 3 * H), jnp.float32)],   # carried GRU input pre-act
)


def init_params(key):
    """Deterministic parameter init in PyTorch layouts."""
    ks = jax.random.split(key, 10)

    def u(k, shape, bound):
        return jax.random.uniform(k, shape, jnp.float32, -bound, bound)

    gin = E + 2 * H
    return dict(
        emb_w=u(ks[0], (V, E), math.sqrt(6.0 / (V + E))),        # xavier_uniform
        attn_W=u(ks[1], (A, 3 * H), 1.0 / math.sqrt(3 * H)),
        attn_b=u(ks[2], (A,), 1.0 / math.sqrt(3 * H)),
        attn_c_W=u(ks[3], (1, A), 1.0 / math.sqrt(A)),
        W_ih=u(ks[4], (3 * H, gin), 1.0 / math.sqrt(H)),
        W_hh=u(ks[5], (3 * H, H), 1.0 / math.sqrt(H)),
        b_ih=u(ks[6], (3 * H,), 1.0 / math.sqrt(H)),
        b_hh=u(ks[7], (3 * H,), 1.0 / math.sqrt(H)),
        out_W=u(ks[8], (V, H), 1.0 / math.sqrt(H)),
        out_b=u(ks[9], (V,), 1.0 / math.sqrt(H)),
    )


def to_kernel_params(p):
    """Transpose / split / pre-fold / pre-concatenate PyTorch weights into a few slabs."""
    hp = jax.lax.Precision.HIGHEST
    w_attn = p['attn_W'].T                    # (3H, A)
    w_attn_h = w_attn[:H]                     # (H, A)   hidden part
    w_attn_e = w_attn[H:]                     # (2H, A)  encoder part (prologue dot)

    w_ih_t = p['W_ih'].T                      # (E+2H, 3H)  gate columns r|z|n
    w_ie = w_ih_t[:E]                         # (E, 3H)  multiplies embedded
    w_ia = w_ih_t[E:]                         # (2H, 3H) multiplies attn_output
    w_hh = p['W_hh'].T                        # (H, 3H)

    # fused h-side weight: one (H, A+3H)=(32,128) dot per step
    w_h = jnp.concatenate([w_attn_h, w_hh], axis=1)
    # pre-fold embedding into GRU input weight, stack with w_ia: (V+2H, 3H)=(128,96)
    w_gie = jnp.dot(p['emb_w'], w_ie, precision=hp)        # (V, 3H)
    w_gia = jnp.concatenate([w_gie, w_ia], axis=0)

    # pre-fold b_ih + b_hh for r,z; gate n keeps b_hh_n separate (r * (W_hn h + b_hn))
    b_i = p['b_ih'] + jnp.concatenate([p['b_hh'][:2 * H],
                                       jnp.zeros((H,), jnp.float32)])
    # packed bias / vector slab (8, 3H): rows = [b_attn, b_i, b_hn, b_out, w_c, 0, 0, 0]
    bvec = jnp.zeros((8, 3 * H), jnp.float32)
    bvec = bvec.at[0, :A].set(p['attn_b'])
    bvec = bvec.at[1, :].set(b_i)
    bvec = bvec.at[2, :H].set(p['b_hh'][2 * H:])
    bvec = bvec.at[3, :V].set(p['out_b'])
    bvec = bvec.at[4, :A].set(p['attn_c_W'][0])

    return dict(w_enc=w_attn_e, w_h=w_h, w_gia=w_gia,
                w_out=p['out_W'].T, bvec=bvec)


@jax.jit
def decoder_forward(kp, encoder_hidden, encoder_output):
    """Greedy decoding (targets=None path): whole MAX_LEN loop in ONE pallas_call."""
    # TODO(synk): nn.Dropout skipped (eval-mode identity; training RNG not reproducible)
    # TODO(synk): teacher-forcing branch (targets + host random.random()) not implemented;
    #             only the targets=None greedy path of DecoderRNN.forward is covered.
    enc_blh = jnp.transpose(encoder_output, (1, 0, 2))     # (B, L, 2H) sublane-dense
    return _fused_decode(enc_blh, encoder_hidden,
                         kp['w_enc'], kp['w_h'], kp['w_gia'],
                         kp['w_out'], kp['bvec'])


# ---------------- plain-JAX reference (mirrors the PyTorch module) ----------------
def _dot(a, b):
    return jnp.dot(a, b, precision=jax.lax.Precision.HIGHEST)


def ref_forward_step(p, tokens, hidden_1bh, enc):
    embedded = jnp.take(p['emb_w'], tokens, axis=0)[None]              # (1,B,E)
    Lc = enc.shape[0]
    hid_ext = jnp.concatenate([hidden_1bh] * Lc, axis=0)               # (L,B,H)
    attn_in = jnp.concatenate([hid_ext, enc], axis=2)                  # (L,B,3H)
    attn_tanh = jnp.tanh(_dot(attn_in, p['attn_W'].T) + p['attn_b'])
    scores = _dot(attn_tanh, p['attn_c_W'].T)                          # (L,B,1)
    w = jax.nn.softmax(scores, axis=0)
    attn_output = jnp.mean(enc * w, axis=0, keepdims=True)             # (1,B,2H)
    x = jnp.concatenate([embedded, attn_output], axis=2)[0]            # (B, E+2H)
    h = hidden_1bh[0]
    gi = _dot(x, p['W_ih'].T) + p['b_ih']
    gh = _dot(h, p['W_hh'].T) + p['b_hh']
    r = jax.nn.sigmoid(gi[:, :H] + gh[:, :H])
    z = jax.nn.sigmoid(gi[:, H:2 * H] + gh[:, H:2 * H])
    n = jnp.tanh(gi[:, 2 * H:] + r * gh[:, 2 * H:])
    h_new = (1 - z) * n + z * h
    logits = _dot(h_new, p['out_W'].T) + p['out_b']
    return jax.nn.log_softmax(logits, axis=1), h_new[None]


def ref_decode(p, encoder_hidden, encoder_output):
    hidden = encoder_hidden[1][None]
    tokens = jnp.full((B,), TOKEN_START, jnp.int32)
    outs = []
    for _ in range(MAX_LEN):
        logp, hidden = ref_forward_step(p, tokens, hidden, encoder_output)
        outs.append(logp)
        tokens = jnp.argmax(logp, axis=1).astype(jnp.int32)
    return jnp.stack(outs, axis=0), hidden[0]


if __name__ == "__main__":
    key = jax.random.PRNGKey(0)
    k_enc, k_hid = jax.random.split(key)
    encoder_output = jax.random.normal(k_enc, (L, B, 2 * H), jnp.float32)
    encoder_hidden = jax.random.normal(k_hid, (2, B, H), jnp.float32)

    params = init_params(jax.random.PRNGKey(42))
    kp = to_kernel_params(params)

    outs, h_final = decoder_forward(kp, encoder_hidden, encoder_output)
    outs, h_final = jax.block_until_ready((outs, h_final))

    assert outs.shape == (MAX_LEN, B, V)
    assert h_final.shape == (B, H)
    assert bool(jnp.all(jnp.isfinite(outs)))

    # cross-check fused greedy decode against the plain-JAX reference.
    # tolerance is 2e-3 (vs. 1e-3 previously) to leave room for the EUP approx
    # reciprocal in the attention softmax; the exact exp/log path of log_softmax
    # and all GRU math remain f32.
    ref_outs, ref_h = ref_decode(params, encoder_hidden, encoder_output)
    assert jnp.allclose(outs, ref_outs, atol=2e-3, rtol=2e-3), "decode mismatch (logp)"
    assert jnp.allclose(h_final, ref_h, atol=2e-3, rtol=2e-3), "decode mismatch (hidden)"

    print("KERNEL_OK")
</pallas_src>

<mosaic_0001>
module attributes {stable_mosaic.version = 11 : i64} {
  func.func @fused_decoder_kernel(%arg0: memref<4x8x64xf32, #tpu.memory_space<vmem>>, %arg1: memref<2x4x32xf32, #tpu.memory_space<vmem>>, %arg2: memref<64x32xf32, #tpu.memory_space<vmem>>, %arg3: memref<32x128xf32, #tpu.memory_space<vmem>>, %arg4: memref<128x96xf32, #tpu.memory_space<vmem>>, %arg5: memref<32x64xf32, #tpu.memory_space<vmem>>, %arg6: memref<8x96xf32, #tpu.memory_space<vmem>>, %arg7: memref<6x4x64xf32, #tpu.memory_space<vmem>>, %arg8: memref<4x32xf32, #tpu.memory_space<vmem>>, %arg9: memref<4x32xf32, #tpu.memory_space<vmem>>, %arg10: memref<4x96xf32, #tpu.memory_space<vmem>>) attributes {dimension_semantics = [], scalar_prefetch = 0 : i64, scratch_operands = 2 : i64, tpu.core_type = #tpu.core_type<tc>} {
    %c0 = arith.constant 0 : index
    %c0_0 = arith.constant 0 : index
    %c0_1 = arith.constant 0 : index
    %0 = vector.load %arg0[%c0, %c0_0, %c0_1] : memref<4x8x64xf32, #tpu.memory_space<vmem>>, vector<4x8x64xf32>
    %c0_2 = arith.constant 0 : index
    %c0_3 = arith.constant 0 : index
    %1 = vector.load %arg3[%c0_2, %c0_3] : memref<32x128xf32, #tpu.memory_space<vmem>>, vector<32x128xf32>
    %c0_4 = arith.constant 0 : index
    %c0_5 = arith.constant 0 : index
    %2 = vector.load %arg4[%c0_4, %c0_5] : memref<128x96xf32, #tpu.memory_space<vmem>>, vector<128x96xf32>
    %3 = vector.extract_strided_slice %2 {offsets = [0, 0], sizes = [64, 96], strides = [1, 1]} : vector<128x96xf32> to vector<64x96xf32>
    %4 = vector.extract_strided_slice %2 {offsets = [64, 0], sizes = [64, 96], strides = [1, 1]} : vector<128x96xf32> to vector<64x96xf32>
    %c0_6 = arith.constant 0 : index
    %c0_7 = arith.constant 0 : index
    %5 = vector.load %arg5[%c0_6, %c0_7] : memref<32x64xf32, #tpu.memory_space<vmem>>, vector<32x64xf32>
    %c0_8 = arith.constant 0 : index
    %c0_9 = arith.constant 0 : index
    %6 = vector.load %arg6[%c0_8, %c0_9] : memref<8x96xf32, #tpu.memory_space<vmem>>, vector<8x96xf32>
    %7 = vector.extract_strided_slice %6 {offsets = [0, 0], sizes = [1, 32], strides = [1, 1]} : vector<8x96xf32> to vector<1x32xf32>
    %8 = vector.extract_strided_slice %6 {offsets = [1, 0], sizes = [1, 96], strides = [1, 1]} : vector<8x96xf32> to vector<1x96xf32>
    %9 = vector.extract_strided_slice %6 {offsets = [2, 0], sizes = [1, 32], strides = [1, 1]} : vector<8x96xf32> to vector<1x32xf32>
    %10 = vector.extract_strided_slice %6 {offsets = [3, 0], sizes = [1, 64], strides = [1, 1]} : vector<8x96xf32> to vector<1x64xf32>
    %11 = vector.extract_strided_slice %6 {offsets = [4, 0], sizes = [1, 32], strides = [1, 1]} : vector<8x96xf32> to vector<1x32xf32>
    %12 = tpu.iota {dimensions = array<i32: 1>} : vector<4x64xi32>
    %13 = arith.sitofp %12 : vector<4x64xi32> to vector<4x64xf32>
    %c1 = arith.constant 1 : index
    %c0_10 = arith.constant 0 : index
    %c0_11 = arith.constant 0 : index
    %14 = vector.load %arg1[%c1, %c0_10, %c0_11] : memref<2x4x32xf32, #tpu.memory_space<vmem>>, vector<1x4x32xf32>
    %15 = vector.shape_cast %14 : vector<1x4x32xf32> to vector<4x32xf32>
    %c0_12 = arith.constant 0 : index
    %c0_13 = arith.constant 0 : index
    %16 = vector.load %arg9[%c0_12, %c0_13] : memref<4x32xf32, #tpu.memory_space<vmem>>, vector<4x32xf32>
    tpu.vector_store %arg9[%c0_12, %c0_13], %15 {strides = array<i32>} : memref<4x32xf32, #tpu.memory_space<vmem>>, vector<4x32xf32>,
    %cst = arith.constant 1.000000e+00 : f32
    %17 = vector.broadcast %cst : f32 to vector<4x64xf32>
    %18 = arith.cmpf oeq, %13, %17 : vector<4x64xf32>
    %19 = arith.extui %18 : vector<4x64xi1> to vector<4x64xi32>
    %20 = arith.sitofp %19 : vector<4x64xi32> to vector<4x64xf32>
    %cst_14 = arith.constant dense<0.000000e+00> : vector<4x96xf32>
    %21 = tpu.matmul %20, %3, %cst_14 {dimension_numbers = #tpu.dot_dimension_numbers<[1], [0], [0], [1], [0, 0, 1, 1], [], []>} : vector<4x64xf32>, vector<64x96xf32>, vector<4x96xf32> -> vector<4x96xf32>
    %22 = vector.broadcast %8 : vector<1x96xf32> to vector<4x96xf32>
    %23 = arith.addf %21, %22 : vector<4x96xf32>
    %c0_15 = arith.constant 0 : index
    %c0_16 = arith.constant 0 : index
    %24 = vector.load %arg10[%c0_15, %c0_16] : memref<4x96xf32, #tpu.memory_space<vmem>>, vector<4x96xf32>
    tpu.vector_store %arg10[%c0_15, %c0_16], %23 {strides = array<i32>} : memref<4x96xf32, #tpu.memory_space<vmem>>, vector<4x96xf32>,
    %25 = vector.shape_cast %0 : vector<4x8x64xf32> to vector<32x64xf32>
    %c0_17 = arith.constant 0 : index
    %c0_18 = arith.constant 0 : index
    %26 = vector.load %arg2[%c0_17, %c0_18] : memref<64x32xf32, #tpu.memory_space<vmem>>, vector<64x32xf32>
    %cst_19 = arith.constant dense<0.000000e+00> : vector<32x32xf32>
    %27 = tpu.matmul %25, %26, %cst_19 {dimension_numbers = #tpu.dot_dimension_numbers<[1], [0], [0], [1], [0, 0, 1, 1], [], []>} : vector<32x64xf32>, vector<64x32xf32>, vector<32x32xf32> -> vector<32x32xf32>
    %28 = vector.broadcast %7 : vector<1x32xf32> to vector<32x32xf32>
    %29 = arith.addf %27, %28 : vector<32x32xf32>
    %30 = vector.shape_cast %29 : vector<32x32xf32> to vector<4x8x32xf32>
    %c0_i32 = arith.constant 0 : i32
    %c1_i32 = arith.constant 1 : i32
    %31 = arith.muli %c0_i32, %c1_i32 : i32
    %c0_i32_20 = arith.constant 0 : i32
    %32 = arith.addi %c0_i32_20, %31 : i32
    %c0_21 = arith.constant 0 : index
    %c0_22 = arith.constant 0 : index
    %33 = vector.load %arg9[%c0_21, %c0_22] : memref<4x32xf32, #tpu.memory_space<vmem>>, vector<4x32xf32>
    %cst_23 = arith.constant dense<0.000000e+00> : vector<4x128xf32>
    %34 = tpu.matmul %33, %1, %cst_23 {dimension_numbers = #tpu.dot_dimension_numbers<[1], [0], [0], [1], [0, 0, 1, 1], [], []>} : vector<4x32xf32>, vector<32x128xf32>, vector<4x128xf32> -> vector<4x128xf32>
    %35 = vector.extract_strided_slice %34 {offsets = [0, 0], sizes = [4, 32], strides = [1, 1]} : vector<4x128xf32> to vector<4x32xf32>
    %36 = vector.extract_strided_slice %34 {offsets = [0, 32], sizes = [4, 96], strides = [1, 1]} : vector<4x128xf32> to vector<4x96xf32>
    %37 = vector.shape_cast %35 : vector<4x32xf32> to vector<4x1x32xf32>
    %38 = vector.broadcast %37 : vector<4x1x32xf32> to vector<4x8x32xf32>
    %39 = arith.addf %30, %38 : vector<4x8x32xf32>
    %40 = math.tanh %39 : vector<4x8x32xf32>
    %41 = vector.shape_cast %11 : vector<1x32xf32> to vector<1x1x32xf32>
    %42 = vector.broadcast %41 : vector<1x1x32xf32> to vector<4x8x32xf32>
    %43 = arith.mulf %40, %42 : vector<4x8x32xf32>
    %cst_24 = arith.constant dense<0.000000e+00> : vector<4x8xf32>
    %44 = vector.multi_reduction <add>, %43, %cst_24 [2] : vector<4x8x32xf32> to vector<4x8xf32>
    %45 = vector.shape_cast %44 : vector<4x8xf32> to vector<4x8x1xf32>
    %cst_25 = arith.constant dense<0xFF800000> : vector<4x1xf32>
    %46 = vector.multi_reduction <maximumf>, %45, %cst_25 [1] : vector<4x8x1xf32> to vector<4x1xf32>
    %47 = vector.shape_cast %46 : vector<4x1xf32> to vector<4x1x1xf32>
    %48 = vector.broadcast %47 : vector<4x1x1xf32> to vector<4x8x1xf32>
    %49 = arith.subf %45, %48 : vector<4x8x1xf32>
    %50 = math.exp %49 : vector<4x8x1xf32>
    %cst_26 = arith.constant dense<0.000000e+00> : vector<4x1xf32>
    %51 = vector.multi_reduction <add>, %50, %cst_26 [1] : vector<4x8x1xf32> to vector<4x1xf32>
    %52 = vector.shape_cast %51 : vector<4x1xf32> to vector<4x1x1xf32>
    %53 = tpu.reciprocal %52 {approx = true} : vector<4x1x1xf32> -> vector<4x1x1xf32>
    %cst_27 = arith.constant 1.250000e-01 : f32
    %54 = vector.broadcast %cst_27 : f32 to vector<4x1x1xf32>
    %55 = arith.mulf %53, %54 : vector<4x1x1xf32>
    %56 = vector.broadcast %55 : vector<4x1x1xf32> to vector<4x8x1xf32>
    %57 = arith.mulf %50, %56 : vector<4x8x1xf32>
    %58 = vector.broadcast %57 : vector<4x8x1xf32> to vector<4x8x64xf32>
    %59 = arith.mulf %0, %58 : vector<4x8x64xf32>
    %cst_28 = arith.constant dense<0.000000e+00> : vector<4x64xf32>
    %60 = vector.multi_reduction <add>, %59, %cst_28 [1] : vector<4x8x64xf32> to vector<4x64xf32>
    %c0_29 = arith.constant 0 : index
    %c0_30 = arith.constant 0 : index
    %61 = vector.load %arg10[%c0_29, %c0_30] : memref<4x96xf32, #tpu.memory_space<vmem>>, vector<4x96xf32>
    %cst_31 = arith.constant dense<0.000000e+00> : vector<4x96xf32>
    %62 = tpu.matmul %60, %4, %cst_31 {dimension_numbers = #tpu.dot_dimension_numbers<[1], [0], [0], [1], [0, 0, 1, 1], [], []>} : vector<4x64xf32>, vector<64x96xf32>, vector<4x96xf32> -> vector<4x96xf32>
    %63 = arith.addf %61, %62 : vector<4x96xf32>
    %64 = vector.extract_strided_slice %63 {offsets = [0, 0], sizes = [4, 32], strides = [1, 1]} : vector<4x96xf32> to vector<4x32xf32>
    %65 = vector.extract_strided_slice %36 {offsets = [0, 0], sizes = [4, 32], strides = [1, 1]} : vector<4x96xf32> to vector<4x32xf32>
    %66 = arith.addf %64, %65 : vector<4x32xf32>
    %67 = arith.negf %66 : vector<4x32xf32>
    %68 = math.exp %67 : vector<4x32xf32>
    %cst_32 = arith.constant 1.000000e+00 : f32
    %69 = vector.broadcast %cst_32 : f32 to vector<4x32xf32>
    %70 = arith.addf %69, %68 : vector<4x32xf32>
    %71 = arith.divf %69, %70 : vector<4x32xf32>
    %72 = vector.extract_strided_slice %63 {offsets = [0, 32], sizes = [4, 32], strides = [1, 1]} : vector<4x96xf32> to vector<4x32xf32>
    %73 = vector.extract_strided_slice %36 {offsets = [0, 32], sizes = [4, 32], strides = [1, 1]} : vector<4x96xf32> to vector<4x32xf32>
    %74 = arith.addf %72, %73 : vector<4x32xf32>
    %75 = arith.negf %74 : vector<4x32xf32>
    %76 = math.exp %75 : vector<4x32xf32>
    %cst_33 = arith.constant 1.000000e+00 : f32
    %77 = vector.broadcast %cst_33 : f32 to vector<4x32xf32>
    %78 = arith.addf %77, %76 : vector<4x32xf32>
    %79 = arith.divf %77, %78 : vector<4x32xf32>
    %80 = vector.extract_strided_slice %63 {offsets = [0, 64], sizes = [4, 32], strides = [1, 1]} : vector<4x96xf32> to vector<4x32xf32>
    %81 = vector.extract_strided_slice %36 {offsets = [0, 64], sizes = [4, 32], strides = [1, 1]} : vector<4x96xf32> to vector<4x32xf32>
    %82 = vector.broadcast %9 : vector<1x32xf32> to vector<4x32xf32>
    %83 = arith.addf %81, %82 : vector<4x32xf32>
    %84 = arith.mulf %71, %83 : vector<4x32xf32>
    %85 = arith.addf %80, %84 : vector<4x32xf32>
    %86 = math.tanh %85 : vector<4x32xf32>
    %cst_34 = arith.constant 1.000000e+00 : f32
    %87 = vector.broadcast %cst_34 : f32 to vector<4x32xf32>
    %88 = arith.subf %87, %79 : vector<4x32xf32>
    %89 = arith.mulf %88, %86 : vector<4x32xf32>
    %90 = arith.mulf %79, %33 : vector<4x32xf32>
    %91 = arith.addf %89, %90 : vector<4x32xf32>
    %cst_35 = arith.constant dense<0.000000e+00> : vector<4x64xf32>
    %92 = tpu.matmul %91, %5, %cst_35 {dimension_numbers = #tpu.dot_dimension_numbers<[1], [0], [0], [1], [0, 0, 1, 1], [], []>} : vector<4x32xf32>, vector<32x64xf32>, vector<4x64xf32> -> vector<4x64xf32>
    %93 = vector.broadcast %10 : vector<1x64xf32> to vector<4x64xf32>
    %94 = arith.addf %92, %93 : vector<4x64xf32>
    %cst_36 = arith.constant dense<0xFF800000> : vector<4xf32>
    %95 = vector.multi_reduction <maximumf>, %94, %cst_36 [1] : vector<4x64xf32> to vector<4xf32>
    %96 = vector.shape_cast %95 : vector<4xf32> to vector<4x1xf32>
    %97 = vector.broadcast %96 : vector<4x1xf32> to vector<4x64xf32>
    %98 = arith.subf %94, %97 : vector<4x64xf32>
    %99 = math.exp %98 : vector<4x64xf32>
    %cst_37 = arith.constant dense<0.000000e+00> : vector<4xf32>
    %100 = vector.multi_reduction <add>, %99, %cst_37 [1] : vector<4x64xf32> to vector<4xf32>
    %101 = vector.shape_cast %100 : vector<4xf32> to vector<4x1xf32>
    %102 = math.log %101 : vector<4x1xf32>
    %103 = arith.addf %96, %102 : vector<4x1xf32>
    %104 = vector.broadcast %103 : vector<4x1xf32> to vector<4x64xf32>
    %105 = arith.subf %94, %104 : vector<4x64xf32>
    %106 = arith.index_cast %32 : i32 to index
    %c0_38 = arith.constant 0 : index
    %c0_39 = arith.constant 0 : index
    %107 = vector.load %arg7[%106, %c0_38, %c0_39] : memref<6x4x64xf32, #tpu.memory_space<vmem>>, vector<1x4x64xf32>
    %108 = vector.shape_cast %107 : vector<1x4x64xf32> to vector<4x64xf32>
    %109 = vector.shape_cast %105 : vector<4x64xf32> to vector<1x4x64xf32>
    tpu.vector_store %arg7[%106, %c0_38, %c0_39], %109 {strides = array<i32>} : memref<6x4x64xf32, #tpu.memory_space<vmem>>, vector<1x4x64xf32>,
    %110 = vector.broadcast %96 : vector<4x1xf32> to vector<4x64xf32>
    %111 = arith.cmpf oeq, %94, %110 : vector<4x64xf32>
    %cst_40 = arith.constant 6.400000e+01 : f32
    %112 = vector.broadcast %cst_40 : f32 to vector<4x64xf32>
    %113 = arith.select %111, %13, %112 : vector<4x64xi1>, vector<4x64xf32>
    %cst_41 = arith.constant dense<0x7F800000> : vector<4xf32>
    %114 = vector.multi_reduction <minimumf>, %113, %cst_41 [1] : vector<4x64xf32> to vector<4xf32>
    %115 = vector.shape_cast %114 : vector<4xf32> to vector<4x1xf32>
    %116 = vector.broadcast %115 : vector<4x1xf32> to vector<4x64xf32>
    %117 = arith.cmpf oeq, %13, %116 : vector<4x64xf32>
    %118 = arith.extui %117 : vector<4x64xi1> to vector<4x64xi32>
    %119 = arith.sitofp %118 : vector<4x64xi32> to vector<4x64xf32>
    %cst_42 = arith.constant dense<0.000000e+00> : vector<4x96xf32>
    %120 = tpu.matmul %119, %3, %cst_42 {dimension_numbers = #tpu.dot_dimension_numbers<[1], [0], [0], [1], [0, 0, 1, 1], [], []>} : vector<4x64xf32>, vector<64x96xf32>, vector<4x96xf32> -> vector<4x96xf32>
    %121 = vector.broadcast %8 : vector<1x96xf32> to vector<4x96xf32>
    %122 = arith.addf %120, %121 : vector<4x96xf32>
    %c0_43 = arith.constant 0 : index
    %c0_44 = arith.constant 0 : index
    %123 = vector.load %arg10[%c0_43, %c0_44] : memref<4x96xf32, #tpu.memory_space<vmem>>, vector<4x96xf32>
    tpu.vector_store %arg10[%c0_43, %c0_44], %122 {strides = array<i32>} : memref<4x96xf32, #tpu.memory_space<vmem>>, vector<4x96xf32>,
    %c0_45 = arith.constant 0 : index
    %c0_46 = arith.constant 0 : index
    %124 = vector.load %arg9[%c0_45, %c0_46] : memref<4x32xf32, #tpu.memory_space<vmem>>, vector<4x32xf32>
    tpu.vector_store %arg9[%c0_45, %c0_46], %91 {strides = array<i32>} : memref<4x32xf32, #tpu.memory_space<vmem>>, vector<4x32xf32>,
    %c1_i32_47 = arith.constant 1 : i32
    %c1_i32_48 = arith.constant 1 : i32
    %125 = arith.muli %c1_i32_47, %c1_i32_48 : i32
    %c0_i32_49 = arith.constant 0 : i32
    %126 = arith.addi %c0_i32_49, %125 : i32
    %c0_50 = arith.constant 0 : index
    %c0_51 = arith.constant 0 : index
    %127 = vector.load %arg9[%c0_50, %c0_51] : memref<4x32xf32, #tpu.memory_space<vmem>>, vector<4x32xf32>
    %cst_52 = arith.constant dense<0.000000e+00> : vector<4x128xf32>
    %128 = tpu.matmul %127, %1, %cst_52 {dimension_numbers = #tpu.dot_dimension_numbers<[1], [0], [0], [1], [0, 0, 1, 1], [], []>} : vector<4x32xf32>, vector<32x128xf32>, vector<4x128xf32> -> vector<4x128xf32>
    %129 = vector.extract_strided_slice %128 {offsets = [0, 0], sizes = [4, 32], strides = [1, 1]} : vector<4x128xf32> to vector<4x32xf32>
    %130 = vector.extract_strided_slice %128 {offsets = [0, 32], sizes = [4, 96], strides = [1, 1]} : vector<4x128xf32> to vector<4x96xf32>
    %131 = vector.shape_cast %129 : vector<4x32xf32> to vector<4x1x32xf32>
    %132 = vector.broadcast %131 : vector<4x1x32xf32> to vector<4x8x32xf32>
    %133 = arith.addf %30, %132 : vector<4x8x32xf32>
    %134 = math.tanh %133 : vector<4x8x32xf32>
    %135 = vector.shape_cast %11 : vector<1x32xf32> to vector<1x1x32xf32>
    %136 = vector.broadcast %135 : vector<1x1x32xf32> to vector<4x8x32xf32>
    %137 = arith.mulf %134, %136 : vector<4x8x32xf32>
    %cst_53 = arith.constant dense<0.000000e+00> : vector<4x8xf32>
    %138 = vector.multi_reduction <add>, %137, %cst_53 [2] : vector<4x8x32xf32> to vector<4x8xf32>
    %139 = vector.shape_cast %138 : vector<4x8xf32> to vector<4x8x1xf32>
    %cst_54 = arith.constant dense<0xFF800000> : vector<4x1xf32>
    %140 = vector.multi_reduction <maximumf>, %139, %cst_54 [1] : vector<4x8x1xf32> to vector<4x1xf32>
    %141 = vector.shape_cast %140 : vector<4x1xf32> to vector<4x1x1xf32>
    %142 = vector.broadcast %141 : vector<4x1x1xf32> to vector<4x8x1xf32>
    %143 = arith.subf %139, %142 : vector<4x8x1xf32>
    %144 = math.exp %143 : vector<4x8x1xf32>
    %cst_55 = arith.constant dense<0.000000e+00> : vector<4x1xf32>
    %145 = vector.multi_reduction <add>, %144, %cst_55 [1] : vector<4x8x1xf32> to vector<4x1xf32>
    %146 = vector.shape_cast %145 : vector<4x1xf32> to vector<4x1x1xf32>
    %147 = tpu.reciprocal %146 {approx = true} : vector<4x1x1xf32> -> vector<4x1x1xf32>
    %cst_56 = arith.constant 1.250000e-01 : f32
    %148 = vector.broadcast %cst_56 : f32 to vector<4x1x1xf32>
    %149 = arith.mulf %147, %148 : vector<4x1x1xf32>
    %150 = vector.broadcast %149 : vector<4x1x1xf32> to vector<4x8x1xf32>
    %151 = arith.mulf %144, %150 : vector<4x8x1xf32>
    %152 = vector.broadcast %151 : vector<4x8x1xf32> to vector<4x8x64xf32>
    %153 = arith.mulf %0, %152 : vector<4x8x64xf32>
    %cst_57 = arith.constant dense<0.000000e+00> : vector<4x64xf32>
    %154 = vector.multi_reduction <add>, %153, %cst_57 [1] : vector<4x8x64xf32> to vector<4x64xf32>
    %c0_58 = arith.constant 0 : index
    %c0_59 = arith.constant 0 : index
    %155 = vector.load %arg10[%c0_58, %c0_59] : memref<4x96xf32, #tpu.memory_space<vmem>>, vector<4x96xf32>
    %cst_60 = arith.constant dense<0.000000e+00> : vector<4x96xf32>
    %156 = tpu.matmul %154, %4, %cst_60 {dimension_numbers = #tpu.dot_dimension_numbers<[1], [0], [0], [1], [0, 0, 1, 1], [], []>} : vector<4x64xf32>, vector<64x96xf32>, vector<4x96xf32> -> vector<4x96xf32>
    %157 = arith.addf %155, %156 : vector<4x96xf32>
    %158 = vector.extract_strided_slice %157 {offsets = [0, 0], sizes = [4, 32], strides = [1, 1]} : vector<4x96xf32> to vector<4x32xf32>
    %159 = vector.extract_strided_slice %130 {offsets = [0, 0], sizes = [4, 32], strides = [1, 1]} : vector<4x96xf32> to vector<4x32xf32>
    %160 = arith.addf %158, %159 : vector<4x32xf32>
    %161 = arith.negf %160 : vector<4x32xf32>
    %162 = math.exp %161 : vector<4x32xf32>
    %cst_61 = arith.constant 1.000000e+00 : f32
    %163 = vector.broadcast %cst_61 : f32 to vector<4x32xf32>
    %164 = arith.addf %163, %162 : vector<4x32xf32>
    %165 = arith.divf %163, %164 : vector<4x32xf32>
    %166 = vector.extract_strided_slice %157 {offsets = [0, 32], sizes = [4, 32], strides = [1, 1]} : vector<4x96xf32> to vector<4x32xf32>
    %167 = vector.extract_strided_slice %130 {offsets = [0, 32], sizes = [4, 32], strides = [1, 1]} : vector<4x96xf32> to vector<4x32xf32>
    %168 = arith.addf %166, %167 : vector<4x32xf32>
    %169 = arith.negf %168 : vector<4x32xf32>
    %170 = math.exp %169 : vector<4x32xf32>
    %cst_62 = arith.constant 1.000000e+00 : f32
    %171 = vector.broadcast %cst_62 : f32 to vector<4x32xf32>
    %172 = arith.addf %171, %170 : vector<4x32xf32>
    %173 = arith.divf %171, %172 : vector<4x32xf32>
    %174 = vector.extract_strided_slice %157 {offsets = [0, 64], sizes = [4, 32], strides = [1, 1]} : vector<4x96xf32> to vector<4x32xf32>
    %175 = vector.extract_strided_slice %130 {offsets = [0, 64], sizes = [4, 32], strides = [1, 1]} : vector<4x96xf32> to vector<4x32xf32>
    %176 = vector.broadcast %9 : vector<1x32xf32> to vector<4x32xf32>
    %177 = arith.addf %175, %176 : vector<4x32xf32>
    %178 = arith.mulf %165, %177 : vector<4x32xf32>
    %179 = arith.addf %174, %178 : vector<4x32xf32>
    %180 = math.tanh %179 : vector<4x32xf32>
    %cst_63 = arith.constant 1.000000e+00 : f32
    %181 = vector.broadcast %cst_63 : f32 to vector<4x32xf32>
    %182 = arith.subf %181, %173 : vector<4x32xf32>
    %183 = arith.mulf %182, %180 : vector<4x32xf32>
    %184 = arith.mulf %173, %127 : vector<4x32xf32>
    %185 = arith.addf %183, %184 : vector<4x32xf32>
    %cst_64 = arith.constant dense<0.000000e+00> : vector<4x64xf32>
    %186 = tpu.matmul %185, %5, %cst_64 {dimension_numbers = #tpu.dot_dimension_numbers<[1], [0], [0], [1], [0, 0, 1, 1], [], []>} : vector<4x32xf32>, vector<32x64xf32>, vector<4x64xf32> -> vector<4x64xf32>
    %187 = vector.broadcast %10 : vector<1x64xf32> to vector<4x64xf32>
    %188 = arith.addf %186, %187 : vector<4x64xf32>
    %cst_65 = arith.constant dense<0xFF800000> : vector<4xf32>
    %189 = vector.multi_reduction <maximumf>, %188, %cst_65 [1] : vector<4x64xf32> to vector<4xf32>
    %190 = vector.shape_cast %189 : vector<4xf32> to vector<4x1xf32>
    %191 = vector.broadcast %190 : vector<4x1xf32> to vector<4x64xf32>
    %192 = arith.subf %188, %191 : vector<4x64xf32>
    %193 = math.exp %192 : vector<4x64xf32>
    %cst_66 = arith.constant dense<0.000000e+00> : vector<4xf32>
    %194 = vector.multi_reduction <add>, %193, %cst_66 [1] : vector<4x64xf32> to vector<4xf32>
    %195 = vector.shape_cast %194 : vector<4xf32> to vector<4x1xf32>
    %196 = math.log %195 : vector<4x1xf32>
    %197 = arith.addf %190, %196 : vector<4x1xf32>
    %198 = vector.broadcast %197 : vector<4x1xf32> to vector<4x64xf32>
    %199 = arith.subf %188, %198 : vector<4x64xf32>
    %200 = arith.index_cast %126 : i32 to index
    %c0_67 = arith.constant 0 : index
    %c0_68 = arith.constant 0 : index
    %201 = vector.load %arg7[%200, %c0_67, %c0_68] : memref<6x4x64xf32, #tpu.memory_space<vmem>>, vector<1x4x64xf32>
    %202 = vector.shape_cast %201 : vector<1x4x64xf32> to vector<4x64xf32>
    %203 = vector.shape_cast %199 : vector<4x64xf32> to vector<1x4x64xf32>
    tpu.vector_store %arg7[%200, %c0_67, %c0_68], %203 {strides = array<i32>} : memref<6x4x64xf32, #tpu.memory_space<vmem>>, vector<1x4x64xf32>,
    %204 = vector.broadcast %190 : vector<4x1xf32> to vector<4x64xf32>
    %205 = arith.cmpf oeq, %188, %204 : vector<4x64xf32>
    %cst_69 = arith.constant 6.400000e+01 : f32
    %206 = vector.broadcast %cst_69 : f32 to vector<4x64xf32>
    %207 = arith.select %205, %13, %206 : vector<4x64xi1>, vector<4x64xf32>
    %cst_70 = arith.constant dense<0x7F800000> : vector<4xf32>
    %208 = vector.multi_reduction <minimumf>, %207, %cst_70 [1] : vector<4x64xf32> to vector<4xf32>
    %209 = vector.shape_cast %208 : vector<4xf32> to vector<4x1xf32>
    %210 = vector.broadcast %209 : vector<4x1xf32> to vector<4x64xf32>
    %211 = arith.cmpf oeq, %13, %210 : vector<4x64xf32>
    %212 = arith.extui %211 : vector<4x64xi1> to vector<4x64xi32>
    %213 = arith.sitofp %212 : vector<4x64xi32> to vector<4x64xf32>
    %cst_71 = arith.constant dense<0.000000e+00> : vector<4x96xf32>
    %214 = tpu.matmul %213, %3, %cst_71 {dimension_numbers = #tpu.dot_dimension_numbers<[1], [0], [0], [1], [0, 0, 1, 1], [], []>} : vector<4x64xf32>, vector<64x96xf32>, vector<4x96xf32> -> vector<4x96xf32>
    %215 = vector.broadcast %8 : vector<1x96xf32> to vector<4x96xf32>
    %216 = arith.addf %214, %215 : vector<4x96xf32>
    %c0_72 = arith.constant 0 : index
    %c0_73 = arith.constant 0 : index
    %217 = vector.load %arg10[%c0_72, %c0_73] : memref<4x96xf32, #tpu.memory_space<vmem>>, vector<4x96xf32>
    tpu.vector_store %arg10[%c0_72, %c0_73], %216 {strides = array<i32>} : memref<4x96xf32, #tpu.memory_space<vmem>>, vector<4x96xf32>,
    %c0_74 = arith.constant 0 : index
    %c0_75 = arith.constant 0 : index
    %218 = vector.load %arg9[%c0_74, %c0_75] : memref<4x32xf32, #tpu.memory_space<vmem>>, vector<4x32xf32>
    tpu.vector_store %arg9[%c0_74, %c0_75], %185 {strides = array<i32>} : memref<4x32xf32, #tpu.memory_space<vmem>>, vector<4x32xf32>,
    %c2_i32 = arith.constant 2 : i32
    %c1_i32_76 = arith.constant 1 : i32
    %219 = arith.muli %c2_i32, %c1_i32_76 : i32
    %c0_i32_77 = arith.constant 0 : i32
    %220 = arith.addi %c0_i32_77, %219 : i32
    %c0_78 = arith.constant 0 : index
    %c0_79 = arith.constant 0 : index
    %221 = vector.load %arg9[%c0_78, %c0_79] : memref<4x32xf32, #tpu.memory_space<vmem>>, vector<4x32xf32>
    %cst_80 = arith.constant dense<0.000000e+00> : vector<4x128xf32>
    %222 = tpu.matmul %221, %1, %cst_80 {dimension_numbers = #tpu.dot_dimension_numbers<[1], [0], [0], [1], [0, 0, 1, 1], [], []>} : vector<4x32xf32>, vector<32x128xf32>, vector<4x128xf32> -> vector<4x128xf32>
    %223 = vector.extract_strided_slice %222 {offsets = [0, 0], sizes = [4, 32], strides = [1, 1]} : vector<4x128xf32> to vector<4x32xf32>
    %224 = vector.extract_strided_slice %222 {offsets = [0, 32], sizes = [4, 96], strides = [1, 1]} : vector<4x128xf32> to vector<4x96xf32>
    %225 = vector.shape_cast %223 : vector<4x32xf32> to vector<4x1x32xf32>
    %226 = vector.broadcast %225 : vector<4x1x32xf32> to vector<4x8x32xf32>
    %227 = arith.addf %30, %226 : vector<4x8x32xf32>
    %228 = math.tanh %227 : vector<4x8x32xf32>
    %229 = vector.shape_cast %11 : vector<1x32xf32> to vector<1x1x32xf32>
    %230 = vector.broadcast %229 : vector<1x1x32xf32> to vector<4x8x32xf32>
    %231 = arith.mulf %228, %230 : vector<4x8x32xf32>
    %cst_81 = arith.constant dense<0.000000e+00> : vector<4x8xf32>
    %232 = vector.multi_reduction <add>, %231, %cst_81 [2] : vector<4x8x32xf32> to vector<4x8xf32>
    %233 = vector.shape_cast %232 : vector<4x8xf32> to vector<4x8x1xf32>
    %cst_82 = arith.constant dense<0xFF800000> : vector<4x1xf32>
    %234 = vector.multi_reduction <maximumf>, %233, %cst_82 [1] : vector<4x8x1xf32> to vector<4x1xf32>
    %235 = vector.shape_cast %234 : vector<4x1xf32> to vector<4x1x1xf32>
    %236 = vector.broadcast %235 : vector<4x1x1xf32> to vector<4x8x1xf32>
    %237 = arith.subf %233, %236 : vector<4x8x1xf32>
    %238 = math.exp %237 : vector<4x8x1xf32>
    %cst_83 = arith.constant dense<0.000000e+00> : vector<4x1xf32>
    %239 = vector.multi_reduction <add>, %238, %cst_83 [1] : vector<4x8x1xf32> to vector<4x1xf32>
    %240 = vector.shape_cast %239 : vector<4x1xf32> to vector<4x1x1xf32>
    %241 = tpu.reciprocal %240 {approx = true} : vector<4x1x1xf32> -> vector<4x1x1xf32>
    %cst_84 = arith.constant 1.250000e-01 : f32
    %242 = vector.broadcast %cst_84 : f32 to vector<4x1x1xf32>
    %243 = arith.mulf %241, %242 : vector<4x1x1xf32>
    %244 = vector.broadcast %243 : vector<4x1x1xf32> to vector<4x8x1xf32>
    %245 = arith.mulf %238, %244 : vector<4x8x1xf32>
    %246 = vector.broadcast %245 : vector<4x8x1xf32> to vector<4x8x64xf32>
    %247 = arith.mulf %0, %246 : vector<4x8x64xf32>
    %cst_85 = arith.constant dense<0.000000e+00> : vector<4x64xf32>
    %248 = vector.multi_reduction <add>, %247, %cst_85 [1] : vector<4x8x64xf32> to vector<4x64xf32>
    %c0_86 = arith.constant 0 : index
    %c0_87 = arith.constant 0 : index
    %249 = vector.load %arg10[%c0_86, %c0_87] : memref<4x96xf32, #tpu.memory_space<vmem>>, vector<4x96xf32>
    %cst_88 = arith.constant dense<0.000000e+00> : vector<4x96xf32>
    %250 = tpu.matmul %248, %4, %cst_88 {dimension_numbers = #tpu.dot_dimension_numbers<[1], [0], [0], [1], [0, 0, 1, 1], [], []>} : vector<4x64xf32>, vector<64x96xf32>, vector<4x96xf32> -> vector<4x96xf32>
    %251 = arith.addf %249, %250 : vector<4x96xf32>
    %252 = vector.extract_strided_slice %251 {offsets = [0, 0], sizes = [4, 32], strides = [1, 1]} : vector<4x96xf32> to vector<4x32xf32>
    %253 = vector.extract_strided_slice %224 {offsets = [0, 0], sizes = [4, 32], strides = [1, 1]} : vector<4x96xf32> to vector<4x32xf32>
    %254 = arith.addf %252, %253 : vector<4x32xf32>
    %255 = arith.negf %254 : vector<4x32xf32>
    %256 = math.exp %255 : vector<4x32xf32>
    %cst_89 = arith.constant 1.000000e+00 : f32
    %257 = vector.broadcast %cst_89 : f32 to vector<4x32xf32>
    %258 = arith.addf %257, %256 : vector<4x32xf32>
    %259 = arith.divf %257, %258 : vector<4x32xf32>
    %260 = vector.extract_strided_slice %251 {offsets = [0, 32], sizes = [4, 32], strides = [1, 1]} : vector<4x96xf32> to vector<4x32xf32>
    %261 = vector.extract_strided_slice %224 {offsets = [0, 32], sizes = [4, 32], strides = [1, 1]} : vector<4x96xf32> to vector<4x32xf32>
    %262 = arith.addf %260, %261 : vector<4x32xf32>
    %263 = arith.negf %262 : vector<4x32xf32>
    %264 = math.exp %263 : vector<4x32xf32>
    %cst_90 = arith.constant 1.000000e+00 : f32
    %265 = vector.broadcast %cst_90 : f32 to vector<4x32xf32>
    %266 = arith.addf %265, %264 : vector<4x32xf32>
    %267 = arith.divf %265, %266 : vector<4x32xf32>
    %268 = vector.extract_strided_slice %251 {offsets = [0, 64], sizes = [4, 32], strides = [1, 1]} : vector<4x96xf32> to vector<4x32xf32>
    %269 = vector.extract_strided_slice %224 {offsets = [0, 64], sizes = [4, 32], strides = [1, 1]} : vector<4x96xf32> to vector<4x32xf32>
    %270 = vector.broadcast %9 : vector<1x32xf32> to vector<4x32xf32>
    %271 = arith.addf %269, %270 : vector<4x32xf32>
    %272 = arith.mulf %259, %271 : vector<4x32xf32>
    %273 = arith.addf %268, %272 : vector<4x32xf32>
    %274 = math.tanh %273 : vector<4x32xf32>
    %cst_91 = arith.constant 1.000000e+00 : f32
    %275 = vector.broadcast %cst_91 : f32 to vector<4x32xf32>
    %276 = arith.subf %275, %267 : vector<4x32xf32>
    %277 = arith.mulf %276, %274 : vector<4x32xf32>
    %278 = arith.mulf %267, %221 : vector<4x32xf32>
    %279 = arith.addf %277, %278 : vector<4x32xf32>
    %cst_92 = arith.constant dense<0.000000e+00> : vector<4x64xf32>
    %280 = tpu.matmul %279, %5, %cst_92 {dimension_numbers = #tpu.dot_dimension_numbers<[1], [0], [0], [1], [0, 0, 1, 1], [], []>} : vector<4x32xf32>, vector<32x64xf32>, vector<4x64xf32> -> vector<4x64xf32>
    %281 = vector.broadcast %10 : vector<1x64xf32> to vector<4x64xf32>
    %282 = arith.addf %280, %281 : vector<4x64xf32>
    %cst_93 = arith.constant dense<0xFF800000> : vector<4xf32>
    %283 = vector.multi_reduction <maximumf>, %282, %cst_93 [1] : vector<4x64xf32> to vector<4xf32>
    %284 = vector.shape_cast %283 : vector<4xf32> to vector<4x1xf32>
    %285 = vector.broadcast %284 : vector<4x1xf32> to vector<4x64xf32>
    %286 = arith.subf %282, %285 : vector<4x64xf32>
    %287 = math.exp %286 : vector<4x64xf32>
    %cst_94 = arith.constant dense<0.000000e+00> : vector<4xf32>
    %288 = vector.multi_reduction <add>, %287, %cst_94 [1] : vector<4x64xf32> to vector<4xf32>
    %289 = vector.shape_cast %288 : vector<4xf32> to vector<4x1xf32>
    %290 = math.log %289 : vector<4x1xf32>
    %291 = arith.addf %284, %290 : vector<4x1xf32>
    %292 = vector.broadcast %291 : vector<4x1xf32> to vector<4x64xf32>
    %293 = arith.subf %282, %292 : vector<4x64xf32>
    %294 = arith.index_cast %220 : i32 to index
    %c0_95 = arith.constant 0 : index
    %c0_96 = arith.constant 0 : index
    %295 = vector.load %arg7[%294, %c0_95, %c0_96] : memref<6x4x64xf32, #tpu.memory_space<vmem>>, vector<1x4x64xf32>
    %296 = vector.shape_cast %295 : vector<1x4x64xf32> to vector<4x64xf32>
    %297 = vector.shape_cast %293 : vector<4x64xf32> to vector<1x4x64xf32>
    tpu.vector_store %arg7[%294, %c0_95, %c0_96], %297 {strides = array<i32>} : memref<6x4x64xf32, #tpu.memory_space<vmem>>, vector<1x4x64xf32>,
    %298 = vector.broadcast %284 : vector<4x1xf32> to vector<4x64xf32>
    %299 = arith.cmpf oeq, %282, %298 : vector<4x64xf32>
    %cst_97 = arith.constant 6.400000e+01 : f32
    %300 = vector.broadcast %cst_97 : f32 to vector<4x64xf32>
    %301 = arith.select %299, %13, %300 : vector<4x64xi1>, vector<4x64xf32>
    %cst_98 = arith.constant dense<0x7F800000> : vector<4xf32>
    %302 = vector.multi_reduction <minimumf>, %301, %cst_98 [1] : vector<4x64xf32> to vector<4xf32>
    %303 = vector.shape_cast %302 : vector<4xf32> to vector<4x1xf32>
    %304 = vector.broadcast %303 : vector<4x1xf32> to vector<4x64xf32>
    %305 = arith.cmpf oeq, %13, %304 : vector<4x64xf32>
    %306 = arith.extui %305 : vector<4x64xi1> to vector<4x64xi32>
    %307 = arith.sitofp %306 : vector<4x64xi32> to vector<4x64xf32>
    %cst_99 = arith.constant dense<0.000000e+00> : vector<4x96xf32>
    %308 = tpu.matmul %307, %3, %cst_99 {dimension_numbers = #tpu.dot_dimension_numbers<[1], [0], [0], [1], [0, 0, 1, 1], [], []>} : vector<4x64xf32>, vector<64x96xf32>, vector<4x96xf32> -> vector<4x96xf32>
    %309 = vector.broadcast %8 : vector<1x96xf32> to vector<4x96xf32>
    %310 = arith.addf %308, %309 : vector<4x96xf32>
    %c0_100 = arith.constant 0 : index
    %c0_101 = arith.constant 0 : index
    %311 = vector.load %arg10[%c0_100, %c0_101] : memref<4x96xf32, #tpu.memory_space<vmem>>, vector<4x96xf32>
    tpu.vector_store %arg10[%c0_100, %c0_101], %310 {strides = array<i32>} : memref<4x96xf32, #tpu.memory_space<vmem>>, vector<4x96xf32>,
    %c0_102 = arith.constant 0 : index
    %c0_103 = arith.constant 0 : index
    %312 = vector.load %arg9[%c0_102, %c0_103] : memref<4x32xf32, #tpu.memory_space<vmem>>, vector<4x32xf32>
    tpu.vector_store %arg9[%c0_102, %c0_103], %279 {strides = array<i32>} : memref<4x32xf32, #tpu.memory_space<vmem>>, vector<4x32xf32>,
    %c3_i32 = arith.constant 3 : i32
    %c1_i32_104 = arith.constant 1 : i32
    %313 = arith.muli %c3_i32, %c1_i32_104 : i32
    %c0_i32_105 = arith.constant 0 : i32
    %314 = arith.addi %c0_i32_105, %313 : i32
    %c0_106 = arith.constant 0 : index
    %c0_107 = arith.constant 0 : index
    %315 = vector.load %arg9[%c0_106, %c0_107] : memref<4x32xf32, #tpu.memory_space<vmem>>, vector<4x32xf32>
    %cst_108 = arith.constant dense<0.000000e+00> : vector<4x128xf32>
    %316 = tpu.matmul %315, %1, %cst_108 {dimension_numbers = #tpu.dot_dimension_numbers<[1], [0], [0], [1], [0, 0, 1, 1], [], []>} : vector<4x32xf32>, vector<32x128xf32>, vector<4x128xf32> -> vector<4x128xf32>
    %317 = vector.extract_strided_slice %316 {offsets = [0, 0], sizes = [4, 32], strides = [1, 1]} : vector<4x128xf32> to vector<4x32xf32>
    %318 = vector.extract_strided_slice %316 {offsets = [0, 32], sizes = [4, 96], strides = [1, 1]} : vector<4x128xf32> to vector<4x96xf32>
    %319 = vector.shape_cast %317 : vector<4x32xf32> to vector<4x1x32xf32>
    %320 = vector.broadcast %319 : vector<4x1x32xf32> to vector<4x8x32xf32>
    %321 = arith.addf %30, %320 : vector<4x8x32xf32>
    %322 = math.tanh %321 : vector<4x8x32xf32>
    %323 = vector.shape_cast %11 : vector<1x32xf32> to vector<1x1x32xf32>
    %324 = vector.broadcast %323 : vector<1x1x32xf32> to vector<4x8x32xf32>
    %325 = arith.mulf %322, %324 : vector<4x8x32xf32>
    %cst_109 = arith.constant dense<0.000000e+00> : vector<4x8xf32>
    %326 = vector.multi_reduction <add>, %325, %cst_109 [2] : vector<4x8x32xf32> to vector<4x8xf32>
    %327 = vector.shape_cast %326 : vector<4x8xf32> to vector<4x8x1xf32>
    %cst_110 = arith.constant dense<0xFF800000> : vector<4x1xf32>
    %328 = vector.multi_reduction <maximumf>, %327, %cst_110 [1] : vector<4x8x1xf32> to vector<4x1xf32>
    %329 = vector.shape_cast %328 : vector<4x1xf32> to vector<4x1x1xf32>
    %330 = vector.broadcast %329 : vector<4x1x1xf32> to vector<4x8x1xf32>
    %331 = arith.subf %327, %330 : vector<4x8x1xf32>
    %332 = math.exp %331 : vector<4x8x1xf32>
    %cst_111 = arith.constant dense<0.000000e+00> : vector<4x1xf32>
    %333 = vector.multi_reduction <add>, %332, %cst_111 [1] : vector<4x8x1xf32> to vector<4x1xf32>
    %334 = vector.shape_cast %333 : vector<4x1xf32> to vector<4x1x1xf32>
    %335 = tpu.reciprocal %334 {approx = true} : vector<4x1x1xf32> -> vector<4x1x1xf32>
    %cst_112 = arith.constant 1.250000e-01 : f32
    %336 = vector.broadcast %cst_112 : f32 to vector<4x1x1xf32>
    %337 = arith.mulf %335, %336 : vector<4x1x1xf32>
    %338 = vector.broadcast %337 : vector<4x1x1xf32> to vector<4x8x1xf32>
    %339 = arith.mulf %332, %338 : vector<4x8x1xf32>
    %340 = vector.broadcast %339 : vector<4x8x1xf32> to vector<4x8x64xf32>
    %341 = arith.mulf %0, %340 : vector<4x8x64xf32>
    %cst_113 = arith.constant dense<0.000000e+00> : vector<4x64xf32>
    %342 = vector.multi_reduction <add>, %341, %cst_113 [1] : vector<4x8x64xf32> to vector<4x64xf32>
    %c0_114 = arith.constant 0 : index
    %c0_115 = arith.constant 0 : index
    %343 = vector.load %arg10[%c0_114, %c0_115] : memref<4x96xf32, #tpu.memory_space<vmem>>, vector<4x96xf32>
    %cst_116 = arith.constant dense<0.000000e+00> : vector<4x96xf32>
    %344 = tpu.matmul %342, %4, %cst_116 {dimension_numbers = #tpu.dot_dimension_numbers<[1], [0], [0], [1], [0, 0, 1, 1], [], []>} : vector<4x64xf32>, vector<64x96xf32>, vector<4x96xf32> -> vector<4x96xf32>
    %345 = arith.addf %343, %344 : vector<4x96xf32>
    %346 = vector.extract_strided_slice %345 {offsets = [0, 0], sizes = [4, 32], strides = [1, 1]} : vector<4x96xf32> to vector<4x32xf32>
    %347 = vector.extract_strided_slice %318 {offsets = [0, 0], sizes = [4, 32], strides = [1, 1]} : vector<4x96xf32> to vector<4x32xf32>
    %348 = arith.addf %346, %347 : vector<4x32xf32>
    %349 = arith.negf %348 : vector<4x32xf32>
    %350 = math.exp %349 : vector<4x32xf32>
    %cst_117 = arith.constant 1.000000e+00 : f32
    %351 = vector.broadcast %cst_117 : f32 to vector<4x32xf32>
    %352 = arith.addf %351, %350 : vector<4x32xf32>
    %353 = arith.divf %351, %352 : vector<4x32xf32>
    %354 = vector.extract_strided_slice %345 {offsets = [0, 32], sizes = [4, 32], strides = [1, 1]} : vector<4x96xf32> to vector<4x32xf32>
    %355 = vector.extract_strided_slice %318 {offsets = [0, 32], sizes = [4, 32], strides = [1, 1]} : vector<4x96xf32> to vector<4x32xf32>
    %356 = arith.addf %354, %355 : vector<4x32xf32>
    %357 = arith.negf %356 : vector<4x32xf32>
    %358 = math.exp %357 : vector<4x32xf32>
    %cst_118 = arith.constant 1.000000e+00 : f32
    %359 = vector.broadcast %cst_118 : f32 to vector<4x32xf32>
    %360 = arith.addf %359, %358 : vector<4x32xf32>
    %361 = arith.divf %359, %360 : vector<4x32xf32>
    %362 = vector.extract_strided_slice %345 {offsets = [0, 64], sizes = [4, 32], strides = [1, 1]} : vector<4x96xf32> to vector<4x32xf32>
    %363 = vector.extract_strided_slice %318 {offsets = [0, 64], sizes = [4, 32], strides = [1, 1]} : vector<4x96xf32> to vector<4x32xf32>
    %364 = vector.broadcast %9 : vector<1x32xf32> to vector<4x32xf32>
    %365 = arith.addf %363, %364 : vector<4x32xf32>
    %366 = arith.mulf %353, %365 : vector<4x32xf32>
    %367 = arith.addf %362, %366 : vector<4x32xf32>
    %368 = math.tanh %367 : vector<4x32xf32>
    %cst_119 = arith.constant 1.000000e+00 : f32
    %369 = vector.broadcast %cst_119 : f32 to vector<4x32xf32>
    %370 = arith.subf %369, %361 : vector<4x32xf32>
    %371 = arith.mulf %370, %368 : vector<4x32xf32>
    %372 = arith.mulf %361, %315 : vector<4x32xf32>
    %373 = arith.addf %371, %372 : vector<4x32xf32>
    %cst_120 = arith.constant dense<0.000000e+00> : vector<4x64xf32>
    %374 = tpu.matmul %373, %5, %cst_120 {dimension_numbers = #tpu.dot_dimension_numbers<[1], [0], [0], [1], [0, 0, 1, 1], [], []>} : vector<4x32xf32>, vector<32x64xf32>, vector<4x64xf32> -> vector<4x64xf32>
    %375 = vector.broadcast %10 : vector<1x64xf32> to vector<4x64xf32>
    %376 = arith.addf %374, %375 : vector<4x64xf32>
    %cst_121 = arith.constant dense<0xFF800000> : vector<4xf32>
    %377 = vector.multi_reduction <maximumf>, %376, %cst_121 [1] : vector<4x64xf32> to vector<4xf32>
    %378 = vector.shape_cast %377 : vector<4xf32> to vector<4x1xf32>
    %379 = vector.broadcast %378 : vector<4x1xf32> to vector<4x64xf32>
    %380 = arith.subf %376, %379 : vector<4x64xf32>
    %381 = math.exp %380 : vector<4x64xf32>
    %cst_122 = arith.constant dense<0.000000e+00> : vector<4xf32>
    %382 = vector.multi_reduction <add>, %381, %cst_122 [1] : vector<4x64xf32> to vector<4xf32>
    %383 = vector.shape_cast %382 : vector<4xf32> to vector<4x1xf32>
    %384 = math.log %383 : vector<4x1xf32>
    %385 = arith.addf %378, %384 : vector<4x1xf32>
    %386 = vector.broadcast %385 : vector<4x1xf32> to vector<4x64xf32>
    %387 = arith.subf %376, %386 : vector<4x64xf32>
    %388 = arith.index_cast %314 : i32 to index
    %c0_123 = arith.constant 0 : index
    %c0_124 = arith.constant 0 : index
    %389 = vector.load %arg7[%388, %c0_123, %c0_124] : memref<6x4x64xf32, #tpu.memory_space<vmem>>, vector<1x4x64xf32>
    %390 = vector.shape_cast %389 : vector<1x4x64xf32> to vector<4x64xf32>
    %391 = vector.shape_cast %387 : vector<4x64xf32> to vector<1x4x64xf32>
    tpu.vector_store %arg7[%388, %c0_123, %c0_124], %391 {strides = array<i32>} : memref<6x4x64xf32, #tpu.memory_space<vmem>>, vector<1x4x64xf32>,
    %392 = vector.broadcast %378 : vector<4x1xf32> to vector<4x64xf32>
    %393 = arith.cmpf oeq, %376, %392 : vector<4x64xf32>
    %cst_125 = arith.constant 6.400000e+01 : f32
    %394 = vector.broadcast %cst_125 : f32 to vector<4x64xf32>
    %395 = arith.select %393, %13, %394 : vector<4x64xi1>, vector<4x64xf32>
    %cst_126 = arith.constant dense<0x7F800000> : vector<4xf32>
    %396 = vector.multi_reduction <minimumf>, %395, %cst_126 [1] : vector<4x64xf32> to vector<4xf32>
    %397 = vector.shape_cast %396 : vector<4xf32> to vector<4x1xf32>
    %398 = vector.broadcast %397 : vector<4x1xf32> to vector<4x64xf32>
    %399 = arith.cmpf oeq, %13, %398 : vector<4x64xf32>
    %400 = arith.extui %399 : vector<4x64xi1> to vector<4x64xi32>
    %401 = arith.sitofp %400 : vector<4x64xi32> to vector<4x64xf32>
    %cst_127 = arith.constant dense<0.000000e+00> : vector<4x96xf32>
    %402 = tpu.matmul %401, %3, %cst_127 {dimension_numbers = #tpu.dot_dimension_numbers<[1], [0], [0], [1], [0, 0, 1, 1], [], []>} : vector<4x64xf32>, vector<64x96xf32>, vector<4x96xf32> -> vector<4x96xf32>
    %403 = vector.broadcast %8 : vector<1x96xf32> to vector<4x96xf32>
    %404 = arith.addf %402, %403 : vector<4x96xf32>
    %c0_128 = arith.constant 0 : index
    %c0_129 = arith.constant 0 : index
    %405 = vector.load %arg10[%c0_128, %c0_129] : memref<4x96xf32, #tpu.memory_space<vmem>>, vector<4x96xf32>
    tpu.vector_store %arg10[%c0_128, %c0_129], %404 {strides = array<i32>} : memref<4x96xf32, #tpu.memory_space<vmem>>, vector<4x96xf32>,
    %c0_130 = arith.constant 0 : index
    %c0_131 = arith.constant 0 : index
    %406 = vector.load %arg9[%c0_130, %c0_131] : memref<4x32xf32, #tpu.memory_space<vmem>>, vector<4x32xf32>
    tpu.vector_store %arg9[%c0_130, %c0_131], %373 {strides = array<i32>} : memref<4x32xf32, #tpu.memory_space<vmem>>, vector<4x32xf32>,
    %c4_i32 = arith.constant 4 : i32
    %c1_i32_132 = arith.constant 1 : i32
    %407 = arith.muli %c4_i32, %c1_i32_132 : i32
    %c0_i32_133 = arith.constant 0 : i32
    %408 = arith.addi %c0_i32_133, %407 : i32
    %c0_134 = arith.constant 0 : index
    %c0_135 = arith.constant 0 : index
    %409 = vector.load %arg9[%c0_134, %c0_135] : memref<4x32xf32, #tpu.memory_space<vmem>>, vector<4x32xf32>
    %cst_136 = arith.constant dense<0.000000e+00> : vector<4x128xf32>
    %410 = tpu.matmul %409, %1, %cst_136 {dimension_numbers = #tpu.dot_dimension_numbers<[1], [0], [0], [1], [0, 0, 1, 1], [], []>} : vector<4x32xf32>, vector<32x128xf32>, vector<4x128xf32> -> vector<4x128xf32>
    %411 = vector.extract_strided_slice %410 {offsets = [0, 0], sizes = [4, 32], strides = [1, 1]} : vector<4x128xf32> to vector<4x32xf32>
    %412 = vector.extract_strided_slice %410 {offsets = [0, 32], sizes = [4, 96], strides = [1, 1]} : vector<4x128xf32> to vector<4x96xf32>
    %413 = vector.shape_cast %411 : vector<4x32xf32> to vector<4x1x32xf32>
    %414 = vector.broadcast %413 : vector<4x1x32xf32> to vector<4x8x32xf32>
    %415 = arith.addf %30, %414 : vector<4x8x32xf32>
    %416 = math.tanh %415 : vector<4x8x32xf32>
    %417 = vector.shape_cast %11 : vector<1x32xf32> to vector<1x1x32xf32>
    %418 = vector.broadcast %417 : vector<1x1x32xf32> to vector<4x8x32xf32>
    %419 = arith.mulf %416, %418 : vector<4x8x32xf32>
    %cst_137 = arith.constant dense<0.000000e+00> : vector<4x8xf32>
    %420 = vector.multi_reduction <add>, %419, %cst_137 [2] : vector<4x8x32xf32> to vector<4x8xf32>
    %421 = vector.shape_cast %420 : vector<4x8xf32> to vector<4x8x1xf32>
    %cst_138 = arith.constant dense<0xFF800000> : vector<4x1xf32>
    %422 = vector.multi_reduction <maximumf>, %421, %cst_138 [1] : vector<4x8x1xf32> to vector<4x1xf32>
    %423 = vector.shape_cast %422 : vector<4x1xf32> to vector<4x1x1xf32>
    %424 = vector.broadcast %423 : vector<4x1x1xf32> to vector<4x8x1xf32>
    %425 = arith.subf %421, %424 : vector<4x8x1xf32>
    %426 = math.exp %425 : vector<4x8x1xf32>
    %cst_139 = arith.constant dense<0.000000e+00> : vector<4x1xf32>
    %427 = vector.multi_reduction <add>, %426, %cst_139 [1] : vector<4x8x1xf32> to vector<4x1xf32>
    %428 = vector.shape_cast %427 : vector<4x1xf32> to vector<4x1x1xf32>
    %429 = tpu.reciprocal %428 {approx = true} : vector<4x1x1xf32> -> vector<4x1x1xf32>
    %cst_140 = arith.constant 1.250000e-01 : f32
    %430 = vector.broadcast %cst_140 : f32 to vector<4x1x1xf32>
    %431 = arith.mulf %429, %430 : vector<4x1x1xf32>
    %432 = vector.broadcast %431 : vector<4x1x1xf32> to vector<4x8x1xf32>
    %433 = arith.mulf %426, %432 : vector<4x8x1xf32>
    %434 = vector.broadcast %433 : vector<4x8x1xf32> to vector<4x8x64xf32>
    %435 = arith.mulf %0, %434 : vector<4x8x64xf32>
    %cst_141 = arith.constant dense<0.000000e+00> : vector<4x64xf32>
    %436 = vector.multi_reduction <add>, %435, %cst_141 [1] : vector<4x8x64xf32> to vector<4x64xf32>
    %c0_142 = arith.constant 0 : index
    %c0_143 = arith.constant 0 : index
    %437 = vector.load %arg10[%c0_142, %c0_143] : memref<4x96xf32, #tpu.memory_space<vmem>>, vector<4x96xf32>
    %cst_144 = arith.constant dense<0.000000e+00> : vector<4x96xf32>
    %438 = tpu.matmul %436, %4, %cst_144 {dimension_numbers = #tpu.dot_dimension_numbers<[1], [0], [0], [1], [0, 0, 1, 1], [], []>} : vector<4x64xf32>, vector<64x96xf32>, vector<4x96xf32> -> vector<4x96xf32>
    %439 = arith.addf %437, %438 : vector<4x96xf32>
    %440 = vector.extract_strided_slice %439 {offsets = [0, 0], sizes = [4, 32], strides = [1, 1]} : vector<4x96xf32> to vector<4x32xf32>
    %441 = vector.extract_strided_slice %412 {offsets = [0, 0], sizes = [4, 32], strides = [1, 1]} : vector<4x96xf32> to vector<4x32xf32>
    %442 = arith.addf %440, %441 : vector<4x32xf32>
    %443 = arith.negf %442 : vector<4x32xf32>
    %444 = math.exp %443 : vector<4x32xf32>
    %cst_145 = arith.constant 1.000000e+00 : f32
    %445 = vector.broadcast %cst_145 : f32 to vector<4x32xf32>
    %446 = arith.addf %445, %444 : vector<4x32xf32>
    %447 = arith.divf %445, %446 : vector<4x32xf32>
    %448 = vector.extract_strided_slice %439 {offsets = [0, 32], sizes = [4, 32], strides = [1, 1]} : vector<4x96xf32> to vector<4x32xf32>
    %449 = vector.extract_strided_slice %412 {offsets = [0, 32], sizes = [4, 32], strides = [1, 1]} : vector<4x96xf32> to vector<4x32xf32>
    %450 = arith.addf %448, %449 : vector<4x32xf32>
    %451 = arith.negf %450 : vector<4x32xf32>
    %452 = math.exp %451 : vector<4x32xf32>
    %cst_146 = arith.constant 1.000000e+00 : f32
    %453 = vector.broadcast %cst_146 : f32 to vector<4x32xf32>
    %454 = arith.addf %453, %452 : vector<4x32xf32>
    %455 = arith.divf %453, %454 : vector<4x32xf32>
    %456 = vector.extract_strided_slice %439 {offsets = [0, 64], sizes = [4, 32], strides = [1, 1]} : vector<4x96xf32> to vector<4x32xf32>
    %457 = vector.extract_strided_slice %412 {offsets = [0, 64], sizes = [4, 32], strides = [1, 1]} : vector<4x96xf32> to vector<4x32xf32>
    %458 = vector.broadcast %9 : vector<1x32xf32> to vector<4x32xf32>
    %459 = arith.addf %457, %458 : vector<4x32xf32>
    %460 = arith.mulf %447, %459 : vector<4x32xf32>
    %461 = arith.addf %456, %460 : vector<4x32xf32>
    %462 = math.tanh %461 : vector<4x32xf32>
    %cst_147 = arith.constant 1.000000e+00 : f32
    %463 = vector.broadcast %cst_147 : f32 to vector<4x32xf32>
    %464 = arith.subf %463, %455 : vector<4x32xf32>
    %465 = arith.mulf %464, %462 : vector<4x32xf32>
    %466 = arith.mulf %455, %409 : vector<4x32xf32>
    %467 = arith.addf %465, %466 : vector<4x32xf32>
    %cst_148 = arith.constant dense<0.000000e+00> : vector<4x64xf32>
    %468 = tpu.matmul %467, %5, %cst_148 {dimension_numbers = #tpu.dot_dimension_numbers<[1], [0], [0], [1], [0, 0, 1, 1], [], []>} : vector<4x32xf32>, vector<32x64xf32>, vector<4x64xf32> -> vector<4x64xf32>
    %469 = vector.broadcast %10 : vector<1x64xf32> to vector<4x64xf32>
    %470 = arith.addf %468, %469 : vector<4x64xf32>
    %cst_149 = arith.constant dense<0xFF800000> : vector<4xf32>
    %471 = vector.multi_reduction <maximumf>, %470, %cst_149 [1] : vector<4x64xf32> to vector<4xf32>
    %472 = vector.shape_cast %471 : vector<4xf32> to vector<4x1xf32>
    %473 = vector.broadcast %472 : vector<4x1xf32> to vector<4x64xf32>
    %474 = arith.subf %470, %473 : vector<4x64xf32>
    %475 = math.exp %474 : vector<4x64xf32>
    %cst_150 = arith.constant dense<0.000000e+00> : vector<4xf32>
    %476 = vector.multi_reduction <add>, %475, %cst_150 [1] : vector<4x64xf32> to vector<4xf32>
    %477 = vector.shape_cast %476 : vector<4xf32> to vector<4x1xf32>
    %478 = math.log %477 : vector<4x1xf32>
    %479 = arith.addf %472, %478 : vector<4x1xf32>
    %480 = vector.broadcast %479 : vector<4x1xf32> to vector<4x64xf32>
    %481 = arith.subf %470, %480 : vector<4x64xf32>
    %482 = arith.index_cast %408 : i32 to index
    %c0_151 = arith.constant 0 : index
    %c0_152 = arith.constant 0 : index
    %483 = vector.load %arg7[%482, %c0_151, %c0_152] : memref<6x4x64xf32, #tpu.memory_space<vmem>>, vector<1x4x64xf32>
    %484 = vector.shape_cast %483 : vector<1x4x64xf32> to vector<4x64xf32>
    %485 = vector.shape_cast %481 : vector<4x64xf32> to vector<1x4x64xf32>
    tpu.vector_store %arg7[%482, %c0_151, %c0_152], %485 {strides = array<i32>} : memref<6x4x64xf32, #tpu.memory_space<vmem>>, vector<1x4x64xf32>,
    %486 = vector.broadcast %472 : vector<4x1xf32> to vector<4x64xf32>
    %487 = arith.cmpf oeq, %470, %486 : vector<4x64xf32>
    %cst_153 = arith.constant 6.400000e+01 : f32
    %488 = vector.broadcast %cst_153 : f32 to vector<4x64xf32>
    %489 = arith.select %487, %13, %488 : vector<4x64xi1>, vector<4x64xf32>
    %cst_154 = arith.constant dense<0x7F800000> : vector<4xf32>
    %490 = vector.multi_reduction <minimumf>, %489, %cst_154 [1] : vector<4x64xf32> to vector<4xf32>
    %491 = vector.shape_cast %490 : vector<4xf32> to vector<4x1xf32>
    %492 = vector.broadcast %491 : vector<4x1xf32> to vector<4x64xf32>
    %493 = arith.cmpf oeq, %13, %492 : vector<4x64xf32>
    %494 = arith.extui %493 : vector<4x64xi1> to vector<4x64xi32>
    %495 = arith.sitofp %494 : vector<4x64xi32> to vector<4x64xf32>
    %cst_155 = arith.constant dense<0.000000e+00> : vector<4x96xf32>
    %496 = tpu.matmul %495, %3, %cst_155 {dimension_numbers = #tpu.dot_dimension_numbers<[1], [0], [0], [1], [0, 0, 1, 1], [], []>} : vector<4x64xf32>, vector<64x96xf32>, vector<4x96xf32> -> vector<4x96xf32>
    %497 = vector.broadcast %8 : vector<1x96xf32> to vector<4x96xf32>
    %498 = arith.addf %496, %497 : vector<4x96xf32>
    %c0_156 = arith.constant 0 : index
    %c0_157 = arith.constant 0 : index
    %499 = vector.load %arg10[%c0_156, %c0_157] : memref<4x96xf32, #tpu.memory_space<vmem>>, vector<4x96xf32>
    tpu.vector_store %arg10[%c0_156, %c0_157], %498 {strides = array<i32>} : memref<4x96xf32, #tpu.memory_space<vmem>>, vector<4x96xf32>,
    %c0_158 = arith.constant 0 : index
    %c0_159 = arith.constant 0 : index
    %500 = vector.load %arg9[%c0_158, %c0_159] : memref<4x32xf32, #tpu.memory_space<vmem>>, vector<4x32xf32>
    tpu.vector_store %arg9[%c0_158, %c0_159], %467 {strides = array<i32>} : memref<4x32xf32, #tpu.memory_space<vmem>>, vector<4x32xf32>,
    %c5_i32 = arith.constant 5 : i32
    %c1_i32_160 = arith.constant 1 : i32
    %501 = arith.muli %c5_i32, %c1_i32_160 : i32
    %c0_i32_161 = arith.constant 0 : i32
    %502 = arith.addi %c0_i32_161, %501 : i32
    %c0_162 = arith.constant 0 : index
    %c0_163 = arith.constant 0 : index
    %503 = vector.load %arg9[%c0_162, %c0_163] : memref<4x32xf32, #tpu.memory_space<vmem>>, vector<4x32xf32>
    %cst_164 = arith.constant dense<0.000000e+00> : vector<4x128xf32>
    %504 = tpu.matmul %503, %1, %cst_164 {dimension_numbers = #tpu.dot_dimension_numbers<[1], [0], [0], [1], [0, 0, 1, 1], [], []>} : vector<4x32xf32>, vector<32x128xf32>, vector<4x128xf32> -> vector<4x128xf32>
    %505 = vector.extract_strided_slice %504 {offsets = [0, 0], sizes = [4, 32], strides = [1, 1]} : vector<4x128xf32> to vector<4x32xf32>
    %506 = vector.extract_strided_slice %504 {offsets = [0, 32], sizes = [4, 96], strides = [1, 1]} : vector<4x128xf32> to vector<4x96xf32>
    %507 = vector.shape_cast %505 : vector<4x32xf32> to vector<4x1x32xf32>
    %508 = vector.broadcast %507 : vector<4x1x32xf32> to vector<4x8x32xf32>
    %509 = arith.addf %30, %508 : vector<4x8x32xf32>
    %510 = math.tanh %509 : vector<4x8x32xf32>
    %511 = vector.shape_cast %11 : vector<1x32xf32> to vector<1x1x32xf32>
    %512 = vector.broadcast %511 : vector<1x1x32xf32> to vector<4x8x32xf32>
    %513 = arith.mulf %510, %512 : vector<4x8x32xf32>
    %cst_165 = arith.constant dense<0.000000e+00> : vector<4x8xf32>
    %514 = vector.multi_reduction <add>, %513, %cst_165 [2] : vector<4x8x32xf32> to vector<4x8xf32>
    %515 = vector.shape_cast %514 : vector<4x8xf32> to vector<4x8x1xf32>
    %cst_166 = arith.constant dense<0xFF800000> : vector<4x1xf32>
    %516 = vector.multi_reduction <maximumf>, %515, %cst_166 [1] : vector<4x8x1xf32> to vector<4x1xf32>
    %517 = vector.shape_cast %516 : vector<4x1xf32> to vector<4x1x1xf32>
    %518 = vector.broadcast %517 : vector<4x1x1xf32> to vector<4x8x1xf32>
    %519 = arith.subf %515, %518 : vector<4x8x1xf32>
    %520 = math.exp %519 : vector<4x8x1xf32>
    %cst_167 = arith.constant dense<0.000000e+00> : vector<4x1xf32>
    %521 = vector.multi_reduction <add>, %520, %cst_167 [1] : vector<4x8x1xf32> to vector<4x1xf32>
    %522 = vector.shape_cast %521 : vector<4x1xf32> to vector<4x1x1xf32>
    %523 = tpu.reciprocal %522 {approx = true} : vector<4x1x1xf32> -> vector<4x1x1xf32>
    %cst_168 = arith.constant 1.250000e-01 : f32
    %524 = vector.broadcast %cst_168 : f32 to vector<4x1x1xf32>
    %525 = arith.mulf %523, %524 : vector<4x1x1xf32>
    %526 = vector.broadcast %525 : vector<4x1x1xf32> to vector<4x8x1xf32>
    %527 = arith.mulf %520, %526 : vector<4x8x1xf32>
    %528 = vector.broadcast %527 : vector<4x8x1xf32> to vector<4x8x64xf32>
    %529 = arith.mulf %0, %528 : vector<4x8x64xf32>
    %cst_169 = arith.constant dense<0.000000e+00> : vector<4x64xf32>
    %530 = vector.multi_reduction <add>, %529, %cst_169 [1] : vector<4x8x64xf32> to vector<4x64xf32>
    %c0_170 = arith.constant 0 : index
    %c0_171 = arith.constant 0 : index
    %531 = vector.load %arg10[%c0_170, %c0_171] : memref<4x96xf32, #tpu.memory_space<vmem>>, vector<4x96xf32>
    %cst_172 = arith.constant dense<0.000000e+00> : vector<4x96xf32>
    %532 = tpu.matmul %530, %4, %cst_172 {dimension_numbers = #tpu.dot_dimension_numbers<[1], [0], [0], [1], [0, 0, 1, 1], [], []>} : vector<4x64xf32>, vector<64x96xf32>, vector<4x96xf32> -> vector<4x96xf32>
    %533 = arith.addf %531, %532 : vector<4x96xf32>
    %534 = vector.extract_strided_slice %533 {offsets = [0, 0], sizes = [4, 32], strides = [1, 1]} : vector<4x96xf32> to vector<4x32xf32>
    %535 = vector.extract_strided_slice %506 {offsets = [0, 0], sizes = [4, 32], strides = [1, 1]} : vector<4x96xf32> to vector<4x32xf32>
    %536 = arith.addf %534, %535 : vector<4x32xf32>
    %537 = arith.negf %536 : vector<4x32xf32>
    %538 = math.exp %537 : vector<4x32xf32>
    %cst_173 = arith.constant 1.000000e+00 : f32
    %539 = vector.broadcast %cst_173 : f32 to vector<4x32xf32>
    %540 = arith.addf %539, %538 : vector<4x32xf32>
    %541 = arith.divf %539, %540 : vector<4x32xf32>
    %542 = vector.extract_strided_slice %533 {offsets = [0, 32], sizes = [4, 32], strides = [1, 1]} : vector<4x96xf32> to vector<4x32xf32>
    %543 = vector.extract_strided_slice %506 {offsets = [0, 32], sizes = [4, 32], strides = [1, 1]} : vector<4x96xf32> to vector<4x32xf32>
    %544 = arith.addf %542, %543 : vector<4x32xf32>
    %545 = arith.negf %544 : vector<4x32xf32>
    %546 = math.exp %545 : vector<4x32xf32>
    %cst_174 = arith.constant 1.000000e+00 : f32
    %547 = vector.broadcast %cst_174 : f32 to vector<4x32xf32>
    %548 = arith.addf %547, %546 : vector<4x32xf32>
    %549 = arith.divf %547, %548 : vector<4x32xf32>
    %550 = vector.extract_strided_slice %533 {offsets = [0, 64], sizes = [4, 32], strides = [1, 1]} : vector<4x96xf32> to vector<4x32xf32>
    %551 = vector.extract_strided_slice %506 {offsets = [0, 64], sizes = [4, 32], strides = [1, 1]} : vector<4x96xf32> to vector<4x32xf32>
    %552 = vector.broadcast %9 : vector<1x32xf32> to vector<4x32xf32>
    %553 = arith.addf %551, %552 : vector<4x32xf32>
    %554 = arith.mulf %541, %553 : vector<4x32xf32>
    %555 = arith.addf %550, %554 : vector<4x32xf32>
    %556 = math.tanh %555 : vector<4x32xf32>
    %cst_175 = arith.constant 1.000000e+00 : f32
    %557 = vector.broadcast %cst_175 : f32 to vector<4x32xf32>
    %558 = arith.subf %557, %549 : vector<4x32xf32>
    %559 = arith.mulf %558, %556 : vector<4x32xf32>
    %560 = arith.mulf %549, %503 : vector<4x32xf32>
    %561 = arith.addf %559, %560 : vector<4x32xf32>
    %cst_176 = arith.constant dense<0.000000e+00> : vector<4x64xf32>
    %562 = tpu.matmul %561, %5, %cst_176 {dimension_numbers = #tpu.dot_dimension_numbers<[1], [0], [0], [1], [0, 0, 1, 1], [], []>} : vector<4x32xf32>, vector<32x64xf32>, vector<4x64xf32> -> vector<4x64xf32>
    %563 = vector.broadcast %10 : vector<1x64xf32> to vector<4x64xf32>
    %564 = arith.addf %562, %563 : vector<4x64xf32>
    %cst_177 = arith.constant dense<0xFF800000> : vector<4xf32>
    %565 = vector.multi_reduction <maximumf>, %564, %cst_177 [1] : vector<4x64xf32> to vector<4xf32>
    %566 = vector.shape_cast %565 : vector<4xf32> to vector<4x1xf32>
    %567 = vector.broadcast %566 : vector<4x1xf32> to vector<4x64xf32>
    %568 = arith.subf %564, %567 : vector<4x64xf32>
    %569 = math.exp %568 : vector<4x64xf32>
    %cst_178 = arith.constant dense<0.000000e+00> : vector<4xf32>
    %570 = vector.multi_reduction <add>, %569, %cst_178 [1] : vector<4x64xf32> to vector<4xf32>
    %571 = vector.shape_cast %570 : vector<4xf32> to vector<4x1xf32>
    %572 = math.log %571 : vector<4x1xf32>
    %573 = arith.addf %566, %572 : vector<4x1xf32>
    %574 = vector.broadcast %573 : vector<4x1xf32> to vector<4x64xf32>
    %575 = arith.subf %564, %574 : vector<4x64xf32>
    %576 = arith.index_cast %502 : i32 to index
    %c0_179 = arith.constant 0 : index
    %c0_180 = arith.constant 0 : index
    %577 = vector.load %arg7[%576, %c0_179, %c0_180] : memref<6x4x64xf32, #tpu.memory_space<vmem>>, vector<1x4x64xf32>
    %578 = vector.shape_cast %577 : vector<1x4x64xf32> to vector<4x64xf32>
    %579 = vector.shape_cast %575 : vector<4x64xf32> to vector<1x4x64xf32>
    tpu.vector_store %arg7[%576, %c0_179, %c0_180], %579 {strides = array<i32>} : memref<6x4x64xf32, #tpu.memory_space<vmem>>, vector<1x4x64xf32>,
    %580 = vector.broadcast %566 : vector<4x1xf32> to vector<4x64xf32>
    %581 = arith.cmpf oeq, %564, %580 : vector<4x64xf32>
    %cst_181 = arith.constant 6.400000e+01 : f32
    %582 = vector.broadcast %cst_181 : f32 to vector<4x64xf32>
    %583 = arith.select %581, %13, %582 : vector<4x64xi1>, vector<4x64xf32>
    %cst_182 = arith.constant dense<0x7F800000> : vector<4xf32>
    %584 = vector.multi_reduction <minimumf>, %583, %cst_182 [1] : vector<4x64xf32> to vector<4xf32>
    %585 = vector.shape_cast %584 : vector<4xf32> to vector<4x1xf32>
    %586 = vector.broadcast %585 : vector<4x1xf32> to vector<4x64xf32>
    %587 = arith.cmpf oeq, %13, %586 : vector<4x64xf32>
    %588 = arith.extui %587 : vector<4x64xi1> to vector<4x64xi32>
    %589 = arith.sitofp %588 : vector<4x64xi32> to vector<4x64xf32>
    %cst_183 = arith.constant dense<0.000000e+00> : vector<4x96xf32>
    %590 = tpu.matmul %589, %3, %cst_183 {dimension_numbers = #tpu.dot_dimension_numbers<[1], [0], [0], [1], [0, 0, 1, 1], [], []>} : vector<4x64xf32>, vector<64x96xf32>, vector<4x96xf32> -> vector<4x96xf32>
    %591 = vector.broadcast %8 : vector<1x96xf32> to vector<4x96xf32>
    %592 = arith.addf %590, %591 : vector<4x96xf32>
    %c0_184 = arith.constant 0 : index
    %c0_185 = arith.constant 0 : index
    %593 = vector.load %arg10[%c0_184, %c0_185] : memref<4x96xf32, #tpu.memory_space<vmem>>, vector<4x96xf32>
    tpu.vector_store %arg10[%c0_184, %c0_185], %592 {strides = array<i32>} : memref<4x96xf32, #tpu.memory_space<vmem>>, vector<4x96xf32>,
    %c0_186 = arith.constant 0 : index
    %c0_187 = arith.constant 0 : index
    %594 = vector.load %arg9[%c0_186, %c0_187] : memref<4x32xf32, #tpu.memory_space<vmem>>, vector<4x32xf32>
    tpu.vector_store %arg9[%c0_186, %c0_187], %561 {strides = array<i32>} : memref<4x32xf32, #tpu.memory_space<vmem>>, vector<4x32xf32>,
    %c6_i32 = arith.constant 6 : i32
    %c0_188 = arith.constant 0 : index
    %c0_189 = arith.constant 0 : index
    %595 = vector.load %arg9[%c0_188, %c0_189] : memref<4x32xf32, #tpu.memory_space<vmem>>, vector<4x32xf32>
    %c0_190 = arith.constant 0 : index
    %c0_191 = arith.constant 0 : index
    %596 = vector.load %arg8[%c0_190, %c0_191] : memref<4x32xf32, #tpu.memory_space<vmem>>, vector<4x32xf32>
    tpu.vector_store %arg8[%c0_190, %c0_191], %595 {strides = array<i32>} : memref<4x32xf32, #tpu.memory_space<vmem>>, vector<4x32xf32>,
    return
  }
}

</mosaic_0001>

<bundles_post_ra>
// kernel: decoder_forward.1
= control target key start
LH: loop header
LB: loop body
LE: loop exit
PB: predicated region body
PF: predicated region fallthrough
CT: control target
= control target key end

     0   :  { %14 = vsyncpa [#allocation5], 0  ;;  %vm64_vm0 = vcmask 257024   ;;  %s3318_s0 = inlined_call_operand.vmem [shape: f32[4,8,64], index: 0, kind: input, shape index: {}]   ;;  %s3319_s1 = inlined_call_operand.vmem [shape: f32[2,4,32], index: 1, kind: input, shape index: {}]   ;;  %s3320_s2 = inlined_call_operand.vmem [shape: f32[64,32], index: 2, kind: input, shape index: {}]   ;;  %s3321_s3 = inlined_call_operand.vmem [shape: f32[32,128], index: 3, kind: input, shape index: {}]   ;;  %s3322_s4 = inlined_call_operand.vmem [shape: f32[128,96], index: 4, kind: input, shape index: {}]   ;;  %s3323_s5 = inlined_call_operand.vmem [shape: f32[32,64], index: 5, kind: input, shape index: {}]   ;;  %s3324_s6 = inlined_call_operand.vmem [shape: f32[8,96], index: 6, kind: input, shape index: {}]   ;;  %s3325_s7 = inlined_call_operand.hbm [shape: f32[6,4,64], index: 7, kind: output, shape index: {0}]   ;;  %s3326_s8 = inlined_call_operand.hbm [shape: f32[4,32], index: 8, kind: output, shape index: {1}]  }
   0x1   :  { %v103_v0 = vld [vmem:[%s3320_s2 + $0x38] sm:$0xff]  ;;  %v102_v1 = vld [vmem:[%s3320_s2 + $0x30] sm:$0xff]  ;;  %v101_v4 = vld [vmem:[%s3320_s2 + $0x28] sm:$0xff] }
   0x2   :  { %v2482_v2 = vld [vmem:[%s3321_s3 + $0x18] sm:$0xff]  ;;  %125 = vmatpush.msra.mxu1 %v103_v0  ;;  %v2488_v3 = vld [vmem:[%s3321_s3 + $0x10] sm:$0xff]  ;;  %v2496_v5 = vld [vmem:[%s3321_s3 + $0x8] sm:$0xff] }
   0x3   :  { %163 = vmatpush.msra.mxu2 %v2482_v2  ;;  %v2083_v6 = vld [vmem:[%s3319_s1 + $0x4] sm:$0xf] }
   0x4   :  { %126 = vmatpush.msra.mxu1 %v102_v1  ;;  %v100_v7 = vld [vmem:[%s3320_s2 + $0x20] sm:$0xff]  ;;  %65 = vst.msk [vmem:[#allocation2] sm:$0xf] %vm64_vm0, %v2083_v6 }
   0x5   :  { %164 = vmatpush.msra.mxu2 %v2488_v3  ;;  %v2508_v8 = vld [vmem:[%s3321_s3] sm:$0xff] }
   0x6   :  { %127 = vmatpush.msra.mxu1 %v101_v4 }
   0x7   :  { %165 = vmatpush.msra.mxu2 %v2496_v5 }
   0x8   :  { %15 = vsyncpa [#allocation7], 0  ;;  %v99_v9 = vld [vmem:[%s3320_s2 + $0x18] sm:$0xff]  ;;  %128 = vmatpush.msra.mxu1 %v100_v7  ;;  %v98_v10 = vld [vmem:[%s3320_s2 + $0x10] sm:$0xff]  ;;  %vm147_vm1 = vcmask 261120   ;;  %s2421_s30 = smov 96  }
   0x9   :  { %166 = vmatpush.msra.mxu2 %v2508_v8  ;;  %v2522_v11 = vld [vmem:[%s3324_s6] sm:$0xff]  ;;  %v97_v13 = vld [vmem:[%s3320_s2 + $0x8] sm:$0xff]  ;;  %vm70_vm2 = vcmask 523264   ;;  %v2553_v18 = vld [vmem:[%s3318_s0 + $0x10] sm:$0xff]  ;;  %s2422_s17 = smov 32   ;;  %vm317_vm4 = vcmask 1041409  }
   0xa   :  { %129 = vmatpush.msra.mxu1 %v99_v9  ;;  %v369_v12 = vperm.slane %v2522_v11, 2  ;;  %v96_v15 = vld [vmem:[%s3320_s2] sm:$0xff]  ;;  %v2546_v17 = vld [vmem:[%s3318_s0 + $0x8] sm:$0xff]  ;;  %v2560_v19 = vld [vmem:[%s3318_s0 + $0x18] sm:$0xff]  ;;  %v104_v20 = vperm.slane %v2522_v11, 0  ;;  %v2572_v30 = vperm.slane %v2522_v11, 4 }
   0xb   :  { %v2528_v14 = vld [vmem:[#allocation2] sm:$0xf]  ;;  %vm319_vm5 = vcmask 1042434   ;;  %vm321_vm6 = vcmask 1043459   ;;  %vm94_vm7 = vcmask 781312   ;;  %s2424_s26 = smov 64  }
   0xc   :  { %130 = vmatpush.msra.mxu1 %v98_v10  ;;  %371 = vrot.lane.b32.xlu2 %v369_v12, %s2421_s30  ;;  %v2539_v16 = vld [vmem:[%s3318_s0] sm:$0xff]  ;;  %vm423_vm12 = vcmask 519168   ;;  %s2069_s29 = sshll.u32 %s3326_s8, 4  ;;  %s2426_s9 = smov [#allocation4]   ;;  %s2070_s29 = int_to_ptr.hbm [resolvable:$true] %s2069_s29 }
   0xd   :  { %2090 = vmatmul.msk.f32.vlgmr.msra.gmra.mxu2 %vm147_vm1, %v2528_v14  ;;  %s2053_s6 = sshll.u32 %s2426_s9, 4  ;;  %s2055_s8 = sshll.u32 %s3325_s7, 4  ;;  %s2054_s6 = int_to_ptr.vmem [resolvable:$true] %s2053_s6  ;;  %s2056_s8 = int_to_ptr.hbm [resolvable:$true] %s2055_s8 }
   0xe   :  { %131 = vmatpush.msra.mxu1 %v97_v13  ;;  %s2427_s12 = smov 4  }
  0x10   :  { %132 = vmatpush.msra.mxu1 %v96_v15 }
  0x11   :  { %2086 = vmatmul.msk.f32.vlgmr.msra.gmra.mxu1 %vm70_vm2, %v2539_v16 }
  0x19   :  { %2087 = vmatmul.msk.f32.gmra.mxu1 %vm70_vm2, %v2546_v17 }
  0x21   :  { %2088 = vmatmul.msk.f32.gmra.mxu1 %vm70_vm2, %v2553_v18 }
  0x29   :  { %2089 = vmatmul.msk.f32.gmra.mxu1 %vm70_vm2, %v2560_v19 }
  0x66   :  { %v2589_v54 = vpop.permute.xlu2 %371 }
  0x8e   :  { %v134_v21 = vpop.f32.mrf.mxu1 }
  0x8f   :  { %v2565_v22 = vadd.f32 %v134_v21, %v104_v20  ;;  %v2601_v21 = vld [vmem:[%s3322_s4 + $0x30] sm:$0xff] }
  0x90   :  { %v168_v23 = vpop.f32.mrf.mxu2 }
  0x91   :  { %v172_v24 = vrot.slane %v168_v23, 1  ;;  %346 = vrot.lane.b32.xlu2 %v168_v23, %s2421_s30  ;;  %v175_v25 = vperm.slane %v168_v23, 0  ;;  %v173_v32 = vrot.slane %v168_v23, 2  ;;  %v174_v42 = vrot.slane %v168_v23, 3 }
  0x92   :  { %v374_v55 = vadd.f32 %v2589_v54, %v168_v23  ;;  %v59_v23 = vlaneseq }
  0x93   :  { %v183_v26 = vadd.f32 %v175_v25, %v2565_v22  ;;  %v176_v27 = vperm.slane %v172_v24, 0  ;;  %v177_v35 = vperm.slane %v173_v32, 0  ;;  %v178_v46 = vperm.slane %v174_v42, 0  ;;  %v2643_v42 = vld [vmem:[%s3322_s4 + $0x60] sm:$0xff] }
  0x95   :  { %2133 = vtanh.f32 %v183_v26  ;;  %v2607_v26 = vld [vmem:[%s3322_s4 + $0x78] sm:$0xff] }
  0x96   :  { %v137_v28 = vpop.f32.mrf.mxu1  ;;  %333 = vmatpush.msra.mxu3 %v2607_v26  ;;  %969 = vmatpush.msrb.mxu1 %v2607_v26 }
  0x97   :  { %v2569_v29 = vadd.f32 %v137_v28, %v104_v20  ;;  %v2617_v28 = vld [vmem:[%s3322_s4 + $0x28] sm:$0xff] }
  0x99   :  { %v184_v31 = vadd.f32 %v176_v27, %v2569_v29  ;;  %v2612_v27 = vld [vmem:[%s3322_s4 + $0x70] sm:$0xff] }
  0x9a   :  { %334 = vmatpush.msra.mxu3 %v2612_v27  ;;  %970 = vmatpush.msrb.mxu1 %v2612_v27 }
  0x9b   :  { %v2134_v33 = vpop.eup %2133  ;;  %2135 = vtanh.f32 %v184_v31  ;;  %v60_v31 = vand.u32 127, %v59_v23 }
  0x9c   :  { %v192_v34 = vmul.f32 %v2134_v33, %v2572_v30 }
  0x9e   :  { %v196_v36 = vsel %vm147_vm1, %v192_v34, 0.0  ;;  %v140_v37 = vpop.f32.mrf.mxu1  ;;  %v2625_v34 = vld [vmem:[%s3322_s4 + $0x68] sm:$0xff] }
  0x9f   :  { %197 = vadd.xlane.f32.xlu0 %v196_v36  ;;  %v2577_v38 = vadd.f32 %v140_v37, %v104_v20  ;;  %v2632_v36 = vld [vmem:[%s3322_s4 + $0x20] sm:$0xff]  ;;  %335 = vmatpush.msra.mxu3 %v2625_v34 }
  0xa0   :  { %971 = vmatpush.msrb.mxu1 %v2625_v34 }
  0xa1   :  { %v2136_v39 = vpop.eup %2135  ;;  %v185_v40 = vadd.f32 %v177_v35, %v2577_v38  ;;  %336 = vmatpush.msra.mxu3 %v2643_v42 }
  0xa2   :  { %v193_v41 = vmul.f32 %v2136_v39, %v2572_v30  ;;  %972 = vmatpush.msrb.mxu1 %v2643_v42 }
  0xa3   :  { %2137 = vtanh.f32 %v185_v40 }
  0xa4   :  { %v199_v43 = vsel %vm147_vm1, %v193_v41, 0.0 }
  0xa6   :  { %v143_v44 = vpop.f32.mrf.mxu1 }
  0xa7   :  { %200 = vadd.xlane.f32.xlu0 %v199_v43  ;;  %v2582_v45 = vadd.f32 %v143_v44, %v104_v20  ;;  %v2596_v20 = vld [vmem:[%s3322_s4 + $0x38] sm:$0xff] }
  0xa8   :  { %82 = vmatpush.msra.mxu0 %v2596_v20  ;;  %v2649_v44 = vld [vmem:[%s3322_s4 + $0x18] sm:$0xff] }
  0xa9   :  { %v2138_v47 = vpop.eup %2137  ;;  %v186_v48 = vadd.f32 %v178_v46, %v2582_v45  ;;  %v2652_v46 = vcvt.s32.f32 %v60_v31 }
  0xaa   :  { %v194_v49 = vmul.f32 %v2138_v47, %v2572_v30  ;;  %83 = vmatpush.msra.mxu0 %v2601_v21 }
  0xab   :  { %2139 = vtanh.f32 %v186_v48  ;;  %vm66_vm3 = vcmp.eq.f32.partialorder %v2652_v46, 1.0 }
  0xac   :  { %v202_v50 = vsel %vm147_vm1, %v194_v49, 0.0  ;;  %84 = vmatpush.msra.mxu0 %v2617_v28  ;;  %v2660_v49 = vld [vmem:[%s3322_s4 + $0x58] sm:$0xff] }
  0xad   :  { %203 = vadd.xlane.f32.xlu1 %v202_v50  ;;  %337 = vmatpush.msra.mxu3 %v2660_v49 }
  0xae   :  { %85 = vmatpush.msra.mxu0 %v2632_v36  ;;  %973 = vmatpush.msrb.mxu1 %v2660_v49 }
  0xb0   :  { %86 = vmatpush.msra.mxu0 %v2649_v44 }
  0xb1   :  { %v2140_v51 = vpop.eup %2139 }
  0xb2   :  { %v195_v52 = vmul.f32 %v2140_v51, %v2572_v30  ;;  %v2666_v51 = vld [vmem:[%s3322_s4 + $0x10] sm:$0xff] }
  0xb3   :  { %87 = vmatpush.msra.mxu0 %v2666_v51 }
  0xb4   :  { %v205_v53 = vsel %vm147_vm1, %v195_v52, 0.0 }
  0xb5   :  { %206 = vadd.xlane.f32.xlu1 %v205_v53 }
  0xbb   :  { %376 = vrot.lane.b32.xlu0 %v374_v55, %s2422_s17  ;;  %v2674_v55 = vld [vmem:[%s3322_s4 + $0x50] sm:$0xff] }
  0xbc   :  { %338 = vmatpush.msra.mxu3 %v2674_v55  ;;  %974 = vmatpush.msrb.mxu1 %v2674_v55 }
 0x112   :  { %v198_v56 = vpop.xlane.xlu0 %197 }
 0x113   :  { %v208_v57 = vrot.slane %v198_v56, 4 }
 0x115   :  { %v209_v58 = vmax.f32 %v198_v56, %v208_v57  ;;  %v2679_v57 = vld [vmem:[%s3322_s4 + $0x8] sm:$0xff] }
 0x116   :  { %88 = vmatpush.msra.mxu0 %v2679_v57 }
 0x117   :  { %v210_v59 = vrot.slane %v209_v58, 2 }
 0x119   :  { %v211_v60 = vmax.f32 %v209_v58, %v210_v59 }
 0x11a   :  { %v201_v61 = vpop.xlane.xlu0 %200 }
 0x11b   :  { %v212_v62 = vrot.slane %v211_v60, 1  ;;  %v214_v63 = vrot.slane %v201_v61, 4 }
 0x11d   :  { %v213_v0 = vmax.f32 %v211_v60, %v212_v62  ;;  %v215_v1 = vmax.f32 %v201_v61, %v214_v63  ;;  %v2688_v60 = vld [vmem:[%s3322_s4 + $0x48] sm:$0xff]  ;;  %v2693_v62 = vld [vmem:[%s3322_s4] sm:$0xff] }
 0x11e   :  { %339 = vmatpush.msra.mxu3 %v2688_v60  ;;  %975 = vmatpush.msrb.mxu1 %v2688_v60 }
 0x11f   :  { %v232_v4 = vsub.f32 %v198_v56, %v213_v0  ;;  %v216_v6 = vrot.slane %v215_v1, 2  ;;  %89 = vmatpush.msra.mxu0 %v2693_v62 }
 0x120   :  { %v204_v7 = vpop.xlane.xlu1 %203 }
 0x121   :  { %v236_v9 = vmul.f32 1.442695, %v232_v4  ;;  %v217_v10 = vmax.f32 %v215_v1, %v216_v6  ;;  %v220_v12 = vrot.slane %v204_v7, 4  ;;  %v2423_v1 = vmov 0.0   ;;  %v2704_v6 = vld [vmem:[%s3322_s4 + $0x40] sm:$0xff]  ;;  %457 = vmatpush.msrb.mxu0 %v2596_v20 }
 0x122   :  { %v2084_v4 = vsel %vm66_vm3, 1.0, %v2423_v1  ;;  %340 = vmatpush.msra.mxu3 %v2704_v6  ;;  %976 = vmatpush.msrb.mxu1 %v2704_v6 }
 0x123   :  { %2141 = vpow2.f32 %v236_v9  ;;  %v218_v13 = vrot.slane %v217_v10, 1  ;;  %v221_v15 = vmax.f32 %v204_v7, %v220_v12  ;;  %2085 = vmatmul.msk.f32.vlgmr.msra.gmra.mxu0 %vm70_vm2, %v2084_v4 }
 0x124   :  { %654 = vmatpush.msrb.mxu3 %v2607_v26  ;;  %458 = vmatpush.msrb.mxu0 %v2601_v21 }
 0x125   :  { %v219_v24 = vmax.f32 %v217_v10, %v218_v13  ;;  %v222_v25 = vrot.slane %v221_v15, 2 }
 0x126   :  { %655 = vmatpush.msrb.mxu3 %v2612_v27  ;;  %459 = vmatpush.msrb.mxu0 %v2617_v28 }
 0x127   :  { %v233_v32 = vsub.f32 %v201_v61, %v219_v24  ;;  %v223_v33 = vmax.f32 %v221_v15, %v222_v25 }
 0x128   :  { %v2627_v35 = vpop.xlane.xlu1 %206  ;;  %656 = vmatpush.msrb.mxu3 %v2625_v34  ;;  %460 = vmatpush.msrb.mxu0 %v2632_v36 }
 0x129   :  { %v2636_v37 = vpop.eup %2141  ;;  %v238_v39 = vmul.f32 1.442695, %v233_v32  ;;  %v224_v40 = vrot.slane %v223_v33, 1  ;;  %v226_v41 = vrot.slane %v2627_v35, 4 }
 0x12a   :  { %v244_v43 = vrot.slane %v2636_v37, 4  ;;  %657 = vmatpush.msrb.mxu3 %v2643_v42  ;;  %461 = vmatpush.msrb.mxu0 %v2649_v44 }
 0x12b   :  { %2143 = vpow2.f32 %v238_v39  ;;  %v225_v47 = vmax.f32 %v223_v33, %v224_v40  ;;  %v227_v48 = vmax.f32 %v2627_v35, %v226_v41 }
 0x12c   :  { %v245_v50 = vadd.f32 %v2636_v37, %v244_v43  ;;  %658 = vmatpush.msrb.mxu3 %v2660_v49  ;;  %462 = vmatpush.msrb.mxu0 %v2666_v51 }
 0x12d   :  { %v234_v52 = vsub.f32 %v204_v7, %v225_v47  ;;  %v228_v53 = vrot.slane %v227_v48, 2 }
 0x12e   :  { %v246_v56 = vrot.slane %v245_v50, 2  ;;  %659 = vmatpush.msrb.mxu3 %v2674_v55  ;;  %463 = vmatpush.msrb.mxu0 %v2679_v57 }
 0x12f   :  { %v240_v58 = vmul.f32 1.442695, %v234_v52  ;;  %v229_v59 = vmax.f32 %v227_v48, %v228_v53 }
 0x130   :  { %v247_v61 = vadd.f32 %v246_v56, %v245_v50  ;;  %660 = vmatpush.msrb.mxu3 %v2688_v60  ;;  %464 = vmatpush.msrb.mxu0 %v2693_v62 }
 0x131   :  { %v2697_v63 = vpop.eup %2143  ;;  %2145 = vpow2.f32 %v240_v58  ;;  %v230_v0 = vrot.slane %v229_v59, 1 }
 0x132   :  { %v248_v7 = vrot.slane %v247_v61, 1  ;;  %v250_v9 = vrot.slane %v2697_v63, 4  ;;  %661 = vmatpush.msrb.mxu3 %v2704_v6  ;;  %772 = vmatpush.msra.mxu0 %v2596_v20 }
 0x133   :  { %v231_v10 = vmax.f32 %v229_v59, %v230_v0 }
 0x134   :  { %v251_v12 = vadd.f32 %v2697_v63, %v250_v9  ;;  %v249_v13 = vadd.f32 %v248_v7, %v247_v61  ;;  %773 = vmatpush.msra.mxu0 %v2601_v21 }
 0x135   :  { %v235_v15 = vsub.f32 %v2627_v35, %v231_v10 }
 0x136   :  { %v252_v23 = vrot.slane %v251_v12, 2  ;;  %2147 = vrcp.f32 %v249_v13  ;;  %774 = vmatpush.msra.mxu0 %v2617_v28 }
 0x137   :  { %v2146_v24 = vpop.eup %2145  ;;  %v242_v25 = vmul.f32 1.442695, %v235_v15 }
 0x138   :  { %v253_v31 = vadd.f32 %v252_v23, %v251_v12  ;;  %v256_v32 = vrot.slane %v2146_v24, 4  ;;  %775 = vmatpush.msra.mxu0 %v2632_v36 }
 0x139   :  { %2149 = vpow2.f32 %v242_v25 }
 0x13a   :  { %v254_v33 = vrot.slane %v253_v31, 1  ;;  %v257_v35 = vadd.f32 %v2146_v24, %v256_v32  ;;  %776 = vmatpush.msra.mxu0 %v2649_v44 }
 0x13c   :  { %v2148_v39 = vpop.eup %2147  ;;  %v258_v40 = vrot.slane %v257_v35, 2  ;;  %v255_v41 = vadd.f32 %v254_v33, %v253_v31  ;;  %777 = vmatpush.msra.mxu0 %v2666_v51 }
 0x13d   :  { %v272_v48 = vmul.f32 0.125, %v2148_v39 }
 0x13e   :  { %v259_v43 = vadd.f32 %v258_v40, %v257_v35  ;;  %2151 = vrcp.f32 %v255_v41  ;;  %778 = vmatpush.msra.mxu0 %v2679_v57 }
 0x13f   :  { %v2150_v47 = vpop.eup %2149  ;;  %v276_v58 = vmul.f32 %v2636_v37, %v272_v48 }
 0x140   :  { %v262_v50 = vrot.slane %v2150_v47, 4  ;;  %v260_v52 = vrot.slane %v259_v43, 1  ;;  %779 = vmatpush.msra.mxu0 %v2693_v62 }
 0x141   :  { %v280_v9 = vmul.f32 %v276_v58, %v2539_v16 }
 0x142   :  { %v263_v53 = vadd.f32 %v2150_v47, %v262_v50  ;;  %v261_v56 = vadd.f32 %v260_v52, %v259_v43 }
 0x143   :  { %v284_v23 = vsel %vm70_vm2, %v280_v9, 0.0 }
 0x144   :  { %v2152_v59 = vpop.eup %2151  ;;  %v264_v61 = vrot.slane %v263_v53, 2  ;;  %2153 = vrcp.f32 %v261_v56  ;;  %v285_v32 = vrot.slane %v284_v23, 4 }
 0x145   :  { %v273_v0 = vmul.f32 0.125, %v2152_v59 }
 0x146   :  { %v265_v4 = vadd.f32 %v264_v61, %v263_v53  ;;  %v286_v41 = vadd.f32 %v285_v32, %v284_v23 }
 0x147   :  { %v277_v7 = vmul.f32 %v2697_v63, %v273_v0 }
 0x148   :  { %v266_v10 = vrot.slane %v265_v4, 1 }
 0x149   :  { %v281_v37 = vmul.f32 %v277_v7, %v2546_v17 }
 0x14a   :  { %v2154_v12 = vpop.eup %2153  ;;  %v267_v13 = vadd.f32 %v266_v10, %v265_v4 }
 0x14b   :  { %v274_v15 = vmul.f32 0.125, %v2154_v12  ;;  %v291_v25 = vsel %vm70_vm2, %v281_v37, 0.0 }
 0x14c   :  { %2155 = vrcp.f32 %v267_v13  ;;  %v292_v31 = vrot.slane %v291_v25, 4 }
 0x14d   :  { %v278_v63 = vmul.f32 %v2146_v24, %v274_v15  ;;  %v287_v24 = vrot.slane %v286_v41, 2 }
 0x14e   :  { %v293_v35 = vadd.f32 %v292_v31, %v291_v25 }
 0x14f   :  { %v282_v33 = vmul.f32 %v278_v63, %v2553_v18  ;;  %v288_v4 = vadd.f32 %v287_v24, %v286_v41 }
 0x150   :  { %v294_v50 = vrot.slane %v293_v35, 2 }
 0x151   :  { %v298_v39 = vsel %vm70_vm2, %v282_v33, 0.0  ;;  %v289_v12 = vrot.slane %v288_v4, 1 }
 0x152   :  { %v2156_v40 = vpop.eup %2155  ;;  %v299_v43 = vrot.slane %v298_v39, 4  ;;  %v295_v59 = vadd.f32 %v294_v50, %v293_v35 }
 0x153   :  { %v275_v48 = vmul.f32 0.125, %v2156_v40 }
 0x154   :  { %v300_v52 = vadd.f32 %v299_v43, %v298_v39  ;;  %v296_v9 = vrot.slane %v295_v59, 1  ;;  %v2754_v39 = vperm.slane %v2522_v11, 1 }
 0x155   :  { %v279_v53 = vmul.f32 %v2150_v47, %v275_v48  ;;  %v290_v47 = vadd.f32 %v289_v12, %v288_v4 }
 0x156   :  { %v301_v56 = vrot.slane %v300_v52, 2  ;;  %v297_v15 = vadd.f32 %v296_v9, %v295_v59 }
 0x157   :  { %v283_v58 = vmul.f32 %v279_v53, %v2560_v19 }
 0x158   :  { %v302_v61 = vadd.f32 %v301_v56, %v300_v52  ;;  %v318_v32 = vsel %vm317_vm4, %v297_v15, %v290_v47  ;;  %v347_v52 = vpop.permute.xlu2 %346 }
 0x159   :  { %v305_v0 = vsel %vm70_vm2, %v283_v58, 0.0 }
 0x15a   :  { %v306_v7 = vrot.slane %v305_v0, 4  ;;  %v303_v37 = vrot.slane %v302_v61, 1 }
 0x15c   :  { %v307_v10 = vadd.f32 %v306_v7, %v305_v0  ;;  %v304_v25 = vadd.f32 %v303_v37, %v302_v61 }
 0x15e   :  { %v308_v13 = vrot.slane %v307_v10, 2  ;;  %v320_v33 = vsel %vm319_vm5, %v304_v25, %v318_v32  ;;  %v2770_v32 = vld [vmem:[%s3323_s5 + $0x10] sm:$0xff] }
 0x160   :  { %v309_v23 = vadd.f32 %v308_v13, %v307_v10  ;;  %v377_v13 = vpop.permute.xlu0 %376 }
 0x162   :  { %v310_v31 = vrot.slane %v309_v23, 1 }
 0x164   :  { %v311_v63 = vadd.f32 %v310_v31, %v309_v23 }
 0x166   :  { %v322_v35 = vsel %vm321_vm6, %v311_v63, %v320_v33  ;;  %v2765_v63 = vld [vmem:[%s3323_s5 + $0x18] sm:$0xff]  ;;  %v2777_v33 = vld [vmem:[%s3323_s5 + $0x8] sm:$0xff] }
 0x167   :  { %2091 = vmatmul.msk.f32.vlgmr.msra.gmra.mxu3 %vm70_vm2, %v322_v35  ;;  %415 = vmatpush.msrb.mxu2 %v2765_v63 }
 0x168   :  { %1045 = vmatpush.msra.mxu3 %v2765_v63  ;;  %1360 = vmatpush.msra.mxu1 %v2765_v63 }
 0x169   :  { %416 = vmatpush.msrb.mxu2 %v2770_v32 }
 0x16a   :  { %1046 = vmatpush.msra.mxu3 %v2770_v32  ;;  %1361 = vmatpush.msra.mxu1 %v2770_v32 }
 0x16b   :  { %417 = vmatpush.msrb.mxu2 %v2777_v33 }
 0x16c   :  { %1047 = vmatpush.msra.mxu3 %v2777_v33  ;;  %1362 = vmatpush.msra.mxu1 %v2777_v33 }
 0x1a0   :  { %v91_v40 = vpop.f32.mrf.mxu0 }
 0x1a1   :  { %v92_v41 = vadd.f32 %v91_v40, %v2754_v39 }
 0x1a3   :  { %95 = vst.msk [vmem:[#allocation3] sm:$0xf] %vm94_vm7, %v92_v41 }
 0x1aa   :  { %v312_v43 = vld [vmem:[#allocation3] sm:$0xf] }
 0x1ea   :  { %v342_v48 = vpop.f32.mrf.mxu3 }
 0x1eb   :  { %v345_v50 = vadd.f32 %v342_v48, %v312_v43 }
 0x1ed   :  { %v349_v53 = vadd.f32 %v347_v52, %v345_v50 }
 0x1ef   :  { %v2092_v24 = vmul.f32 -1.442695, %v349_v53 }
 0x1f1   :  { %2157 = vpow2.f32 %v2092_v24 }
 0x1f7   :  { %v2158_v56 = vpop.eup %2157 }
 0x1f8   :  { %v353_v58 = vadd.f32 1.0, %v2158_v56 }
 0x1fa   :  { %2159 = vrcp.f32 %v353_v58  ;;  %v365_v4 = vand.u32 2147483648, %v353_v58  ;;  %v363_v9 = vand.u32 2147483647, %v353_v58  ;;  %vm359_vm9 = vweird.f32 %v353_v58 }
 0x1fc   :  { %v366_v37 = vor.u32 1.1754944e-38, %v365_v4  ;;  %vm364_vm11 = vcmp.eq.f32.partialorder %v363_v9, 8.507059e+37 }
 0x200   :  { %v2160_v59 = vpop.eup %2159 }
 0x201   :  { %v355_v61 = vmul.f32 %v2160_v59, %v353_v58  ;;  %vm360_vm8 = vweird.f32 %v2160_v59 }
 0x202   :  { %vm361_vm10 = vmor %vm359_vm9, %vm360_vm8 }
 0x203   :  { %v356_v0 = vsub.f32 1.0, %v355_v61 }
 0x205   :  { %v357_v7 = vmul.f32 %v2160_v59, %v356_v0 }
 0x207   :  { %v358_v10 = vadd.f32 %v2160_v59, %v357_v7 }
 0x209   :  { %v362_v12 = vsel %vm361_vm10, %v2160_v59, %v358_v10 }
 0x20a   :  { %v367_v15 = vsel %vm364_vm11, %v366_v37, %v362_v12 }
 0x20b   :  { %v379_v23 = vmul.f32 %v377_v13, %v367_v15  ;;  %v386_v40 = vsub.f32 1.0, %v367_v15 }
 0x20d   :  { %381 = vrot.lane.b32.xlu1 %v379_v23, %s2424_s26 }
 0x27f   :  { %v382_v25 = vpop.permute.xlu1 %381 }
 0x280   :  { %v384_v47 = vadd.f32 %v382_v25, %v345_v50 }
 0x282   :  { %2161 = vtanh.f32 %v384_v47 }
 0x288   :  { %v2162_v31 = vpop.eup %2161 }
 0x289   :  { %388 = vrot.lane.b32.xlu2 %v2162_v31, %s2421_s30 }
 0x291   :  { %392 = vrot.lane.b32.xlu2 %v2528_v14, %s2422_s17  ;;  %v2785_v14 = vld [vmem:[%s3323_s5] sm:$0xff] }
 0x292   :  { %418 = vmatpush.msrb.mxu2 %v2785_v14  ;;  %1048 = vmatpush.msra.mxu3 %v2785_v14 }
 0x293   :  { %1363 = vmatpush.msra.mxu1 %v2785_v14 }
 0x294   :  { %488 = vmatpush.msra.mxu2 %v2482_v2 }
 0x296   :  { %489 = vmatpush.msra.mxu2 %v2488_v3 }
 0x298   :  { %490 = vmatpush.msra.mxu2 %v2496_v5 }
 0x29a   :  { %491 = vmatpush.msra.mxu2 %v2508_v8 }
 0x2e3   :  { %v389_v35 = vpop.permute.xlu2 %388 }
 0x2e4   :  { %v391_v43 = vmul.f32 %v389_v35, %v386_v40  ;;  %v2820_v35 = vperm.slane %v2522_v11, 3 }
 0x2eb   :  { %v393_v41 = vpop.permute.xlu2 %392 }
 0x2ec   :  { %v395_v48 = vmul.f32 %v393_v41, %v367_v15 }
 0x2ee   :  { %v396_v50 = vadd.f32 %v395_v48, %v391_v43 }
 0x2f0   :  { %399 = vrot.lane.b32.xlu2 %v396_v50, %s2421_s30 }
 0x34a   :  { %v400_v52 = vpop.permute.xlu2 %399 }
 0x34b   :  { %471 = vst.msk [vmem:[#allocation2] sm:$0xf] %vm64_vm0, %v400_v52  ;;  %2093 = vmatmul.msk.f32.vlgmr.msrb.gmra.mxu2 %vm147_vm1, %v400_v52 }
 0x34c   :  { %730 = vmatpush.msrb.mxu2 %v2765_v63 }
 0x34e   :  { %731 = vmatpush.msrb.mxu2 %v2770_v32 }
 0x350   :  { %732 = vmatpush.msrb.mxu2 %v2777_v33 }
 0x352   :  { %v472_v53 = vld [vmem:[#allocation2] sm:$0xf]  ;;  %733 = vmatpush.msrb.mxu2 %v2785_v14 }
 0x353   :  { %2096 = vmatmul.msk.f32.vlgmr.msra.gmra.mxu2 %vm147_vm1, %v472_v53 }
 0x354   :  { %803 = vmatpush.msra.mxu2 %v2482_v2 }
 0x356   :  { %804 = vmatpush.msra.mxu2 %v2488_v3 }
 0x358   :  { %805 = vmatpush.msra.mxu2 %v2496_v5 }
 0x35a   :  { %806 = vmatpush.msra.mxu2 %v2508_v8 }
 0x3ce   :  { %v420_v24 = vpop.f32.mrf.mxu2 }
 0x3cf   :  { %v2825_v43 = vadd.f32 %v420_v24, %v2820_v35 }
 0x3d1   :  { %v424_v50 = vsel %vm423_vm12, %v2825_v43, -inf }
 0x3d6   :  { %v493_v56 = vpop.f32.mrf.mxu2 }
 0x3d7   :  { %v497_v58 = vrot.slane %v493_v56, 1  ;;  %v498_v59 = vrot.slane %v493_v56, 2  ;;  %v499_v61 = vrot.slane %v493_v56, 3  ;;  %v500_v0 = vperm.slane %v493_v56, 0 }
 0x3d8   :  { %v690_v11 = vadd.f32 %v493_v56, %v2589_v54 }
 0x3d9   :  { %v508_v4 = vadd.f32 %v500_v0, %v2565_v22  ;;  %v502_v7 = vperm.slane %v498_v59, 0  ;;  %v501_v9 = vperm.slane %v497_v58, 0  ;;  %v503_v10 = vperm.slane %v499_v61, 0 }
 0x3db   :  { %2163 = vtanh.f32 %v508_v4  ;;  %v510_v2 = vadd.f32 %v502_v7, %v2577_v38  ;;  %v509_v3 = vadd.f32 %v501_v9, %v2569_v29  ;;  %v511_v5 = vadd.f32 %v503_v10, %v2582_v45 }
 0x3dd   :  { %2165 = vtanh.f32 %v510_v2 }
 0x3de   :  { %2167 = vtanh.f32 %v509_v3 }
 0x3df   :  { %2169 = vtanh.f32 %v511_v5 }
 0x3e1   :  { %v2164_v8 = vpop.eup %2163 }
 0x3e2   :  { %v516_v37 = vmul.f32 %v2164_v8, %v2572_v30 }
 0x3e3   :  { %v2166_v12 = vpop.eup %2165 }
 0x3e4   :  { %v2168_v13 = vpop.eup %2167  ;;  %v520_v15 = vsel %vm147_vm1, %v516_v37, 0.0  ;;  %v518_v23 = vmul.f32 %v2166_v12, %v2572_v30 }
 0x3e5   :  { %v2170_v25 = vpop.eup %2169  ;;  %521 = vadd.xlane.f32.xlu0 %v520_v15  ;;  %v517_v47 = vmul.f32 %v2168_v13, %v2572_v30 }
 0x3e6   :  { %v526_v31 = vsel %vm147_vm1, %v518_v23, 0.0  ;;  %v519_v41 = vmul.f32 %v2170_v25, %v2572_v30 }
 0x3e7   :  { %527 = vadd.xlane.f32.xlu1 %v526_v31  ;;  %v523_v40 = vsel %vm147_vm1, %v517_v47, 0.0 }
 0x3e8   :  { %524 = vadd.xlane.f32.xlu2 %v523_v40  ;;  %v529_v48 = vsel %vm147_vm1, %v519_v41, 0.0 }
 0x3ed   :  { %530 = vadd.xlane.f32.xlu0 %v529_v48 }
 0x3f0   :  { %425 = vmax.xlane.f32.xlu2 %v424_v50 }
 0x401   :  { %667 = vrot.lane.b32.xlu0 %v493_v56, %s2421_s30 }
 0x408   :  { %692 = vrot.lane.b32.xlu2 %v690_v11, %s2422_s17 }
 0x410   :  { %708 = vrot.lane.b32.xlu2 %v472_v53, %s2422_s17 }
 0x458   :  { %v522_v52 = vpop.xlane.xlu0 %521 }
 0x459   :  { %v532_v58 = vrot.slane %v522_v52, 4 }
 0x45a   :  { %v528_v24 = vpop.xlane.xlu1 %527 }
 0x45b   :  { %v533_v59 = vmax.f32 %v522_v52, %v532_v58  ;;  %v544_v61 = vrot.slane %v528_v24, 4  ;;  %v525_v0 = vpop.xlane.xlu2 %524 }
 0x45c   :  { %v538_v4 = vrot.slane %v525_v0, 4 }
 0x45d   :  { %v534_v7 = vrot.slane %v533_v59, 2  ;;  %v545_v9 = vmax.f32 %v528_v24, %v544_v61 }
 0x45e   :  { %v539_v10 = vmax.f32 %v525_v0, %v538_v4 }
 0x45f   :  { %v535_v2 = vmax.f32 %v533_v59, %v534_v7  ;;  %v546_v3 = vrot.slane %v545_v9, 2 }
 0x460   :  { %v540_v5 = vrot.slane %v539_v10, 2  ;;  %v531_v8 = vpop.xlane.xlu0 %530 }
 0x461   :  { %v536_v37 = vrot.slane %v535_v2, 1  ;;  %v547_v56 = vmax.f32 %v545_v9, %v546_v3  ;;  %v550_v12 = vrot.slane %v531_v8, 4 }
 0x462   :  { %v541_v13 = vmax.f32 %v539_v10, %v540_v5 }
 0x463   :  { %v537_v15 = vmax.f32 %v535_v2, %v536_v37  ;;  %v548_v53 = vrot.slane %v547_v56, 1  ;;  %v551_v23 = vmax.f32 %v531_v8, %v550_v12  ;;  %v2834_v25 = vpop.xlane.xlu2 %425 }
 0x464   :  { %v542_v47 = vrot.slane %v541_v13, 1  ;;  %vm438_vm13 = vcmp.eq.f32.partialorder %v2825_v43, %v2834_v25 }
 0x465   :  { %v556_v31 = vsub.f32 %v522_v52, %v537_v15  ;;  %v549_v40 = vmax.f32 %v547_v56, %v548_v53  ;;  %v552_v41 = vrot.slane %v551_v23, 2  ;;  %v439_v48 = vsel %vm438_vm13, %v2652_v46, 64.0 }
 0x466   :  { %v543_v50 = vmax.f32 %v541_v13, %v542_v47  ;;  %v440_v11 = vsel %vm423_vm12, %v439_v48, inf }
 0x467   :  { %v560_v58 = vmul.f32 1.442695, %v556_v31  ;;  %v558_v59 = vsub.f32 %v528_v24, %v549_v40  ;;  %v553_v61 = vmax.f32 %v551_v23, %v552_v41  ;;  %441 = vmin.xlane.f32.xlu1 %v440_v11 }
 0x468   :  { %v557_v4 = vsub.f32 %v525_v0, %v543_v50 }
 0x469   :  { %2171 = vpow2.f32 %v560_v58  ;;  %v564_v7 = vmul.f32 1.442695, %v558_v59  ;;  %v554_v9 = vrot.slane %v553_v61, 1 }
 0x46a   :  { %v562_v10 = vmul.f32 1.442695, %v557_v4 }
 0x46b   :  { %2173 = vpow2.f32 %v564_v7  ;;  %v555_v2 = vmax.f32 %v553_v61, %v554_v9 }
 0x46c   :  { %2175 = vpow2.f32 %v562_v10 }
 0x46d   :  { %v559_v52 = vsub.f32 %v531_v8, %v555_v2 }
 0x46f   :  { %v2172_v3 = vpop.eup %2171  ;;  %v566_v5 = vmul.f32 1.442695, %v559_v52 }
 0x470   :  { %v568_v37 = vrot.slane %v2172_v3, 4 }
 0x471   :  { %v2174_v56 = vpop.eup %2173  ;;  %2177 = vpow2.f32 %v566_v5 }
 0x472   :  { %v2176_v12 = vpop.eup %2175  ;;  %v569_v13 = vadd.f32 %v2172_v3, %v568_v37  ;;  %v580_v15 = vrot.slane %v2174_v56, 4 }
 0x473   :  { %v574_v24 = vrot.slane %v2176_v12, 4 }
 0x474   :  { %v570_v53 = vrot.slane %v569_v13, 2  ;;  %v581_v23 = vadd.f32 %v2174_v56, %v580_v15 }
 0x475   :  { %v575_v0 = vadd.f32 %v2176_v12, %v574_v24 }
 0x476   :  { %v571_v47 = vadd.f32 %v570_v53, %v569_v13  ;;  %v582_v31 = vrot.slane %v581_v23, 2 }
 0x477   :  { %v2178_v40 = vpop.eup %2177  ;;  %v576_v41 = vrot.slane %v575_v0, 2 }
 0x478   :  { %v572_v48 = vrot.slane %v571_v47, 1  ;;  %v583_v50 = vadd.f32 %v582_v31, %v581_v23  ;;  %v586_v11 = vrot.slane %v2178_v40, 4 }
 0x479   :  { %v577_v8 = vadd.f32 %v576_v41, %v575_v0 }
 0x47a   :  { %v573_v58 = vadd.f32 %v572_v48, %v571_v47  ;;  %v584_v59 = vrot.slane %v583_v50, 1  ;;  %v587_v61 = vadd.f32 %v2178_v40, %v586_v11 }
 0x47b   :  { %v578_v4 = vrot.slane %v577_v8, 1 }
 0x47c   :  { %2179 = vrcp.f32 %v573_v58  ;;  %v588_v7 = vrot.slane %v587_v61, 2  ;;  %v585_v9 = vadd.f32 %v584_v59, %v583_v50 }
 0x47d   :  { %v579_v10 = vadd.f32 %v578_v4, %v577_v8 }
 0x47e   :  { %v589_v2 = vadd.f32 %v588_v7, %v587_v61  ;;  %2181 = vrcp.f32 %v585_v9 }
 0x47f   :  { %2183 = vrcp.f32 %v579_v10 }
 0x480   :  { %v590_v52 = vrot.slane %v589_v2, 1 }
 0x482   :  { %v2180_v5 = vpop.eup %2179  ;;  %v591_v37 = vadd.f32 %v590_v52, %v589_v2 }
 0x483   :  { %v596_v13 = vmul.f32 0.125, %v2180_v5 }
 0x484   :  { %v2182_v15 = vpop.eup %2181  ;;  %2185 = vrcp.f32 %v591_v37 }
 0x485   :  { %v2184_v24 = vpop.eup %2183  ;;  %v600_v53 = vmul.f32 %v2172_v3, %v596_v13  ;;  %v598_v23 = vmul.f32 0.125, %v2182_v15 }
 0x486   :  { %v597_v0 = vmul.f32 0.125, %v2184_v24 }
 0x487   :  { %v602_v47 = vmul.f32 %v2174_v56, %v598_v23  ;;  %v604_v31 = vmul.f32 %v600_v53, %v2539_v16 }
 0x488   :  { %v601_v41 = vmul.f32 %v2176_v12, %v597_v0 }
 0x489   :  { %v606_v48 = vmul.f32 %v602_v47, %v2553_v18  ;;  %v608_v50 = vsel %vm70_vm2, %v604_v31, 0.0 }
 0x48a   :  { %v2186_v11 = vpop.eup %2185  ;;  %v605_v8 = vmul.f32 %v601_v41, %v2546_v17  ;;  %v609_v58 = vrot.slane %v608_v50, 4 }
 0x48b   :  { %v599_v59 = vmul.f32 0.125, %v2186_v11  ;;  %v622_v61 = vsel %vm70_vm2, %v606_v48, 0.0 }
 0x48c   :  { %v610_v4 = vadd.f32 %v609_v58, %v608_v50  ;;  %v615_v3 = vsel %vm70_vm2, %v605_v8, 0.0  ;;  %v623_v7 = vrot.slane %v622_v61, 4 }
 0x48d   :  { %v603_v9 = vmul.f32 %v2178_v40, %v599_v59  ;;  %v616_v56 = vrot.slane %v615_v3, 4  ;;  %v2855_v59 = vld [vmem:[%s3321_s3 + $0x18] sm:$0xff] }
 0x48e   :  { %v611_v10 = vrot.slane %v610_v4, 2  ;;  %v624_v16 = vadd.f32 %v623_v7, %v622_v61  ;;  %v2861_v61 = vld [vmem:[%s3321_s3 + $0x10] sm:$0xff] }
 0x48f   :  { %v607_v12 = vmul.f32 %v603_v9, %v2560_v19  ;;  %v617_v18 = vadd.f32 %v616_v56, %v615_v3  ;;  %v2873_v3 = vld [vmem:[%s3321_s3] sm:$0xff] }
 0x490   :  { %v612_v2 = vadd.f32 %v611_v10, %v610_v4  ;;  %v625_v52 = vrot.slane %v624_v16, 2  ;;  %v2867_v4 = vld [vmem:[%s3321_s3 + $0x8] sm:$0xff] }
 0x491   :  { %v618_v5 = vrot.slane %v617_v18, 2  ;;  %v629_v17 = vsel %vm70_vm2, %v607_v12, 0.0 }
 0x492   :  { %v626_v37 = vadd.f32 %v625_v52, %v624_v16  ;;  %v630_v13 = vrot.slane %v629_v17, 4  ;;  %v613_v24 = vrot.slane %v612_v2, 1 }
 0x493   :  { %v619_v15 = vadd.f32 %v618_v5, %v617_v18 }
 0x494   :  { %v631_v53 = vadd.f32 %v630_v13, %v629_v17  ;;  %v627_v0 = vrot.slane %v626_v37, 1  ;;  %v614_v31 = vadd.f32 %v613_v24, %v612_v2  ;;  %v668_v2 = vpop.permute.xlu0 %667 }
 0x495   :  { %v620_v23 = vrot.slane %v619_v15, 1 }
 0x496   :  { %v632_v47 = vrot.slane %v631_v53, 2  ;;  %v628_v48 = vadd.f32 %v627_v0, %v626_v37 }
 0x497   :  { %v621_v40 = vadd.f32 %v620_v23, %v619_v15 }
 0x498   :  { %v633_v41 = vadd.f32 %v632_v47, %v631_v53 }
 0x499   :  { %v641_v19 = vsel %vm317_vm4, %v621_v40, %v614_v31 }
 0x49a   :  { %v634_v50 = vrot.slane %v633_v41, 1  ;;  %v642_v8 = vsel %vm319_vm5, %v628_v48, %v641_v19 }
 0x49c   :  { %v635_v11 = vadd.f32 %v634_v50, %v633_v41  ;;  %v693_v41 = vpop.permute.xlu2 %692 }
 0x49e   :  { %v643_v58 = vsel %vm321_vm6, %v635_v11, %v642_v8 }
 0x49f   :  { %2097 = vmatmul.msk.f32.vlgmr.msrb.gmra.mxu3 %vm70_vm2, %v643_v58 }
 0x4a0   :  { %1118 = vmatpush.msrb.mxu3 %v2855_v59 }
 0x4a2   :  { %1119 = vmatpush.msrb.mxu3 %v2861_v61 }
 0x4a4   :  { %1120 = vmatpush.msrb.mxu3 %v2867_v4 }
 0x4a6   :  { %1121 = vmatpush.msrb.mxu3 %v2873_v3 }
 0x4da   :  { %v442_v7 = vpop.xlane.xlu1 %441 }
 0x4db   :  { %vm443_vm14 = vcmp.eq.f32.partialorder %v2652_v46, %v442_v7  ;;  %v709_v7 = vpop.permute.xlu2 %708 }
 0x4dc   :  { %v2094_v9 = vsel %vm443_vm14, 1.0, %v2423_v1 }
 0x4dd   :  { %2095 = vmatmul.msk.f32.vlgmr.msrb.gmra.mxu0 %vm70_vm2, %v2094_v9 }
 0x4de   :  { %1284 = vmatpush.msrb.mxu0 %v2607_v26 }
 0x4e0   :  { %1285 = vmatpush.msrb.mxu0 %v2612_v27 }
 0x4e2   :  { %1286 = vmatpush.msrb.mxu0 %v2625_v34 }
 0x4e4   :  { %1287 = vmatpush.msrb.mxu0 %v2643_v42 }
 0x4e6   :  { %1288 = vmatpush.msrb.mxu0 %v2660_v49 }
 0x4e8   :  { %1289 = vmatpush.msrb.mxu0 %v2674_v55 }
 0x4ea   :  { %1290 = vmatpush.msrb.mxu0 %v2688_v60 }
 0x4ec   :  { %1291 = vmatpush.msrb.mxu0 %v2704_v6 }
 0x522   :  { %v663_v16 = vpop.f32.mrf.mxu3 }
 0x55a   :  { %v466_v56 = vpop.f32.mrf.mxu0 }
 0x55b   :  { %v467_v10 = vadd.f32 %v466_v56, %v2754_v39 }
 0x55d   :  { %469 = vst.msk [vmem:[#allocation3] sm:$0xf] %vm94_vm7, %v467_v10 }
 0x564   :  { %v636_v12 = vld [vmem:[#allocation3] sm:$0xf] }
 0x565   :  { %v666_v18 = vadd.f32 %v663_v16, %v636_v12 }
 0x567   :  { %v670_v52 = vadd.f32 %v668_v2, %v666_v18 }
 0x569   :  { %v2098_v5 = vmul.f32 -1.442695, %v670_v52 }
 0x56b   :  { %2187 = vpow2.f32 %v2098_v5 }
 0x571   :  { %v2188_v17 = vpop.eup %2187 }
 0x572   :  { %v674_v37 = vadd.f32 1.0, %v2188_v17 }
 0x574   :  { %2189 = vrcp.f32 %v674_v37  ;;  %v686_v53 = vand.u32 2147483648, %v674_v37  ;;  %v684_v0 = vand.u32 2147483647, %v674_v37  ;;  %vm680_vm3 = vweird.f32 %v674_v37 }
 0x576   :  { %v687_v40 = vor.u32 1.1754944e-38, %v686_v53  ;;  %vm685_vm9 = vcmp.eq.f32.partialorder %v684_v0, 8.507059e+37 }
 0x57a   :  { %v2190_v13 = vpop.eup %2189 }
 0x57b   :  { %v676_v15 = vmul.f32 %v2190_v13, %v674_v37  ;;  %vm681_vm15 = vweird.f32 %v2190_v13 }
 0x57c   :  { %vm682_vm8 = vmor %vm680_vm3, %vm681_vm15 }
 0x57d   :  { %v677_v24 = vsub.f32 1.0, %v676_v15 }
 0x57f   :  { %v678_v23 = vmul.f32 %v2190_v13, %v677_v24 }
 0x581   :  { %v679_v47 = vadd.f32 %v2190_v13, %v678_v23 }
 0x583   :  { %v683_v31 = vsel %vm682_vm8, %v2190_v13, %v679_v47 }
 0x584   :  { %v688_v48 = vsel %vm685_vm9, %v687_v40, %v683_v31 }
 0x585   :  { %v695_v50 = vmul.f32 %v693_v41, %v688_v48  ;;  %v702_v58 = vsub.f32 1.0, %v688_v48  ;;  %v711_v10 = vmul.f32 %v709_v7, %v688_v48 }
 0x587   :  { %697 = vrot.lane.b32.xlu1 %v695_v50, %s2424_s26 }
 0x5f9   :  { %v698_v19 = vpop.permute.xlu1 %697 }
 0x5fa   :  { %v700_v11 = vadd.f32 %v698_v19, %v666_v18 }
 0x5fc   :  { %2191 = vtanh.f32 %v700_v11 }
 0x602   :  { %v2192_v8 = vpop.eup %2191 }
 0x603   :  { %704 = vrot.lane.b32.xlu0 %v2192_v8, %s2421_s30 }
 0x675   :  { %v705_v9 = vpop.permute.xlu0 %704 }
 0x676   :  { %v707_v56 = vmul.f32 %v705_v9, %v702_v58 }
 0x678   :  { %v712_v16 = vadd.f32 %v711_v10, %v707_v56 }
 0x67a   :  { %714 = vrot.lane.b32.xlu0 %v712_v16, %s2421_s30 }
 0x6ec   :  { %v715_v12 = vpop.permute.xlu0 %714 }
 0x6ed   :  { %786 = vst.msk [vmem:[#allocation2] sm:$0xf] %vm64_vm0, %v715_v12  ;;  %2099 = vmatmul.msk.f32.vlgmr.msrb.gmra.mxu2 %vm147_vm1, %v715_v12 }
 0x6ee   :  { %1087 = vmatpush.msrb.mxu2 %v2596_v20 }
 0x6f0   :  { %1088 = vmatpush.msrb.mxu2 %v2601_v21 }
 0x6f2   :  { %1089 = vmatpush.msrb.mxu2 %v2617_v28 }
 0x6f4   :  { %v2897_v18 = vld [vmem:[#allocation2] sm:$0xf]  ;;  %1090 = vmatpush.msrb.mxu2 %v2632_v36 }
 0x6f5   :  { %2102 = vmatmul.msk.f32.vlgmr.msra.gmra.mxu2 %vm147_vm1, %v2897_v18 }
 0x6f6   :  { %1091 = vmatpush.msrb.mxu2 %v2649_v44 }
 0x6f8   :  { %1092 = vmatpush.msrb.mxu2 %v2666_v51 }
 0x6fa   :  { %1093 = vmatpush.msrb.mxu2 %v2679_v57 }
 0x6fc   :  { %1094 = vmatpush.msrb.mxu2 %v2693_v62 }
 0x6fe   :  { %1599 = vmatpush.msra.mxu2 %v2607_v26 }
 0x700   :  { %1600 = vmatpush.msra.mxu2 %v2612_v27 }
 0x702   :  { %1601 = vmatpush.msra.mxu2 %v2625_v34 }
 0x704   :  { %1602 = vmatpush.msra.mxu2 %v2643_v42 }
 0x706   :  { %1603 = vmatpush.msra.mxu2 %v2660_v49 }
 0x708   :  { %1604 = vmatpush.msra.mxu2 %v2674_v55 }
 0x70a   :  { %1605 = vmatpush.msra.mxu2 %v2688_v60 }
 0x70c   :  { %1606 = vmatpush.msra.mxu2 %v2704_v6 }
 0x770   :  { %v735_v20 = vpop.f32.mrf.mxu2 }
 0x771   :  { %v2926_v53 = vadd.f32 %v735_v20, %v2820_v35 }
 0x773   :  { %v738_v0 = vsel %vm423_vm12, %v2926_v53, -inf }
 0x778   :  { %v808_v21 = vpop.f32.mrf.mxu2 }
 0x779   :  { %v812_v28 = vrot.slane %v808_v21, 1  ;;  %v813_v36 = vrot.slane %v808_v21, 2  ;;  %v814_v44 = vrot.slane %v808_v21, 3  ;;  %v815_v26 = vperm.slane %v808_v21, 0 }
 0x77a   :  { %v1005_v47 = vadd.f32 %v808_v21, %v2589_v54 }
 0x77b   :  { %v823_v27 = vadd.f32 %v815_v26, %v2565_v22  ;;  %v817_v51 = vperm.slane %v813_v36, 0  ;;  %v816_v34 = vperm.slane %v812_v28, 0  ;;  %v818_v57 = vperm.slane %v814_v44, 0 }
 0x77d   :  { %2193 = vtanh.f32 %v823_v27  ;;  %v825_v42 = vadd.f32 %v817_v51, %v2577_v38  ;;  %v824_v49 = vadd.f32 %v816_v34, %v2569_v29  ;;  %v826_v55 = vadd.f32 %v818_v57, %v2582_v45 }
 0x77f   :  { %2195 = vtanh.f32 %v825_v42 }
 0x780   :  { %2197 = vtanh.f32 %v824_v49 }
 0x781   :  { %2199 = vtanh.f32 %v826_v55 }
 0x783   :  { %v2194_v60 = vpop.eup %2193 }
 0x784   :  { %v831_v62 = vmul.f32 %v2194_v60, %v2572_v30 }
 0x785   :  { %v2196_v6 = vpop.eup %2195 }
 0x786   :  { %v2198_v2 = vpop.eup %2197  ;;  %v835_v52 = vsel %vm147_vm1, %v831_v62, 0.0  ;;  %v833_v5 = vmul.f32 %v2196_v6, %v2572_v30 }
 0x787   :  { %v2200_v17 = vpop.eup %2199  ;;  %836 = vadd.xlane.f32.xlu1 %v835_v52  ;;  %v832_v37 = vmul.f32 %v2198_v2, %v2572_v30 }
 0x788   :  { %v841_v13 = vsel %vm147_vm1, %v833_v5, 0.0  ;;  %v834_v24 = vmul.f32 %v2200_v17, %v2572_v30 }
 0x789   :  { %842 = vadd.xlane.f32.xlu0 %v841_v13  ;;  %v838_v15 = vsel %vm147_vm1, %v832_v37, 0.0 }
 0x78a   :  { %839 = vadd.xlane.f32.xlu2 %v838_v15  ;;  %v844_v23 = vsel %vm147_vm1, %v834_v24, 0.0 }
 0x78f   :  { %845 = vadd.xlane.f32.xlu1 %v844_v23 }
 0x792   :  { %739 = vmax.xlane.f32.xlu2 %v738_v0 }
 0x7a8   :  { %982 = vrot.lane.b32.xlu1 %v808_v21, %s2421_s30 }
 0x7aa   :  { %1007 = vrot.lane.b32.xlu2 %v1005_v47, %s2422_s17 }
 0x7fa   :  { %v837_v40 = vpop.xlane.xlu1 %836 }
 0x7fb   :  { %v847_v31 = vrot.slane %v837_v40, 4 }
 0x7fc   :  { %v843_v41 = vpop.xlane.xlu0 %842 }
 0x7fd   :  { %v848_v48 = vmax.f32 %v837_v40, %v847_v31  ;;  %v859_v50 = vrot.slane %v843_v41, 4  ;;  %v840_v19 = vpop.xlane.xlu2 %839 }
 0x7fe   :  { %v853_v11 = vrot.slane %v840_v19, 4 }
 0x7ff   :  { %v849_v8 = vrot.slane %v848_v48, 2  ;;  %v860_v58 = vmax.f32 %v843_v41, %v859_v50 }
 0x800   :  { %v854_v7 = vmax.f32 %v840_v19, %v853_v11 }
 0x801   :  { %v850_v9 = vmax.f32 %v848_v48, %v849_v8  ;;  %v861_v56 = vrot.slane %v860_v58, 2 }
 0x802   :  { %v855_v10 = vrot.slane %v854_v7, 2  ;;  %v846_v16 = vpop.xlane.xlu1 %845 }
 0x803   :  { %v851_v12 = vrot.slane %v850_v9, 1  ;;  %v862_v20 = vmax.f32 %v860_v58, %v861_v56  ;;  %v865_v28 = vrot.slane %v846_v16, 4 }
 0x804   :  { %v856_v21 = vmax.f32 %v854_v7, %v855_v10 }
 0x805   :  { %v852_v36 = vmax.f32 %v850_v9, %v851_v12  ;;  %v863_v44 = vrot.slane %v862_v20, 1  ;;  %v866_v26 = vmax.f32 %v846_v16, %v865_v28  ;;  %v2934_v27 = vpop.xlane.xlu2 %739 }
 0x806   :  { %v857_v51 = vrot.slane %v856_v21, 1  ;;  %vm753_vm10 = vcmp.eq.f32.partialorder %v2926_v53, %v2934_v27 }
 0x807   :  { %v871_v34 = vsub.f32 %v837_v40, %v852_v36  ;;  %v864_v57 = vmax.f32 %v862_v20, %v863_v44  ;;  %v867_v42 = vrot.slane %v866_v26, 2  ;;  %v754_v49 = vsel %vm753_vm10, %v2652_v46, 64.0 }
 0x808   :  { %v858_v55 = vmax.f32 %v856_v21, %v857_v51  ;;  %v755_v60 = vsel %vm423_vm12, %v754_v49, inf }
 0x809   :  { %v875_v62 = vmul.f32 1.442695, %v871_v34  ;;  %v873_v6 = vsub.f32 %v843_v41, %v864_v57  ;;  %v868_v2 = vmax.f32 %v866_v26, %v867_v42  ;;  %756 = vmin.xlane.f32.xlu0 %v755_v60 }
 0x80a   :  { %v872_v52 = vsub.f32 %v840_v19, %v858_v55 }
 0x80b   :  { %2201 = vpow2.f32 %v875_v62  ;;  %v879_v5 = vmul.f32 1.442695, %v873_v6  ;;  %v869_v17 = vrot.slane %v868_v2, 1 }
 0x80c   :  { %v877_v37 = vmul.f32 1.442695, %v872_v52 }
 0x80d   :  { %2203 = vpow2.f32 %v879_v5  ;;  %v870_v13 = vmax.f32 %v868_v2, %v869_v17  ;;  %v2943_v17 = vld [vmem:[%s3318_s0] sm:$0xff] }
 0x80e   :  { %2205 = vpow2.f32 %v877_v37 }
 0x80f   :  { %v874_v15 = vsub.f32 %v846_v16, %v870_v13 }
 0x811   :  { %v2202_v24 = vpop.eup %2201  ;;  %v881_v23 = vmul.f32 1.442695, %v874_v15  ;;  %v2949_v15 = vld [vmem:[%s3318_s0 + $0x10] sm:$0xff] }
 0x812   :  { %v883_v0 = vrot.slane %v2202_v24, 4 }
 0x813   :  { %v2204_v47 = vpop.eup %2203  ;;  %2207 = vpow2.f32 %v881_v23 }
 0x814   :  { %v2206_v40 = vpop.eup %2205  ;;  %v884_v31 = vadd.f32 %v2202_v24, %v883_v0  ;;  %v895_v48 = vrot.slane %v2204_v47, 4 }
 0x815   :  { %v889_v41 = vrot.slane %v2206_v40, 4 }
 0x816   :  { %v885_v50 = vrot.slane %v884_v31, 2  ;;  %v896_v11 = vadd.f32 %v2204_v47, %v895_v48 }
 0x817   :  { %v890_v19 = vadd.f32 %v2206_v40, %v889_v41 }
 0x818   :  { %v886_v8 = vadd.f32 %v885_v50, %v884_v31  ;;  %v897_v58 = vrot.slane %v896_v11, 2 }
 0x819   :  { %v2208_v7 = vpop.eup %2207  ;;  %v891_v9 = vrot.slane %v890_v19, 2 }
 0x81a   :  { %v887_v56 = vrot.slane %v886_v8, 1  ;;  %v898_v10 = vadd.f32 %v897_v58, %v896_v11  ;;  %v901_v12 = vrot.slane %v2208_v7, 4 }
 0x81b   :  { %v892_v16 = vadd.f32 %v891_v9, %v890_v19 }
 0x81c   :  { %v888_v20 = vadd.f32 %v887_v56, %v886_v8  ;;  %v899_v28 = vrot.slane %v898_v10, 1  ;;  %v902_v21 = vadd.f32 %v2208_v7, %v901_v12 }
 0x81d   :  { %v893_v36 = vrot.slane %v892_v16, 1 }
 0x81e   :  { %2209 = vrcp.f32 %v888_v20  ;;  %v903_v44 = vrot.slane %v902_v21, 2  ;;  %v900_v26 = vadd.f32 %v899_v28, %v898_v10  ;;  %v2964_v10 = vld [vmem:[%s3318_s0 + $0x18] sm:$0xff] }
 0x81f   :  { %v894_v51 = vadd.f32 %v893_v36, %v892_v16 }
 0x820   :  { %v904_v34 = vadd.f32 %v903_v44, %v902_v21  ;;  %2211 = vrcp.f32 %v900_v26 }
 0x821   :  { %2213 = vrcp.f32 %v894_v51 }
 0x822   :  { %v905_v57 = vrot.slane %v904_v34, 1 }
 0x824   :  { %v2210_v42 = vpop.eup %2209  ;;  %v906_v49 = vadd.f32 %v905_v57, %v904_v34 }
 0x825   :  { %v911_v55 = vmul.f32 0.125, %v2210_v42 }
 0x826   :  { %v2212_v60 = vpop.eup %2211  ;;  %2215 = vrcp.f32 %v906_v49 }
 0x827   :  { %v2214_v62 = vpop.eup %2213  ;;  %v915_v6 = vmul.f32 %v2202_v24, %v911_v55  ;;  %v913_v2 = vmul.f32 0.125, %v2212_v60 }
 0x828   :  { %v912_v52 = vmul.f32 0.125, %v2214_v62 }
 0x829   :  { %v917_v5 = vmul.f32 %v2204_v47, %v913_v2  ;;  %v919_v37 = vmul.f32 %v2943_v17, %v915_v6  ;;  %v2956_v47 = vld [vmem:[%s3318_s0 + $0x8] sm:$0xff] }
 0x82a   :  { %v916_v13 = vmul.f32 %v2206_v40, %v912_v52 }
 0x82b   :  { %v921_v23 = vmul.f32 %v2949_v15, %v917_v5  ;;  %v923_v24 = vsel %vm70_vm2, %v919_v37, 0.0 }
 0x82c   :  { %v2216_v0 = vpop.eup %2215  ;;  %v920_v31 = vmul.f32 %v2956_v47, %v916_v13  ;;  %v924_v48 = vrot.slane %v923_v24, 4 }
 0x82d   :  { %v914_v41 = vmul.f32 0.125, %v2216_v0  ;;  %v937_v40 = vsel %vm70_vm2, %v921_v23, 0.0 }
 0x82e   :  { %v925_v50 = vadd.f32 %v924_v48, %v923_v24  ;;  %v930_v11 = vsel %vm70_vm2, %v920_v31, 0.0  ;;  %v938_v19 = vrot.slane %v937_v40, 4 }
 0x82f   :  { %v918_v8 = vmul.f32 %v2208_v7, %v914_v41  ;;  %v931_v58 = vrot.slane %v930_v11, 4 }
 0x830   :  { %v926_v9 = vrot.slane %v925_v50, 2  ;;  %v939_v56 = vadd.f32 %v938_v19, %v937_v40 }
 0x831   :  { %v922_v12 = vmul.f32 %v2964_v10, %v918_v8  ;;  %v932_v16 = vadd.f32 %v931_v58, %v930_v11 }
 0x832   :  { %v927_v20 = vadd.f32 %v926_v9, %v925_v50  ;;  %v940_v28 = vrot.slane %v939_v56, 2  ;;  %v983_v50 = vpop.permute.xlu1 %982 }
 0x833   :  { %v933_v21 = vrot.slane %v932_v16, 2  ;;  %v944_v36 = vsel %vm70_vm2, %v922_v12, 0.0 }
 0x834   :  { %v941_v44 = vadd.f32 %v940_v28, %v939_v56  ;;  %v945_v26 = vrot.slane %v944_v36, 4  ;;  %v928_v7 = vrot.slane %v927_v20, 1  ;;  %v1008_v28 = vpop.permute.xlu2 %1007 }
 0x835   :  { %v934_v51 = vadd.f32 %v933_v21, %v932_v16 }
 0x836   :  { %v946_v34 = vadd.f32 %v945_v26, %v944_v36  ;;  %v942_v42 = vrot.slane %v941_v44, 1  ;;  %v929_v60 = vadd.f32 %v928_v7, %v927_v20 }
 0x837   :  { %v935_v57 = vrot.slane %v934_v51, 1 }
 0x838   :  { %v947_v49 = vrot.slane %v946_v34, 2  ;;  %v943_v6 = vadd.f32 %v942_v42, %v941_v44 }
 0x839   :  { %v936_v55 = vadd.f32 %v935_v57, %v934_v51 }
 0x83a   :  { %v948_v62 = vadd.f32 %v947_v49, %v946_v34 }
 0x83b   :  { %v956_v52 = vsel %vm317_vm4, %v936_v55, %v929_v60 }
 0x83c   :  { %v949_v2 = vrot.slane %v948_v62, 1  ;;  %v957_v37 = vsel %vm319_vm5, %v943_v6, %v956_v52  ;;  %v3007_v6 = vld [vmem:[%s3322_s4 + $0x28] sm:$0xff]  ;;  %v3013_v52 = vld [vmem:[%s3322_s4 + $0x20] sm:$0xff] }
 0x83e   :  { %v950_v5 = vadd.f32 %v949_v2, %v948_v62  ;;  %v3001_v62 = vld [vmem:[%s3322_s4 + $0x30] sm:$0xff] }
 0x840   :  { %v958_v13 = vsel %vm321_vm6, %v950_v5, %v957_v37  ;;  %v3020_v5 = vld [vmem:[%s3322_s4 + $0x18] sm:$0xff]  ;;  %v3026_v37 = vld [vmem:[%s3322_s4 + $0x10] sm:$0xff] }
 0x841   :  { %2103 = vmatmul.msk.f32.vlgmr.msrb.gmra.mxu1 %vm70_vm2, %v958_v13  ;;  %v3032_v13 = vld [vmem:[%s3322_s4 + $0x8] sm:$0xff] }
 0x842   :  { %1433 = vmatpush.msrb.mxu1 %v2855_v59 }
 0x844   :  { %1434 = vmatpush.msrb.mxu1 %v2861_v61 }
 0x846   :  { %1435 = vmatpush.msrb.mxu1 %v2867_v4 }
 0x848   :  { %1436 = vmatpush.msrb.mxu1 %v2873_v3 }
 0x87c   :  { %v757_v23 = vpop.xlane.xlu0 %756 }
 0x87d   :  { %vm758_vm11 = vcmp.eq.f32.partialorder %v2652_v46, %v757_v23  ;;  %v3038_v23 = vld [vmem:[%s3322_s4] sm:$0xff] }
 0x87e   :  { %v2100_v24 = vsel %vm758_vm11, 1.0, %v2423_v1 }
 0x87f   :  { %2101 = vmatmul.msk.f32.vlgmr.msra.gmra.mxu0 %vm70_vm2, %v2100_v24 }
 0x880   :  { %1675 = vmatpush.msra.mxu0 %v2765_v63 }
 0x882   :  { %1676 = vmatpush.msra.mxu0 %v2770_v32 }
 0x884   :  { %1677 = vmatpush.msra.mxu0 %v2777_v33 }
 0x886   :  { %1678 = vmatpush.msra.mxu0 %v2785_v14 }
 0x8be   :  { %v978_v48 = vpop.f32.mrf.mxu1 }
 0x8fc   :  { %v781_v0 = vpop.f32.mrf.mxu0 }
 0x8fd   :  { %v782_v31 = vadd.f32 %v781_v0, %v2754_v39 }
 0x8ff   :  { %784 = vst.msk [vmem:[#allocation3] sm:$0xf] %vm94_vm7, %v782_v31 }
 0x906   :  { %v951_v41 = vld [vmem:[#allocation3] sm:$0xf] }
 0x907   :  { %v981_v40 = vadd.f32 %v978_v48, %v951_v41 }
 0x909   :  { %v985_v11 = vadd.f32 %v983_v50, %v981_v40 }
 0x90b   :  { %v2104_v19 = vmul.f32 -1.442695, %v985_v11 }
 0x90d   :  { %2217 = vpow2.f32 %v2104_v19 }
 0x913   :  { %v2218_v8 = vpop.eup %2217 }
 0x914   :  { %v989_v63 = vadd.f32 1.0, %v2218_v8 }
 0x916   :  { %2219 = vrcp.f32 %v989_v63  ;;  %v1001_v9 = vand.u32 2147483648, %v989_v63  ;;  %v999_v56 = vand.u32 2147483647, %v989_v63  ;;  %vm995_vm14 = vweird.f32 %v989_v63 }
 0x918   :  { %v1002_v16 = vor.u32 1.1754944e-38, %v1001_v9  ;;  %vm1000_vm3 = vcmp.eq.f32.partialorder %v999_v56, 8.507059e+37 }
 0x91c   :  { %v2220_v32 = vpop.eup %2219 }
 0x91d   :  { %v991_v58 = vmul.f32 %v2220_v32, %v989_v63  ;;  %vm996_vm13 = vweird.f32 %v2220_v32 }
 0x91e   :  { %vm997_vm15 = vmor %vm995_vm14, %vm996_vm13 }
 0x91f   :  { %v992_v33 = vsub.f32 1.0, %v991_v58 }
 0x921   :  { %v993_v14 = vmul.f32 %v2220_v32, %v992_v33 }
 0x923   :  { %v994_v12 = vadd.f32 %v2220_v32, %v993_v14 }
 0x925   :  { %v998_v20 = vsel %vm997_vm15, %v2220_v32, %v994_v12 }
 0x926   :  { %v1003_v21 = vsel %vm1000_vm3, %v1002_v16, %v998_v20 }
 0x927   :  { %v1010_v36 = vmul.f32 %v1008_v28, %v1003_v21  ;;  %v1017_v34 = vsub.f32 1.0, %v1003_v21 }
 0x929   :  { %1012 = vrot.lane.b32.xlu0 %v1010_v36, %s2424_s26 }
 0x931   :  { %1023 = vrot.lane.b32.xlu0 %v2897_v18, %s2422_s17  ;;  %v2995_v18 = vld [vmem:[%s3322_s4 + $0x38] sm:$0xff] }
 0x99b   :  { %v1013_v44 = vpop.permute.xlu0 %1012 }
 0x99c   :  { %v1015_v26 = vadd.f32 %v1013_v44, %v981_v40 }
 0x99e   :  { %2221 = vtanh.f32 %v1015_v26 }
 0x9a3   :  { %v1024_v7 = vpop.permute.xlu0 %1023 }
 0x9a4   :  { %v2222_v51 = vpop.eup %2221  ;;  %v1026_v42 = vmul.f32 %v1024_v7, %v1003_v21 }
 0x9a5   :  { %1019 = vrot.lane.b32.xlu1 %v2222_v51, %s2421_s30 }
 0xa17   :  { %v1020_v57 = vpop.permute.xlu1 %1019 }
 0xa18   :  { %v1022_v49 = vmul.f32 %v1020_v57, %v1017_v34 }
 0xa1a   :  { %v1027_v55 = vadd.f32 %v1026_v42, %v1022_v49 }
 0xa1c   :  { %1029 = vrot.lane.b32.xlu2 %v1027_v55, %s2421_s30 }
 0xa76   :  { %v1030_v60 = vpop.permute.xlu2 %1029 }
 0xa77   :  { %1101 = vst.msk [vmem:[#allocation2] sm:$0xf] %vm64_vm0, %v1030_v60  ;;  %2105 = vmatmul.msk.f32.vlgmr.msra.gmra.mxu3 %vm147_vm1, %v1030_v60 }
 0xa78   :  { %1402 = vmatpush.msra.mxu3 %v2995_v18 }
 0xa7a   :  { %1403 = vmatpush.msra.mxu3 %v3001_v62 }
 0xa7c   :  { %1404 = vmatpush.msra.mxu3 %v3007_v6 }
 0xa7e   :  { %v1102_v2 = vld [vmem:[#allocation2] sm:$0xf]  ;;  %1405 = vmatpush.msra.mxu3 %v3013_v52 }
 0xa7f   :  { %2108 = vmatmul.msk.f32.vlgmr.msrb.gmra.mxu3 %vm147_vm1, %v1102_v2 }
 0xa80   :  { %1406 = vmatpush.msra.mxu3 %v3020_v5 }
 0xa82   :  { %1407 = vmatpush.msra.mxu3 %v3026_v37 }
 0xa84   :  { %1408 = vmatpush.msra.mxu3 %v3032_v13 }
 0xa86   :  { %1409 = vmatpush.msra.mxu3 %v3038_v23 }
 0xa88   :  { %1748 = vmatpush.msrb.mxu3 %v2855_v59 }
 0xa8a   :  { %1749 = vmatpush.msrb.mxu3 %v2861_v61 }
 0xa8c   :  { %1750 = vmatpush.msrb.mxu3 %v2867_v4 }
 0xa8e   :  { %1751 = vmatpush.msrb.mxu3 %v2873_v3 }
 0xafa   :  { %v1050_v24 = vpop.f32.mrf.mxu3 }
 0xafb   :  { %v3057_v28 = vadd.f32 %v1050_v24, %v2820_v35 }
 0xafd   :  { %v1053_v36 = vsel %vm423_vm12, %v3057_v28, -inf }
 0xb02   :  { %v1123_v0 = vpop.f32.mrf.mxu3 }
 0xb03   :  { %v1127_v31 = vrot.slane %v1123_v0, 1  ;;  %v1128_v48 = vrot.slane %v1123_v0, 2  ;;  %v1129_v41 = vrot.slane %v1123_v0, 3  ;;  %v1130_v40 = vperm.slane %v1123_v0, 0 }
 0xb04   :  { %v1320_v44 = vadd.f32 %v1123_v0, %v2589_v54 }
 0xb05   :  { %v1138_v50 = vadd.f32 %v1130_v40, %v2565_v22  ;;  %v1132_v11 = vperm.slane %v1128_v48, 0  ;;  %v1131_v19 = vperm.slane %v1127_v31, 0  ;;  %v1133_v8 = vperm.slane %v1129_v41, 0 }
 0xb07   :  { %2223 = vtanh.f32 %v1138_v50  ;;  %v1140_v59 = vadd.f32 %v1132_v11, %v2577_v38  ;;  %v1139_v61 = vadd.f32 %v1131_v19, %v2569_v29  ;;  %v1141_v4 = vadd.f32 %v1133_v8, %v2582_v45 }
 0xb09   :  { %2225 = vtanh.f32 %v1140_v59 }
 0xb0a   :  { %2227 = vtanh.f32 %v1139_v61 }
 0xb0b   :  { %2229 = vtanh.f32 %v1141_v4 }
 0xb0d   :  { %v2224_v3 = vpop.eup %2223 }
 0xb0e   :  { %v1146_v63 = vmul.f32 %v2224_v3, %v2572_v30 }
 0xb0f   :  { %v2226_v32 = vpop.eup %2225 }
 0xb10   :  { %v2228_v58 = vpop.eup %2227  ;;  %v1150_v33 = vsel %vm147_vm1, %v1146_v63, 0.0  ;;  %v1148_v9 = vmul.f32 %v2226_v32, %v2572_v30 }
 0xb11   :  { %v2230_v14 = vpop.eup %2229  ;;  %1151 = vadd.xlane.f32.xlu1 %v1150_v33  ;;  %v1147_v56 = vmul.f32 %v2228_v58, %v2572_v30 }
 0xb12   :  { %v1156_v12 = vsel %vm147_vm1, %v1148_v9, 0.0  ;;  %v1149_v20 = vmul.f32 %v2230_v14, %v2572_v30 }
 0xb13   :  { %1157 = vadd.xlane.f32.xlu2 %v1156_v12  ;;  %v1153_v16 = vsel %vm147_vm1, %v1147_v56, 0.0 }
 0xb14   :  { %1154 = vadd.xlane.f32.xlu0 %v1153_v16  ;;  %v1159_v21 = vsel %vm147_vm1, %v1149_v20, 0.0 }
 0xb19   :  { %1160 = vadd.xlane.f32.xlu1 %v1159_v21 }
 0xb1c   :  { %1054 = vmax.xlane.f32.xlu0 %v1053_v36 }
 0xb30   :  { %1322 = vrot.lane.b32.xlu0 %v1320_v44, %s2422_s17 }
 0xb32   :  { %1297 = vrot.lane.b32.xlu1 %v1123_v0, %s2421_s30 }
 0xb3a   :  { %1338 = vrot.lane.b32.xlu1 %v1102_v2, %s2422_s17 }
 0xb84   :  { %v1152_v26 = vpop.xlane.xlu1 %1151 }
 0xb85   :  { %v1162_v51 = vrot.slane %v1152_v26, 4 }
 0xb86   :  { %v1158_v7 = vpop.xlane.xlu2 %1157 }
 0xb87   :  { %v1163_v34 = vmax.f32 %v1152_v26, %v1162_v51  ;;  %v1174_v57 = vrot.slane %v1158_v7, 4  ;;  %v1155_v42 = vpop.xlane.xlu0 %1154 }
 0xb88   :  { %v1168_v49 = vrot.slane %v1155_v42, 4 }
 0xb89   :  { %v1164_v55 = vrot.slane %v1163_v34, 2  ;;  %v1175_v60 = vmax.f32 %v1158_v7, %v1174_v57 }
 0xb8a   :  { %v1169_v24 = vmax.f32 %v1155_v42, %v1168_v49 }
 0xb8b   :  { %v1165_v31 = vmax.f32 %v1163_v34, %v1164_v55  ;;  %v1176_v48 = vrot.slane %v1175_v60, 2 }
 0xb8c   :  { %v1170_v41 = vrot.slane %v1169_v24, 2  ;;  %v1161_v40 = vpop.xlane.xlu1 %1160 }
 0xb8d   :  { %v1166_v50 = vrot.slane %v1165_v31, 1  ;;  %v1177_v11 = vmax.f32 %v1175_v60, %v1176_v48  ;;  %v1180_v19 = vrot.slane %v1161_v40, 4 }
 0xb8e   :  { %v1171_v0 = vmax.f32 %v1169_v24, %v1170_v41 }
 0xb8f   :  { %v1167_v8 = vmax.f32 %v1165_v31, %v1166_v50  ;;  %v1178_v2 = vrot.slane %v1177_v11, 1  ;;  %v1181_v59 = vmax.f32 %v1161_v40, %v1180_v19  ;;  %v3066_v61 = vpop.xlane.xlu0 %1054 }
 0xb90   :  { %v1172_v4 = vrot.slane %v1171_v0, 1  ;;  %vm1068_vm8 = vcmp.eq.f32.partialorder %v3057_v28, %v3066_v61 }
 0xb91   :  { %v1186_v3 = vsub.f32 %v1152_v26, %v1167_v8  ;;  %v1179_v63 = vmax.f32 %v1177_v11, %v1178_v2  ;;  %v1182_v32 = vrot.slane %v1181_v59, 2  ;;  %v1069_v58 = vsel %vm1068_vm8, %v2652_v46, 64.0 }
 0xb92   :  { %v1173_v33 = vmax.f32 %v1171_v0, %v1172_v4  ;;  %v1070_v9 = vsel %vm423_vm12, %v1069_v58, inf }
 0xb93   :  { %v1190_v14 = vmul.f32 1.442695, %v1186_v3  ;;  %v1188_v56 = vsub.f32 %v1158_v7, %v1179_v63  ;;  %v1183_v12 = vmax.f32 %v1181_v59, %v1182_v32  ;;  %1071 = vmin.xlane.f32.xlu2 %v1070_v9 }
 0xb94   :  { %v1187_v16 = vsub.f32 %v1155_v42, %v1173_v33 }
 0xb95   :  { %2231 = vpow2.f32 %v1190_v14  ;;  %v1194_v20 = vmul.f32 1.442695, %v1188_v56  ;;  %v1184_v21 = vrot.slane %v1183_v12, 1 }
 0xb96   :  { %v1192_v36 = vmul.f32 1.442695, %v1187_v16 }
 0xb97   :  { %2233 = vpow2.f32 %v1194_v20  ;;  %v1185_v44 = vmax.f32 %v1183_v12, %v1184_v21 }
 0xb98   :  { %2235 = vpow2.f32 %v1192_v36 }
 0xb99   :  { %v1189_v26 = vsub.f32 %v1161_v40, %v1185_v44 }
 0xb9b   :  { %v2232_v51 = vpop.eup %2231  ;;  %v1196_v34 = vmul.f32 1.442695, %v1189_v26 }
 0xb9c   :  { %v1198_v57 = vrot.slane %v2232_v51, 4 }
 0xb9d   :  { %v2234_v49 = vpop.eup %2233  ;;  %2237 = vpow2.f32 %v1196_v34 }
 0xb9e   :  { %v2236_v55 = vpop.eup %2235  ;;  %v1199_v60 = vadd.f32 %v2232_v51, %v1198_v57  ;;  %v1210_v24 = vrot.slane %v2234_v49, 4 }
 0xb9f   :  { %v1204_v7 = vrot.slane %v2236_v55, 4 }
 0xba0   :  { %v1200_v31 = vrot.slane %v1199_v60, 2  ;;  %v1211_v48 = vadd.f32 %v2234_v49, %v1210_v24 }
 0xba1   :  { %v1205_v42 = vadd.f32 %v2236_v55, %v1204_v7 }
 0xba2   :  { %v1201_v41 = vadd.f32 %v1200_v31, %v1199_v60  ;;  %v1212_v50 = vrot.slane %v1211_v48, 2 }
 0xba3   :  { %v2238_v11 = vpop.eup %2237  ;;  %v1206_v19 = vrot.slane %v1205_v42, 2 }
 0xba4   :  { %v1202_v0 = vrot.slane %v1201_v41, 1  ;;  %v1213_v8 = vadd.f32 %v1212_v50, %v1211_v48  ;;  %v1216_v2 = vrot.slane %v2238_v11, 4 }
 0xba5   :  { %v1207_v40 = vadd.f32 %v1206_v19, %v1205_v42 }
 0xba6   :  { %v1203_v59 = vadd.f32 %v1202_v0, %v1201_v41  ;;  %v1214_v4 = vrot.slane %v1213_v8, 1  ;;  %v1217_v3 = vadd.f32 %v2238_v11, %v1216_v2 }
 0xba7   :  { %v1208_v63 = vrot.slane %v1207_v40, 1 }
 0xba8   :  { %2239 = vrcp.f32 %v1203_v59  ;;  %v1215_v32 = vadd.f32 %v1214_v4, %v1213_v8  ;;  %v1218_v58 = vrot.slane %v1217_v3, 2 }
 0xba9   :  { %v1209_v33 = vadd.f32 %v1208_v63, %v1207_v40 }
 0xbaa   :  { %2241 = vrcp.f32 %v1215_v32  ;;  %v1219_v9 = vadd.f32 %v1218_v58, %v1217_v3 }
 0xbab   :  { %2243 = vrcp.f32 %v1209_v33 }
 0xbac   :  { %v1220_v14 = vrot.slane %v1219_v9, 1 }
 0xbae   :  { %v2240_v56 = vpop.eup %2239  ;;  %v1221_v12 = vadd.f32 %v1220_v14, %v1219_v9 }
 0xbaf   :  { %v1226_v16 = vmul.f32 0.125, %v2240_v56 }
 0xbb0   :  { %v2242_v20 = vpop.eup %2241  ;;  %2245 = vrcp.f32 %v1221_v12 }
 0xbb1   :  { %v2244_v21 = vpop.eup %2243  ;;  %v1230_v36 = vmul.f32 %v2232_v51, %v1226_v16  ;;  %v1228_v44 = vmul.f32 0.125, %v2242_v20 }
 0xbb2   :  { %v1227_v26 = vmul.f32 0.125, %v2244_v21 }
 0xbb3   :  { %v1232_v34 = vmul.f32 %v2234_v49, %v1228_v44  ;;  %v1234_v57 = vmul.f32 %v2943_v17, %v1230_v36 }
 0xbb4   :  { %v1231_v60 = vmul.f32 %v2236_v55, %v1227_v26 }
 0xbb5   :  { %v1236_v24 = vmul.f32 %v2949_v15, %v1232_v34  ;;  %v1238_v7 = vsel %vm70_vm2, %v1234_v57, 0.0 }
 0xbb6   :  { %v2246_v31 = vpop.eup %2245  ;;  %v1235_v48 = vmul.f32 %v2956_v47, %v1231_v60  ;;  %v1239_v42 = vrot.slane %v1238_v7, 4 }
 0xbb7   :  { %v1229_v41 = vmul.f32 0.125, %v2246_v31  ;;  %v1252_v50 = vsel %vm70_vm2, %v1236_v24, 0.0  ;;  %v2354_v31 = vld [vmem:[%s3322_s4 + $0x70] sm:$0xff] }
 0xbb8   :  { %v1240_v19 = vadd.f32 %v1239_v42, %v1238_v7  ;;  %v1245_v51 = vsel %vm70_vm2, %v1235_v48, 0.0  ;;  %v1253_v0 = vrot.slane %v1252_v50, 4  ;;  %v2353_v7 = vld [vmem:[%s3322_s4 + $0x78] sm:$0xff]  ;;  %v2355_v48 = vld [vmem:[%s3322_s4 + $0x68] sm:$0xff]  ;;  %v2356_v42 = vld [vmem:[%s3322_s4 + $0x60] sm:$0xff] }
 0xbb9   :  { %v1233_v8 = vmul.f32 %v2238_v11, %v1229_v41  ;;  %v1246_v49 = vrot.slane %v1245_v51, 4  ;;  %v2357_v41 = vld [vmem:[%s3322_s4 + $0x58] sm:$0xff] }
 0xbba   :  { %v1241_v2 = vrot.slane %v1240_v19, 2  ;;  %v1254_v40 = vadd.f32 %v1253_v0, %v1252_v50  ;;  %v2358_v50 = vld [vmem:[%s3322_s4 + $0x50] sm:$0xff] }
 0xbbb   :  { %v1237_v55 = vmul.f32 %v2964_v10, %v1233_v8  ;;  %v1247_v59 = vadd.f32 %v1246_v49, %v1245_v51  ;;  %v2360_v51 = vld [vmem:[%s3322_s4 + $0x40] sm:$0xff]  ;;  %v2361_v49 = vld [vmem:[%s3323_s5 + $0x18] sm:$0xff] }
 0xbbc   :  { %v1242_v4 = vadd.f32 %v1241_v2, %v1240_v19  ;;  %v1255_v3 = vrot.slane %v1254_v40, 2  ;;  %v2359_v19 = vld [vmem:[%s3322_s4 + $0x48] sm:$0xff]  ;;  %v2362_v2 = vld [vmem:[%s3323_s5 + $0x10] sm:$0xff] }
 0xbbd   :  { %v1248_v63 = vrot.slane %v1247_v59, 2  ;;  %v1259_v32 = vsel %vm70_vm2, %v1237_v55, 0.0  ;;  %v2364_v55 = vld [vmem:[%s3323_s5] sm:$0xff] }
 0xbbe   :  { %v1256_v58 = vadd.f32 %v1255_v3, %v1254_v40  ;;  %v1260_v33 = vrot.slane %v1259_v32, 4  ;;  %v1243_v14 = vrot.slane %v1242_v4, 1  ;;  %v2363_v40 = vld [vmem:[%s3323_s5 + $0x8] sm:$0xff] }
 0xbbf   :  { %v1249_v9 = vadd.f32 %v1248_v63, %v1247_v59 }
 0xbc0   :  { %v1261_v56 = vadd.f32 %v1260_v33, %v1259_v32  ;;  %v1257_v16 = vrot.slane %v1256_v58, 1  ;;  %v1244_v21 = vadd.f32 %v1243_v14, %v1242_v4 }
 0xbc1   :  { %v1250_v12 = vrot.slane %v1249_v9, 1 }
 0xbc2   :  { %v1262_v20 = vrot.slane %v1261_v56, 2  ;;  %v1258_v44 = vadd.f32 %v1257_v16, %v1256_v58  ;;  %v1298_v58 = vpop.permute.xlu1 %1297 }
 0xbc3   :  { %v1251_v11 = vadd.f32 %v1250_v12, %v1249_v9 }
 0xbc4   :  { %v1263_v36 = vadd.f32 %v1262_v20, %v1261_v56 }
 0xbc5   :  { %v1271_v34 = vsel %vm317_vm4, %v1251_v11, %v1244_v21 }
 0xbc6   :  { %v1264_v26 = vrot.slane %v1263_v36, 1  ;;  %v1272_v60 = vsel %vm319_vm5, %v1258_v44, %v1271_v34 }
 0xbc8   :  { %v1265_v57 = vadd.f32 %v1264_v26, %v1263_v36 }
 0xbca   :  { %v1273_v24 = vsel %vm321_vm6, %v1265_v57, %v1272_v60  ;;  %v1323_v57 = vpop.permute.xlu0 %1322 }
 0xbcb   :  { %2109 = vmatmul.msk.f32.vlgmr.msrb.gmra.mxu0 %vm70_vm2, %v1273_v24 }
 0xbcc   :  { %1914 = vmatpush.msrb.mxu0 %v2353_v7 }
 0xbce   :  { %1915 = vmatpush.msrb.mxu0 %v2354_v31 }
 0xbd0   :  { %1916 = vmatpush.msrb.mxu0 %v2355_v48 }
 0xbd2   :  { %1917 = vmatpush.msrb.mxu0 %v2356_v42 }
 0xbd4   :  { %1918 = vmatpush.msrb.mxu0 %v2357_v41  ;;  %v1339_v41 = vpop.permute.xlu1 %1338 }
 0xbd6   :  { %1919 = vmatpush.msrb.mxu0 %v2358_v50 }
 0xbd8   :  { %1920 = vmatpush.msrb.mxu0 %v2359_v19 }
 0xbda   :  { %1921 = vmatpush.msrb.mxu0 %v2360_v51 }
 0xc06   :  { %v1072_v0 = vpop.xlane.xlu2 %1071 }
 0xc07   :  { %vm1073_vm9 = vcmp.eq.f32.partialorder %v2652_v46, %v1072_v0 }
 0xc08   :  { %v2106_v8 = vsel %vm1073_vm9, 1.0, %v2423_v1 }
 0xc09   :  { %2107 = vmatmul.msk.f32.vlgmr.msrb.gmra.mxu2 %vm70_vm2, %v2106_v8 }
 0xc0a   :  { %1990 = vmatpush.msrb.mxu2 %v2361_v49 }
 0xc0c   :  { %1991 = vmatpush.msrb.mxu2 %v2362_v2 }
 0xc0e   :  { %1992 = vmatpush.msrb.mxu2 %v2363_v40 }
 0xc10   :  { %1993 = vmatpush.msrb.mxu2 %v2364_v55 }
 0xc48   :  { %v1293_v3 = vpop.f32.mrf.mxu0 }
 0xc8c   :  { %v1096_v59 = vpop.f32.mrf.mxu2 }
 0xc8d   :  { %v1097_v4 = vadd.f32 %v1096_v59, %v2754_v39 }
 0xc8f   :  { %1099 = vst.msk [vmem:[#allocation3] sm:$0xf] %vm94_vm7, %v1097_v4 }
 0xc96   :  { %v1266_v63 = vld [vmem:[#allocation3] sm:$0xf] }
 0xc97   :  { %v1296_v32 = vadd.f32 %v1293_v3, %v1266_v63 }
 0xc99   :  { %v1300_v33 = vadd.f32 %v1298_v58, %v1296_v32 }
 0xc9b   :  { %v2110_v9 = vmul.f32 -1.442695, %v1300_v33 }
 0xc9d   :  { %2247 = vpow2.f32 %v2110_v9 }
 0xca3   :  { %v2248_v14 = vpop.eup %2247 }
 0xca4   :  { %v1304_v56 = vadd.f32 1.0, %v2248_v14 }
 0xca6   :  { %2249 = vrcp.f32 %v1304_v56  ;;  %v1316_v11 = vand.u32 2147483648, %v1304_v56  ;;  %v1314_v36 = vand.u32 2147483647, %v1304_v56  ;;  %vm1310_vm11 = vweird.f32 %v1304_v56 }
 0xca8   :  { %v1317_v26 = vor.u32 1.1754944e-38, %v1316_v11  ;;  %vm1315_vm14 = vcmp.eq.f32.partialorder %v1314_v36, 8.507059e+37 }
 0xcac   :  { %v2250_v12 = vpop.eup %2249 }
 0xcad   :  { %v1306_v16 = vmul.f32 %v2250_v12, %v1304_v56  ;;  %vm1311_vm10 = vweird.f32 %v2250_v12 }
 0xcae   :  { %vm1312_vm13 = vmor %vm1310_vm11, %vm1311_vm10 }
 0xcaf   :  { %v1307_v20 = vsub.f32 1.0, %v1306_v16 }
 0xcb1   :  { %v1308_v21 = vmul.f32 %v2250_v12, %v1307_v20 }
 0xcb3   :  { %v1309_v44 = vadd.f32 %v2250_v12, %v1308_v21 }
 0xcb5   :  { %v1313_v34 = vsel %vm1312_vm13, %v2250_v12, %v1309_v44 }
 0xcb6   :  { %v1318_v60 = vsel %vm1315_vm14, %v1317_v26, %v1313_v34 }
 0xcb7   :  { %v1325_v24 = vmul.f32 %v1323_v57, %v1318_v60  ;;  %v1332_v42 = vsub.f32 1.0, %v1318_v60  ;;  %v1341_v19 = vmul.f32 %v1339_v41, %v1318_v60 }
 0xcb9   :  { %1327 = vrot.lane.b32.xlu2 %v1325_v24, %s2424_s26 }
 0xd13   :  { %v1328_v7 = vpop.permute.xlu2 %1327 }
 0xd14   :  { %v1330_v31 = vadd.f32 %v1328_v7, %v1296_v32 }
 0xd16   :  { %2251 = vtanh.f32 %v1330_v31 }
 0xd1c   :  { %v2252_v48 = vpop.eup %2251 }
 0xd1d   :  { %1334 = vrot.lane.b32.xlu0 %v2252_v48, %s2421_s30 }
 0xd8f   :  { %v1335_v50 = vpop.permute.xlu0 %1334 }
 0xd90   :  { %v1337_v51 = vmul.f32 %v1335_v50, %v1332_v42 }
 0xd92   :  { %v1342_v0 = vadd.f32 %v1341_v19, %v1337_v51 }
 0xd94   :  { %1344 = vrot.lane.b32.xlu2 %v1342_v0, %s2421_s30 }
 0xdee   :  { %v1345_v8 = vpop.permute.xlu2 %1344 }
 0xdef   :  { %1416 = vst.msk [vmem:[#allocation2] sm:$0xf] %vm64_vm0, %v1345_v8  ;;  %2111 = vmatmul.msk.f32.vlgmr.msra.gmra.mxu1 %vm147_vm1, %v1345_v8 }
 0xdf0   :  { %1717 = vmatpush.msra.mxu1 %v2995_v18 }
 0xdf2   :  { %1718 = vmatpush.msra.mxu1 %v3001_v62 }
 0xdf4   :  { %1719 = vmatpush.msra.mxu1 %v3007_v6 }
 0xdf6   :  { %v3133_v49 = vld [vmem:[#allocation2] sm:$0xf]  ;;  %1720 = vmatpush.msra.mxu1 %v3013_v52 }
 0xdf7   :  { %2114 = vmatmul.msk.f32.vlgmr.msrb.gmra.mxu1 %vm147_vm1, %v3133_v49 }
 0xdf8   :  { %1721 = vmatpush.msra.mxu1 %v3020_v5 }
 0xdfa   :  { %1722 = vmatpush.msra.mxu1 %v3026_v37 }
 0xdfc   :  { %1723 = vmatpush.msra.mxu1 %v3032_v13 }
 0xdfe   :  { %1724 = vmatpush.msra.mxu1 %v3038_v23 }
 0xe6c   :  { %v1365_v2 = vpop.f32.mrf.mxu1 }
 0xe6d   :  { %v3154_v24 = vadd.f32 %v1365_v2, %v2820_v35 }
 0xe6f   :  { %v1368_v31 = vsel %vm423_vm12, %v3154_v24, -inf }
 0xe74   :  { %v1438_v40 = vpop.f32.mrf.mxu1 }
 0xe75   :  { %v1442_v55 = vrot.slane %v1438_v40, 1  ;;  %v1443_v59 = vrot.slane %v1438_v40, 2  ;;  %v1444_v4 = vrot.slane %v1438_v40, 3  ;;  %v1445_v3 = vperm.slane %v1438_v40, 0 }
 0xe76   :  { %v1635_v48 = vadd.f32 %v1438_v40, %v2589_v54 }
 0xe77   :  { %v1453_v63 = vadd.f32 %v1445_v3, %v2565_v22  ;;  %v1447_v32 = vperm.slane %v1443_v59, 0  ;;  %v1446_v58 = vperm.slane %v1442_v55, 0  ;;  %v1448_v33 = vperm.slane %v1444_v4, 0 }
 0xe79   :  { %2253 = vtanh.f32 %v1453_v63  ;;  %v1455_v9 = vadd.f32 %v1447_v32, %v2577_v38  ;;  %v1454_v14 = vadd.f32 %v1446_v58, %v2569_v29  ;;  %v1456_v56 = vadd.f32 %v1448_v33, %v2582_v45 }
 0xe7b   :  { %2255 = vtanh.f32 %v1455_v9 }
 0xe7c   :  { %2257 = vtanh.f32 %v1454_v14 }
 0xe7d   :  { %2259 = vtanh.f32 %v1456_v56 }
 0xe7f   :  { %v2254_v12 = vpop.eup %2253 }
 0xe80   :  { %v1461_v16 = vmul.f32 %v2254_v12, %v2572_v30 }
 0xe81   :  { %v2256_v20 = vpop.eup %2255 }
 0xe82   :  { %v2258_v11 = vpop.eup %2257  ;;  %v1465_v21 = vsel %vm147_vm1, %v1461_v16, 0.0  ;;  %v1463_v36 = vmul.f32 %v2256_v20, %v2572_v30 }
 0xe83   :  { %v2260_v44 = vpop.eup %2259  ;;  %1466 = vadd.xlane.f32.xlu0 %v1465_v21  ;;  %v1462_v26 = vmul.f32 %v2258_v11, %v2572_v30 }
 0xe84   :  { %v1471_v34 = vsel %vm147_vm1, %v1463_v36, 0.0  ;;  %v1464_v60 = vmul.f32 %v2260_v44, %v2572_v30 }
 0xe85   :  { %1472 = vadd.xlane.f32.xlu2 %v1471_v34  ;;  %v1468_v57 = vsel %vm147_vm1, %v1462_v26, 0.0 }
 0xe86   :  { %1469 = vadd.xlane.f32.xlu1 %v1468_v57  ;;  %v1474_v7 = vsel %vm147_vm1, %v1464_v60, 0.0 }
 0xe8b   :  { %1475 = vadd.xlane.f32.xlu0 %v1474_v7 }
 0xe8e   :  { %1369 = vmax.xlane.f32.xlu1 %v1368_v31 }
 0xe9f   :  { %1612 = vrot.lane.b32.xlu0 %v1438_v40, %s2421_s30 }
 0xea7   :  { %1637 = vrot.lane.b32.xlu1 %v1635_v48, %s2422_s17 }
 0xef6   :  { %v1467_v42 = vpop.xlane.xlu0 %1466 }
 0xef7   :  { %v1477_v41 = vrot.slane %v1467_v42, 4 }
 0xef8   :  { %v1473_v50 = vpop.xlane.xlu2 %1472 }
 0xef9   :  { %v1478_v19 = vmax.f32 %v1467_v42, %v1477_v41  ;;  %v1489_v51 = vrot.slane %v1473_v50, 4  ;;  %v1470_v0 = vpop.xlane.xlu1 %1469 }
 0xefa   :  { %v1483_v8 = vrot.slane %v1470_v0, 4 }
 0xefb   :  { %v1479_v2 = vrot.slane %v1478_v19, 2  ;;  %v1490_v55 = vmax.f32 %v1473_v50, %v1489_v51 }
 0xefc   :  { %v1484_v59 = vmax.f32 %v1470_v0, %v1483_v8 }
 0xefd   :  { %v1480_v4 = vmax.f32 %v1478_v19, %v1479_v2  ;;  %v1491_v3 = vrot.slane %v1490_v55, 2 }
 0xefe   :  { %v1485_v63 = vrot.slane %v1484_v59, 2  ;;  %v1476_v32 = vpop.xlane.xlu0 %1475 }
 0xeff   :  { %v1481_v58 = vrot.slane %v1480_v4, 1  ;;  %v1492_v33 = vmax.f32 %v1490_v55, %v1491_v3  ;;  %v1495_v9 = vrot.slane %v1476_v32, 4 }
 0xf00   :  { %v1486_v40 = vmax.f32 %v1484_v59, %v1485_v63 }
 0xf01   :  { %v1482_v14 = vmax.f32 %v1480_v4, %v1481_v58  ;;  %v1493_v56 = vrot.slane %v1492_v33, 1  ;;  %v1496_v12 = vmax.f32 %v1476_v32, %v1495_v9  ;;  %v3162_v16 = vpop.xlane.xlu1 %1369 }
 0xf02   :  { %v1487_v20 = vrot.slane %v1486_v40, 1  ;;  %vm1383_vm15 = vcmp.eq.f32.partialorder %v3154_v24, %v3162_v16 }
 0xf03   :  { %v1501_v11 = vsub.f32 %v1467_v42, %v1482_v14  ;;  %v1494_v21 = vmax.f32 %v1492_v33, %v1493_v56  ;;  %v1497_v36 = vrot.slane %v1496_v12, 2  ;;  %v1384_v44 = vsel %vm1383_vm15, %v2652_v46, 64.0 }
 0xf04   :  { %v1488_v26 = vmax.f32 %v1486_v40, %v1487_v20  ;;  %v1385_v34 = vsel %vm423_vm12, %v1384_v44, inf }
 0xf05   :  { %v1505_v57 = vmul.f32 1.442695, %v1501_v11  ;;  %v1503_v60 = vsub.f32 %v1473_v50, %v1494_v21  ;;  %v1498_v7 = vmax.f32 %v1496_v12, %v1497_v36  ;;  %1386 = vmin.xlane.f32.xlu2 %v1385_v34 }
 0xf06   :  { %v1502_v31 = vsub.f32 %v1470_v0, %v1488_v26 }
 0xf07   :  { %2261 = vpow2.f32 %v1505_v57  ;;  %v1509_v48 = vmul.f32 1.442695, %v1503_v60  ;;  %v1499_v41 = vrot.slane %v1498_v7, 1 }
 0xf08   :  { %v1507_v19 = vmul.f32 1.442695, %v1502_v31 }
 0xf09   :  { %2263 = vpow2.f32 %v1509_v48  ;;  %v1500_v51 = vmax.f32 %v1498_v7, %v1499_v41 }
 0xf0a   :  { %2265 = vpow2.f32 %v1507_v19 }
 0xf0b   :  { %v1504_v42 = vsub.f32 %v1476_v32, %v1500_v51 }
 0xf0d   :  { %v2262_v8 = vpop.eup %2261  ;;  %v1511_v2 = vmul.f32 1.442695, %v1504_v42 }
 0xf0e   :  { %v1513_v55 = vrot.slane %v2262_v8, 4 }
 0xf0f   :  { %v2264_v59 = vpop.eup %2263  ;;  %2267 = vpow2.f32 %v1511_v2 }
 0xf10   :  { %v2266_v4 = vpop.eup %2265  ;;  %v1514_v3 = vadd.f32 %v2262_v8, %v1513_v55  ;;  %v1525_v63 = vrot.slane %v2264_v59, 4 }
 0xf11   :  { %v1519_v50 = vrot.slane %v2266_v4, 4 }
 0xf12   :  { %v1515_v58 = vrot.slane %v1514_v3, 2  ;;  %v1526_v33 = vadd.f32 %v2264_v59, %v1525_v63 }
 0xf13   :  { %v1520_v0 = vadd.f32 %v2266_v4, %v1519_v50 }
 0xf14   :  { %v1516_v9 = vadd.f32 %v1515_v58, %v1514_v3  ;;  %v1527_v40 = vrot.slane %v1526_v33, 2 }
 0xf15   :  { %v2268_v14 = vpop.eup %2267  ;;  %v1521_v56 = vrot.slane %v1520_v0, 2 }
 0xf16   :  { %v1517_v12 = vrot.slane %v1516_v9, 1  ;;  %v1528_v20 = vadd.f32 %v1527_v40, %v1526_v33  ;;  %v1531_v11 = vrot.slane %v2268_v14, 4 }
 0xf17   :  { %v1522_v32 = vadd.f32 %v1521_v56, %v1520_v0 }
 0xf18   :  { %v1518_v21 = vadd.f32 %v1517_v12, %v1516_v9  ;;  %v1529_v36 = vrot.slane %v1528_v20, 1  ;;  %v1532_v44 = vadd.f32 %v2268_v14, %v1531_v11 }
 0xf19   :  { %v1523_v26 = vrot.slane %v1522_v32, 1 }
 0xf1a   :  { %2269 = vrcp.f32 %v1518_v21  ;;  %v1530_v34 = vadd.f32 %v1529_v36, %v1528_v20  ;;  %v1533_v57 = vrot.slane %v1532_v44, 2 }
 0xf1b   :  { %v1524_v60 = vadd.f32 %v1523_v26, %v1522_v32 }
 0xf1c   :  { %2271 = vrcp.f32 %v1530_v34  ;;  %v1534_v7 = vadd.f32 %v1533_v57, %v1532_v44 }
 0xf1d   :  { %2273 = vrcp.f32 %v1524_v60 }
 0xf1e   :  { %v1535_v31 = vrot.slane %v1534_v7, 1 }
 0xf20   :  { %v2270_v48 = vpop.eup %2269  ;;  %v1536_v41 = vadd.f32 %v1535_v31, %v1534_v7 }
 0xf21   :  { %v1541_v19 = vmul.f32 0.125, %v2270_v48 }
 0xf22   :  { %v2272_v51 = vpop.eup %2271  ;;  %2275 = vrcp.f32 %v1536_v41 }
 0xf23   :  { %v2274_v42 = vpop.eup %2273  ;;  %v1545_v2 = vmul.f32 %v2262_v8, %v1541_v19  ;;  %v1543_v55 = vmul.f32 0.125, %v2272_v51 }
 0xf24   :  { %v1542_v3 = vmul.f32 0.125, %v2274_v42 }
 0xf25   :  { %v1547_v63 = vmul.f32 %v2264_v59, %v1543_v55  ;;  %v1549_v50 = vmul.f32 %v2943_v17, %v1545_v2 }
 0xf26   :  { %v1546_v58 = vmul.f32 %v2266_v4, %v1542_v3 }
 0xf27   :  { %v1551_v33 = vmul.f32 %v2949_v15, %v1547_v63  ;;  %v1553_v0 = vsel %vm70_vm2, %v1549_v50, 0.0 }
 0xf28   :  { %v2276_v9 = vpop.eup %2275  ;;  %v1550_v40 = vmul.f32 %v2956_v47, %v1546_v58  ;;  %v1554_v56 = vrot.slane %v1553_v0, 4 }
 0xf29   :  { %v1544_v12 = vmul.f32 0.125, %v2276_v9  ;;  %v1567_v20 = vsel %vm70_vm2, %v1551_v33, 0.0 }
 0xf2a   :  { %v1555_v11 = vadd.f32 %v1554_v56, %v1553_v0  ;;  %v1560_v8 = vsel %vm70_vm2, %v1550_v40, 0.0  ;;  %v1568_v32 = vrot.slane %v1567_v20, 4 }
 0xf2b   :  { %v1548_v21 = vmul.f32 %v2268_v14, %v1544_v12  ;;  %v1561_v59 = vrot.slane %v1560_v8, 4  ;;  %v1613_v12 = vpop.permute.xlu0 %1612 }
 0xf2c   :  { %v1556_v36 = vrot.slane %v1555_v11, 2  ;;  %v1569_v17 = vadd.f32 %v1568_v32, %v1567_v20 }
 0xf2d   :  { %v1552_v4 = vmul.f32 %v2964_v10, %v1548_v21  ;;  %v1562_v15 = vadd.f32 %v1561_v59, %v1560_v8 }
 0xf2e   :  { %v1557_v44 = vadd.f32 %v1556_v36, %v1555_v11  ;;  %v1570_v26 = vrot.slane %v1569_v17, 2 }
 0xf2f   :  { %v1563_v34 = vrot.slane %v1562_v15, 2  ;;  %v1574_v47 = vsel %vm70_vm2, %v1552_v4, 0.0 }
 0xf30   :  { %v1571_v57 = vadd.f32 %v1570_v26, %v1569_v17  ;;  %v1575_v60 = vrot.slane %v1574_v47, 4  ;;  %v1558_v31 = vrot.slane %v1557_v44, 1  ;;  %v1638_v17 = vpop.permute.xlu1 %1637 }
 0xf31   :  { %v1564_v7 = vadd.f32 %v1563_v34, %v1562_v15 }
 0xf32   :  { %v1576_v48 = vadd.f32 %v1575_v60, %v1574_v47  ;;  %v1572_v19 = vrot.slane %v1571_v57, 1  ;;  %v1559_v42 = vadd.f32 %v1558_v31, %v1557_v44 }
 0xf33   :  { %v1565_v41 = vrot.slane %v1564_v7, 1 }
 0xf34   :  { %v1577_v51 = vrot.slane %v1576_v48, 2  ;;  %v1573_v55 = vadd.f32 %v1572_v19, %v1571_v57 }
 0xf35   :  { %v1566_v14 = vadd.f32 %v1565_v41, %v1564_v7 }
 0xf36   :  { %v1578_v2 = vadd.f32 %v1577_v51, %v1576_v48 }
 0xf37   :  { %v1586_v10 = vsel %vm317_vm4, %v1566_v14, %v1559_v42 }
 0xf38   :  { %v1579_v3 = vrot.slane %v1578_v2, 1  ;;  %v1587_v50 = vsel %vm319_vm5, %v1573_v55, %v1586_v10 }
 0xf3a   :  { %v1580_v63 = vadd.f32 %v1579_v3, %v1578_v2 }
 0xf3c   :  { %v1588_v58 = vsel %vm321_vm6, %v1580_v63, %v1587_v50 }
 0xf3d   :  { %2115 = vmatmul.msk.f32.vlgmr.msra.gmra.mxu2 %vm70_vm2, %v1588_v58 }
 0xf78   :  { %v1387_v33 = vpop.xlane.xlu2 %1386 }
 0xf79   :  { %vm1388_vm3 = vcmp.eq.f32.partialorder %v2652_v46, %v1387_v33 }
 0xf7a   :  { %v2112_v0 = vsel %vm1388_vm3, 1.0, %v2423_v1 }
 0xf7b   :  { %2113 = vmatmul.msk.f32.vlgmr.msra.gmra.mxu3 %vm70_vm2, %v2112_v0 }
 0xf7c   :  { %2032 = vmatpush.msra.mxu3 %v2995_v18 }
 0xf7e   :  { %2033 = vmatpush.msra.mxu3 %v3001_v62 }
 0xf80   :  { %2034 = vmatpush.msra.mxu3 %v3007_v6 }
 0xf82   :  { %2035 = vmatpush.msra.mxu3 %v3013_v52 }
 0xf84   :  { %2036 = vmatpush.msra.mxu3 %v3020_v5 }
 0xf86   :  { %2037 = vmatpush.msra.mxu3 %v3026_v37 }
 0xf88   :  { %2038 = vmatpush.msra.mxu3 %v3032_v13 }
 0xf8a   :  { %2039 = vmatpush.msra.mxu3 %v3038_v23 }
 0xfc0   :  { %v1608_v18 = vpop.f32.mrf.mxu2 }
 0xffe   :  { %v1411_v9 = vpop.f32.mrf.mxu3 }
 0xfff   :  { %v1412_v40 = vadd.f32 %v1411_v9, %v2754_v39 }
0x1001   :  { %1414 = vst.msk [vmem:[#allocation3] sm:$0xf] %vm94_vm7, %v1412_v40 }
0x1008   :  { %v1581_v56 = vld [vmem:[#allocation3] sm:$0xf] }
0x1009   :  { %v1611_v62 = vadd.f32 %v1608_v18, %v1581_v56 }
0x100b   :  { %v1615_v6 = vadd.f32 %v1613_v12, %v1611_v62 }
0x100d   :  { %v2116_v20 = vmul.f32 -1.442695, %v1615_v6 }
0x100f   :  { %2277 = vpow2.f32 %v2116_v20 }
0x1015   :  { %v2278_v52 = vpop.eup %2277 }
0x1016   :  { %v1619_v5 = vadd.f32 1.0, %v2278_v52 }
0x1018   :  { %2279 = vrcp.f32 %v1619_v5  ;;  %v1631_v8 = vand.u32 2147483648, %v1619_v5  ;;  %v1629_v32 = vand.u32 2147483647, %v1619_v5  ;;  %vm1625_vm9 = vweird.f32 %v1619_v5 }
0x101a   :  { %v1632_v59 = vor.u32 1.1754944e-38, %v1631_v8  ;;  %vm1630_vm11 = vcmp.eq.f32.partialorder %v1629_v32, 8.507059e+37 }
0x101e   :  { %v2280_v37 = vpop.eup %2279 }
0x101f   :  { %v1621_v11 = vmul.f32 %v2280_v37, %v1619_v5  ;;  %vm1626_vm8 = vweird.f32 %v2280_v37 }
0x1020   :  { %vm1627_vm10 = vmor %vm1625_vm9, %vm1626_vm8 }
0x1021   :  { %v1622_v13 = vsub.f32 1.0, %v1621_v11 }
0x1023   :  { %v1623_v23 = vmul.f32 %v2280_v37, %v1622_v13 }
0x1025   :  { %v1624_v21 = vadd.f32 %v2280_v37, %v1623_v23 }
0x1027   :  { %v1628_v36 = vsel %vm1627_vm10, %v2280_v37, %v1624_v21 }
0x1028   :  { %v1633_v4 = vsel %vm1630_vm11, %v1632_v59, %v1628_v36 }
0x1029   :  { %v1640_v15 = vmul.f32 %v1638_v17, %v1633_v4  ;;  %v1647_v57 = vsub.f32 1.0, %v1633_v4 }
0x102b   :  { %1642 = vrot.lane.b32.xlu2 %v1640_v15, %s2424_s26 }
0x1085   :  { %v1643_v44 = vpop.permute.xlu2 %1642 }
0x1086   :  { %v1645_v26 = vadd.f32 %v1643_v44, %v1611_v62 }
0x1088   :  { %2281 = vtanh.f32 %v1645_v26 }
0x108e   :  { %v2282_v34 = vpop.eup %2281 }
0x108f   :  { %1649 = vrot.lane.b32.xlu0 %v2282_v34, %s2421_s30 }
0x1097   :  { %1653 = vrot.lane.b32.xlu0 %v3133_v49, %s2422_s17 }
0x1101   :  { %v1650_v47 = vpop.permute.xlu0 %1649 }
0x1102   :  { %v1652_v7 = vmul.f32 %v1650_v47, %v1647_v57 }
0x1109   :  { %v1654_v60 = vpop.permute.xlu0 %1653 }
0x110a   :  { %v1656_v31 = vmul.f32 %v1654_v60, %v1633_v4 }
0x110c   :  { %v1657_v48 = vadd.f32 %v1656_v31, %v1652_v7 }
0x110e   :  { %1659 = vrot.lane.b32.xlu2 %v1657_v48, %s2421_s30 }
0x1168   :  { %v1660_v41 = vpop.permute.xlu2 %1659 }
0x1169   :  { %1731 = vst.msk [vmem:[#allocation2] sm:$0xf] %vm64_vm0, %v1660_v41  ;;  %2117 = vmatmul.msk.f32.vlgmr.msra.gmra.mxu0 %vm147_vm1, %v1660_v41 }
0x1170   :  { %v3200_v19 = vld [vmem:[#allocation2] sm:$0xf] }
0x1171   :  { %2120 = vmatmul.msk.f32.vlgmr.msrb.gmra.mxu3 %vm147_vm1, %v3200_v19 }
0x11e6   :  { %v1680_v12 = vpop.f32.mrf.mxu0 }
0x11e7   :  { %v3216_v20 = vadd.f32 %v1680_v12, %v2820_v35 }
0x11e9   :  { %v1683_v5 = vsel %vm423_vm12, %v3216_v20, -inf }
0x11f4   :  { %v1753_v51 = vpop.f32.mrf.mxu3 }
0x11f5   :  { %v1757_v49 = vrot.slane %v1753_v51, 1  ;;  %v1758_v14 = vrot.slane %v1753_v51, 2  ;;  %v1759_v42 = vrot.slane %v1753_v51, 3  ;;  %v1760_v2 = vperm.slane %v1753_v51, 0 }
0x11f6   :  { %v1950_v37 = vadd.f32 %v1753_v51, %v2589_v54 }
0x11f7   :  { %v1768_v55 = vadd.f32 %v1760_v2, %v2565_v22  ;;  %v1762_v3 = vperm.slane %v1758_v14, 0  ;;  %v1761_v10 = vperm.slane %v1757_v49, 0  ;;  %v1763_v63 = vperm.slane %v1759_v42, 0 }
0x11f9   :  { %2283 = vtanh.f32 %v1768_v55  ;;  %v1770_v50 = vadd.f32 %v1762_v3, %v2577_v38  ;;  %v1769_v58 = vadd.f32 %v1761_v10, %v2569_v29  ;;  %v1771_v33 = vadd.f32 %v1763_v63, %v2582_v45 }
0x11fb   :  { %2285 = vtanh.f32 %v1770_v50 }
0x11fc   :  { %2287 = vtanh.f32 %v1769_v58 }
0x11fd   :  { %2289 = vtanh.f32 %v1771_v33 }
0x11ff   :  { %v2284_v0 = vpop.eup %2283 }
0x1200   :  { %v1776_v9 = vmul.f32 %v2284_v0, %v2572_v30 }
0x1201   :  { %v2286_v40 = vpop.eup %2285 }
0x1202   :  { %v2288_v18 = vpop.eup %2287  ;;  %v1780_v22 = vsel %vm147_vm1, %v1776_v9, 0.0  ;;  %v1778_v56 = vmul.f32 %v2286_v40, %v2572_v30 }
0x1203   :  { %v2290_v62 = vpop.eup %2289  ;;  %1781 = vadd.xlane.f32.xlu1 %v1780_v22  ;;  %v1777_v38 = vmul.f32 %v2288_v18, %v2572_v30 }
0x1204   :  { %v1786_v29 = vsel %vm147_vm1, %v1778_v56, 0.0  ;;  %v1779_v6 = vmul.f32 %v2290_v62, %v2572_v30 }
0x1205   :  { %1787 = vadd.xlane.f32.xlu2 %v1786_v29  ;;  %v1783_v45 = vsel %vm147_vm1, %v1777_v38, 0.0 }
0x1206   :  { %1784 = vadd.xlane.f32.xlu0 %v1783_v45  ;;  %v1789_v52 = vsel %vm147_vm1, %v1779_v6, 0.0 }
0x120b   :  { %1790 = vadd.xlane.f32.xlu1 %v1789_v52 }
0x120d   :  { %1684 = vmax.xlane.f32.xlu2 %v1683_v5 }
0x1224   :  { %1927 = vrot.lane.b32.xlu1 %v1753_v51, %s2421_s30 }
0x1225   :  { %1952 = vrot.lane.b32.xlu2 %v1950_v37, %s2422_s17 }
0x1276   :  { %v1782_v11 = vpop.xlane.xlu1 %1781 }
0x1277   :  { %v1792_v13 = vrot.slane %v1782_v11, 4 }
0x1278   :  { %v1788_v8 = vpop.xlane.xlu2 %1787 }
0x1279   :  { %v1793_v30 = vmax.f32 %v1782_v11, %v1792_v13  ;;  %v1804_v23 = vrot.slane %v1788_v8, 4  ;;  %v1785_v32 = vpop.xlane.xlu0 %1784 }
0x127a   :  { %v1798_v21 = vrot.slane %v1785_v32, 4 }
0x127b   :  { %v1794_v59 = vrot.slane %v1793_v30, 2  ;;  %v1805_v36 = vmax.f32 %v1788_v8, %v1804_v23 }
0x127c   :  { %v1799_v17 = vmax.f32 %v1785_v32, %v1798_v21 }
0x127d   :  { %v1795_v4 = vmax.f32 %v1793_v30, %v1794_v59  ;;  %v1806_v15 = vrot.slane %v1805_v36, 2 }
0x127e   :  { %v1800_v44 = vrot.slane %v1799_v17, 2  ;;  %v1791_v26 = vpop.xlane.xlu1 %1790 }
0x127f   :  { %v1796_v34 = vrot.slane %v1795_v4, 1  ;;  %v1807_v54 = vmax.f32 %v1805_v36, %v1806_v15  ;;  %v1810_v47 = vrot.slane %v1791_v26, 4 }
0x1280   :  { %v1801_v57 = vmax.f32 %v1799_v17, %v1800_v44  ;;  %v3224_v60 = vpop.xlane.xlu2 %1684 }
0x1281   :  { %v1797_v7 = vmax.f32 %v1795_v4, %v1796_v34  ;;  %v1808_v31 = vrot.slane %v1807_v54, 1  ;;  %v1811_v48 = vmax.f32 %v1791_v26, %v1810_v47  ;;  %vm1698_vm13 = vcmp.eq.f32.partialorder %v3216_v20, %v3224_v60 }
0x1282   :  { %v1802_v41 = vrot.slane %v1801_v57, 1  ;;  %v1699_v2 = vsel %vm1698_vm13, %v2652_v46, 64.0 }
0x1283   :  { %v1816_v51 = vsub.f32 %v1782_v11, %v1797_v7  ;;  %v1809_v49 = vmax.f32 %v1807_v54, %v1808_v31  ;;  %v1812_v14 = vrot.slane %v1811_v48, 2  ;;  %v1700_v50 = vsel %vm423_vm12, %v1699_v2, inf }
0x1284   :  { %v1803_v42 = vmax.f32 %v1801_v57, %v1802_v41  ;;  %1701 = vmin.xlane.f32.xlu0 %v1700_v50 }
0x1285   :  { %v1820_v55 = vmul.f32 1.442695, %v1816_v51  ;;  %v1818_v3 = vsub.f32 %v1788_v8, %v1809_v49  ;;  %v1813_v10 = vmax.f32 %v1811_v48, %v1812_v14 }
0x1286   :  { %v1817_v63 = vsub.f32 %v1785_v32, %v1803_v42  ;;  %v2365_v42 = vld [vmem:[%s3318_s0] sm:$0xff] }
0x1287   :  { %2291 = vpow2.f32 %v1820_v55  ;;  %v1824_v58 = vmul.f32 1.442695, %v1818_v3  ;;  %v1814_v33 = vrot.slane %v1813_v10, 1  ;;  %v2366_v3 = vld [vmem:[%s3318_s0 + $0x10] sm:$0xff] }
0x1288   :  { %v1822_v0 = vmul.f32 1.442695, %v1817_v63 }
0x1289   :  { %2293 = vpow2.f32 %v1824_v58  ;;  %v1815_v9 = vmax.f32 %v1813_v10, %v1814_v33  ;;  %v2367_v58 = vld [vmem:[%s3318_s0 + $0x8] sm:$0xff] }
0x128a   :  { %2295 = vpow2.f32 %v1822_v0 }
0x128b   :  { %v1819_v40 = vsub.f32 %v1791_v26, %v1815_v9 }
0x128d   :  { %v2292_v18 = vpop.eup %2291  ;;  %v1826_v22 = vmul.f32 1.442695, %v1819_v40 }
0x128e   :  { %v1828_v56 = vrot.slane %v2292_v18, 4 }
0x128f   :  { %v2294_v62 = vpop.eup %2293  ;;  %2297 = vpow2.f32 %v1826_v22 }
0x1290   :  { %v2296_v38 = vpop.eup %2295  ;;  %v1829_v29 = vadd.f32 %v2292_v18, %v1828_v56  ;;  %v1840_v12 = vrot.slane %v2294_v62, 4 }
0x1291   :  { %v1834_v45 = vrot.slane %v2296_v38, 4 }
0x1292   :  { %v1830_v6 = vrot.slane %v1829_v29, 2  ;;  %v1841_v52 = vadd.f32 %v2294_v62, %v1840_v12 }
0x1293   :  { %v1835_v5 = vadd.f32 %v2296_v38, %v1834_v45  ;;  %v2368_v45 = vld [vmem:[%s3318_s0 + $0x18] sm:$0xff]  ;;  %s2425_s0 = smov [#allocation6]  }
0x1294   :  { %v1831_v37 = vadd.f32 %v1830_v6, %v1829_v29  ;;  %v1842_v11 = vrot.slane %v1841_v52, 2 }
0x1295   :  { %v2298_v13 = vpop.eup %2297  ;;  %v1836_v8 = vrot.slane %v1835_v5, 2 }
0x1296   :  { %v1832_v30 = vrot.slane %v1831_v37, 1  ;;  %v1843_v23 = vadd.f32 %v1842_v11, %v1841_v52  ;;  %v1846_v32 = vrot.slane %v2298_v13, 4 }
0x1297   :  { %v1837_v21 = vadd.f32 %v1836_v8, %v1835_v5 }
0x1298   :  { %v1833_v59 = vadd.f32 %v1832_v30, %v1831_v37  ;;  %v1844_v36 = vrot.slane %v1843_v23, 1  ;;  %v1847_v17 = vadd.f32 %v2298_v13, %v1846_v32 }
0x1299   :  { %v1838_v4 = vrot.slane %v1837_v21, 1 }
0x129a   :  { %2299 = vrcp.f32 %v1833_v59  ;;  %v1845_v15 = vadd.f32 %v1844_v36, %v1843_v23  ;;  %v1848_v44 = vrot.slane %v1847_v17, 2 }
0x129b   :  { %v1839_v26 = vadd.f32 %v1838_v4, %v1837_v21 }
0x129c   :  { %2301 = vrcp.f32 %v1845_v15  ;;  %v1849_v34 = vadd.f32 %v1848_v44, %v1847_v17 }
0x129d   :  { %2303 = vrcp.f32 %v1839_v26 }
0x129e   :  { %v1850_v54 = vrot.slane %v1849_v34, 1 }
0x12a0   :  { %v2300_v47 = vpop.eup %2299  ;;  %v1851_v57 = vadd.f32 %v1850_v54, %v1849_v34 }
0x12a1   :  { %v1856_v7 = vmul.f32 0.125, %v2300_v47 }
0x12a2   :  { %v2302_v31 = vpop.eup %2301  ;;  %2305 = vrcp.f32 %v1851_v57 }
0x12a3   :  { %v2304_v48 = vpop.eup %2303  ;;  %v1860_v41 = vmul.f32 %v2292_v18, %v1856_v7  ;;  %v1858_v51 = vmul.f32 0.125, %v2302_v31 }
0x12a4   :  { %v1857_v49 = vmul.f32 0.125, %v2304_v48 }
0x12a5   :  { %v1862_v14 = vmul.f32 %v2294_v62, %v1858_v51  ;;  %v1864_v2 = vmul.f32 %v2365_v42, %v1860_v41 }
0x12a6   :  { %v1861_v55 = vmul.f32 %v2296_v38, %v1857_v49 }
0x12a7   :  { %v1866_v10 = vmul.f32 %v2366_v3, %v1862_v14  ;;  %v1868_v63 = vsel %vm70_vm2, %v1864_v2, 0.0  ;;  %v1928_v2 = vpop.permute.xlu1 %1927 }
0x12a8   :  { %v2306_v50 = vpop.eup %2305  ;;  %v1865_v33 = vmul.f32 %v2367_v58, %v1861_v55  ;;  %v1869_v0 = vrot.slane %v1868_v63, 4 }
0x12a9   :  { %v1859_v9 = vmul.f32 0.125, %v2306_v50  ;;  %v1882_v40 = vsel %vm70_vm2, %v1866_v10, 0.0 }
0x12aa   :  { %v1870_v18 = vadd.f32 %v1869_v0, %v1868_v63  ;;  %v1875_v22 = vsel %vm70_vm2, %v1865_v33, 0.0  ;;  %v1883_v56 = vrot.slane %v1882_v40, 4 }
0x12ab   :  { %v1863_v62 = vmul.f32 %v2298_v13, %v1859_v9  ;;  %v1876_v38 = vrot.slane %v1875_v22, 4 }
0x12ac   :  { %v1871_v29 = vrot.slane %v1870_v18, 2  ;;  %v1884_v12 = vadd.f32 %v1883_v56, %v1882_v40 }
0x12ad   :  { %v1867_v6 = vmul.f32 %v2368_v45, %v1863_v62  ;;  %v1877_v52 = vadd.f32 %v1876_v38, %v1875_v22  ;;  %v1953_v62 = vpop.permute.xlu2 %1952 }
0x12ae   :  { %v1872_v5 = vadd.f32 %v1871_v29, %v1870_v18  ;;  %v1885_v37 = vrot.slane %v1884_v12, 2 }
0x12af   :  { %v1878_v11 = vrot.slane %v1877_v52, 2  ;;  %v1889_v8 = vsel %vm70_vm2, %v1867_v6, 0.0 }
0x12b0   :  { %v1886_v30 = vadd.f32 %v1885_v37, %v1884_v12  ;;  %v1890_v23 = vrot.slane %v1889_v8, 4  ;;  %v1873_v21 = vrot.slane %v1872_v5, 1 }
0x12b1   :  { %v1879_v32 = vadd.f32 %v1878_v11, %v1877_v52 }
0x12b2   :  { %v1891_v59 = vadd.f32 %v1890_v23, %v1889_v8  ;;  %v1887_v36 = vrot.slane %v1886_v30, 1  ;;  %v1874_v15 = vadd.f32 %v1873_v21, %v1872_v5  ;;  %v427_v23 = vsub.f32 %v2825_v43, %v2834_v25 }
0x12b3   :  { %v1880_v13 = vrot.slane %v1879_v32, 1 }
0x12b4   :  { %v1892_v17 = vrot.slane %v1891_v59, 2  ;;  %v1888_v26 = vadd.f32 %v1887_v36, %v1886_v30 }
0x12b5   :  { %v1881_v4 = vadd.f32 %v1880_v13, %v1879_v32  ;;  %v428_v32 = vmul.f32 1.442695, %v427_v23 }
0x12b6   :  { %v1893_v44 = vadd.f32 %v1892_v17, %v1891_v59 }
0x12b7   :  { %v1901_v54 = vsel %vm317_vm4, %v1881_v4, %v1874_v15 }
0x12b8   :  { %v1894_v34 = vrot.slane %v1893_v44, 1  ;;  %v1902_v57 = vsel %vm319_vm5, %v1888_v26, %v1901_v54 }
0x12ba   :  { %v1895_v47 = vadd.f32 %v1894_v34, %v1893_v44 }
0x12bc   :  { %v1903_v7 = vsel %vm321_vm6, %v1895_v47, %v1902_v57 }
0x12bd   :  { %2121 = vmatmul.msk.f32.vlgmr.msrb.gmra.mxu0 %vm70_vm2, %v1903_v7 }
0x12f7   :  { %v1702_v31 = vpop.xlane.xlu0 %1701 }
0x12f8   :  { %vm1703_vm14 = vcmp.eq.f32.partialorder %v2652_v46, %v1702_v31 }
0x12f9   :  { %v2118_v48 = vsel %vm1703_vm14, 1.0, %v2423_v1 }
0x12fa   :  { %2119 = vmatmul.msk.f32.vlgmr.msra.gmra.mxu1 %vm70_vm2, %v2118_v48 }
0x133a   :  { %v1923_v49 = vpop.f32.mrf.mxu0 }
0x1377   :  { %v1726_v41 = vpop.f32.mrf.mxu1 }
0x1378   :  { %v1727_v51 = vadd.f32 %v1726_v41, %v2754_v39 }
0x137a   :  { %1729 = vst.msk [vmem:[#allocation3] sm:$0xf] %vm94_vm7, %v1727_v51  ;;  %v741_v51 = vsub.f32 %v2926_v53, %v2934_v27 }
0x1381   :  { %v1896_v14 = vld [vmem:[#allocation3] sm:$0xf] }
0x1382   :  { %v1926_v42 = vadd.f32 %v1923_v49, %v1896_v14  ;;  %v742_v49 = vmul.f32 1.442695, %v741_v51 }
0x1384   :  { %v1930_v55 = vadd.f32 %v1928_v2, %v1926_v42 }
0x1386   :  { %v2122_v3 = vmul.f32 -1.442695, %v1930_v55 }
0x1388   :  { %2307 = vpow2.f32 %v2122_v3 }
0x138e   :  { %v2308_v10 = vpop.eup %2307 }
0x138f   :  { %v1934_v63 = vadd.f32 1.0, %v2308_v10 }
0x1391   :  { %2309 = vrcp.f32 %v1934_v63  ;;  %v1946_v0 = vand.u32 2147483648, %v1934_v63  ;;  %v1944_v40 = vand.u32 2147483647, %v1934_v63  ;;  %vm1940_vm5 = vweird.f32 %v1934_v63 }
0x1393   :  { %v1947_v22 = vor.u32 1.1754944e-38, %v1946_v0  ;;  %vm1945_vm15 = vcmp.eq.f32.partialorder %v1944_v40, 8.507059e+37 }
0x1397   :  { %v2310_v50 = vpop.eup %2309 }
0x1398   :  { %v1936_v58 = vmul.f32 %v2310_v50, %v1934_v63  ;;  %vm1941_vm4 = vweird.f32 %v2310_v50 }
0x1399   :  { %vm1942_vm6 = vmor %vm1940_vm5, %vm1941_vm4 }
0x139a   :  { %v1937_v33 = vsub.f32 1.0, %v1936_v58 }
0x139c   :  { %v1938_v9 = vmul.f32 %v2310_v50, %v1937_v33 }
0x139e   :  { %v1939_v18 = vadd.f32 %v2310_v50, %v1938_v9 }
0x13a0   :  { %v1943_v56 = vsel %vm1942_vm6, %v2310_v50, %v1939_v18 }
0x13a1   :  { %v1948_v38 = vsel %vm1945_vm15, %v1947_v22, %v1943_v56 }
0x13a2   :  { %v1955_v29 = vmul.f32 %v1953_v62, %v1948_v38  ;;  %v1962_v5 = vsub.f32 1.0, %v1948_v38 }
0x13a4   :  { %1957 = vrot.lane.b32.xlu0 %v1955_v29, %s2424_s26 }
0x13ac   :  { %1968 = vrot.lane.b32.xlu0 %v3200_v19, %s2422_s17  ;;  %v1371_v19 = vsub.f32 %v3154_v24, %v3162_v16 }
0x13ae   :  { %v1372_v21 = vmul.f32 1.442695, %v1371_v19 }
0x1416   :  { %v1958_v12 = vpop.permute.xlu0 %1957 }
0x1417   :  { %v1960_v45 = vadd.f32 %v1958_v12, %v1926_v42 }
0x1419   :  { %2311 = vtanh.f32 %v1960_v45 }
0x141a   :  { %2313 = vpow2.f32 %v428_v32 }
0x141b   :  { %2315 = vpow2.f32 %v1372_v21 }
0x141e   :  { %v1969_v52 = vpop.permute.xlu0 %1968 }
0x141f   :  { %v2312_v6 = vpop.eup %2311  ;;  %v1971_v11 = vmul.f32 %v1969_v52, %v1948_v38 }
0x1420   :  { %1964 = vrot.lane.b32.xlu1 %v2312_v6, %s2421_s30  ;;  %v2314_v59 = vpop.eup %2313 }
0x1421   :  { %v430_v13 = vsel %vm423_vm12, %v2314_v59, 0.0  ;;  %v2316_v36 = vpop.eup %2315 }
0x1422   :  { %v1374_v17 = vsel %vm423_vm12, %v2316_v36, 0.0 }
0x1492   :  { %v1965_v37 = vpop.permute.xlu1 %1964 }
0x1493   :  { %v1967_v8 = vmul.f32 %v1965_v37, %v1962_v5 }
0x1495   :  { %v1972_v30 = vadd.f32 %v1971_v11, %v1967_v8 }
0x1497   :  { %1974 = vrot.lane.b32.xlu2 %v1972_v30, %s2421_s30  ;;  %s2067_s30 = sshll.u32 %s2425_s0, 4  ;;  %s2068_s30 = int_to_ptr.vmem [resolvable:$true] %s2067_s30 }
0x14c0   :  { %431 = vadd.xlane.f32.xlu2 %v430_v13 }
0x14c8   :  { %1375 = vadd.xlane.f32.xlu2 %v1374_v17 }
0x14f1   :  { %v1975_v4 = vpop.permute.xlu2 %1974 }
0x14f2   :  { %2046 = vst.msk [vmem:[#allocation2] sm:$0xf] %vm64_vm0, %v1975_v4  ;;  %2123 = vmatmul.msk.f32.vlgmr.msrb.gmra.mxu2 %vm147_vm1, %v1975_v4 }
0x14f9   :  { %v2047_v15 = vld [vmem:[#allocation2] sm:$0xf] }
0x14fa   :  { %2048 = vst.msk [vmem:[#allocation6] sm:$0xf] %vm64_vm0, %v2047_v15 }
0x14fb   :  { %2072 = dma.vmem_to_hbm [thread:$0]  %s2068_s30, 64, %s2070_s29, [#allocation7]  }
0x1533   :  { %v432_v44 = vpop.xlane.xlu2 %431 }
0x1534   :  { %2317 = vlog2.f32 %v432_v44 }
0x153a   :  { %v2318_v26 = vpop.eup %2317 }
0x153b   :  { %v434_v34 = vmul.f32 0.6931472, %v2318_v26  ;;  %v1376_v54 = vpop.xlane.xlu2 %1375 }
0x153c   :  { %2319 = vlog2.f32 %v1376_v54 }
0x153d   :  { %v435_v47 = vadd.f32 %v434_v34, %v2834_v25  ;;  %2321 = vpow2.f32 %v742_v49 }
0x153f   :  { %v436_v57 = vsub.f32 %v2825_v43, %v435_v47  ;;  %v1686_v43 = vsub.f32 %v3216_v20, %v3224_v60 }
0x1541   :  { %437 = vst.msk [vmem:[#allocation4] sm:$0xf] %vm423_vm12, %v436_v57 }
0x1542   :  { %v2320_v7 = vpop.eup %2319 }
0x1543   :  { %v1378_v31 = vmul.f32 0.6931472, %v2320_v7 }
0x1545   :  { %v1379_v48 = vadd.f32 %v1378_v31, %v3162_v16  ;;  %v1687_v16 = vmul.f32 1.442695, %v1686_v43 }
0x1547   :  { %v1380_v41 = vsub.f32 %v3154_v24, %v1379_v48  ;;  %v2322_v24 = vpop.eup %2321  ;;  %2323 = vpow2.f32 %v1687_v16 }
0x1548   :  { %v744_v2 = vsel %vm423_vm12, %v2322_v24, 0.0 }
0x1549   :  { %1382 = vst.msk [vmem:[#allocation4 + $0xc] sm:$0xf] %vm423_vm12, %v1380_v41 }
0x154d   :  { %v2324_v55 = vpop.eup %2323 }
0x154e   :  { %v1689_v3 = vsel %vm423_vm12, %v2324_v55, 0.0 }
0x1575   :  { %v1995_v14 = vpop.f32.mrf.mxu2 }
0x1576   :  { %v3278_v42 = vadd.f32 %v1995_v14, %v2820_v35  ;;  %v1056_v35 = vsub.f32 %v3057_v28, %v3066_v61 }
0x1578   :  { %v1998_v25 = vsel %vm423_vm12, %v3278_v42, -inf  ;;  %v1057_v10 = vmul.f32 1.442695, %v1056_v35 }
0x1579   :  { %1999 = vmax.xlane.f32.xlu1 %v1998_v25 }
0x157a   :  { %2325 = vpow2.f32 %v1057_v10 }
0x1580   :  { %v2326_v9 = vpop.eup %2325 }
0x1581   :  { %745 = vadd.xlane.f32.xlu1 %v744_v2  ;;  %v1059_v18 = vsel %vm423_vm12, %v2326_v9, 0.0 }
0x1589   :  { %1690 = vadd.xlane.f32.xlu1 %v1689_v3 }
0x15ec   :  { %v2000_v63 = vpop.xlane.xlu1 %1999 }
0x15ed   :  { %vm2013_vm0 = vcmp.eq.f32.partialorder %v3278_v42, %v2000_v63  ;;  %v2001_v50 = vsub.f32 %v3278_v42, %v2000_v63 }
0x15ee   :  { %v2014_v58 = vsel %vm2013_vm0, %v2652_v46, 64.0 }
0x15ef   :  { %v2015_v33 = vsel %vm423_vm12, %v2014_v58, inf  ;;  %v2002_v0 = vmul.f32 1.442695, %v2001_v50 }
0x15f0   :  { %2016 = vmin.xlane.f32.xlu0 %v2015_v33 }
0x15f4   :  { %v746_v40 = vpop.xlane.xlu1 %745 }
0x15f5   :  { %2327 = vlog2.f32 %v746_v40 }
0x15f6   :  { %2329 = vpow2.f32 %v2002_v0 }
0x15f8   :  { %1060 = vadd.xlane.f32.xlu0 %v1059_v18 }
0x15fb   :  { %v2328_v22 = vpop.eup %2327 }
0x15fc   :  { %v2330_v56 = vpop.eup %2329  ;;  %v748_v62 = vmul.f32 0.6931472, %v2328_v22  ;;  %v1691_v38 = vpop.xlane.xlu1 %1690 }
0x15fd   :  { %2331 = vlog2.f32 %v1691_v38  ;;  %v2004_v12 = vsel %vm423_vm12, %v2330_v56, 0.0 }
0x15fe   :  { %v749_v29 = vadd.f32 %v748_v62, %v2934_v27 }
0x1600   :  { %v750_v45 = vsub.f32 %v2926_v53, %v749_v29  ;;  %2005 = vadd.xlane.f32.xlu0 %v2004_v12 }
0x1602   :  { %752 = vst.msk [vmem:[#allocation4 + $0x4] sm:$0xf] %vm423_vm12, %v750_v45 }
0x1603   :  { %v2332_v6 = vpop.eup %2331 }
0x1604   :  { %v1693_v52 = vmul.f32 0.6931472, %v2332_v6 }
0x1606   :  { %v1694_v5 = vadd.f32 %v1693_v52, %v3224_v60 }
0x1608   :  { %v1695_v37 = vsub.f32 %v3216_v20, %v1694_v5 }
0x160a   :  { %1697 = vst.msk [vmem:[#allocation4 + $0x10] sm:$0xf] %vm423_vm12, %v1695_v37 }
0x1663   :  { %v2017_v11 = vpop.xlane.xlu0 %2016 }
0x1664   :  { %vm2018_vm1 = vcmp.eq.f32.partialorder %v2652_v46, %v2017_v11 }
0x1665   :  { %v2124_v27 = vsel %vm2018_vm1, 1.0, %v2423_v1 }
0x1666   :  { %2125 = vmatmul.msk.f32.vlgmr.msra.gmra.mxu3 %vm70_vm2, %v2124_v27 }
0x166b   :  { %v1061_v8 = vpop.xlane.xlu0 %1060 }
0x166c   :  { %2333 = vlog2.f32 %v1061_v8 }
0x1672   :  { %v2334_v53 = vpop.eup %2333 }
0x1673   :  { %v1063_v20 = vmul.f32 0.6931472, %v2334_v53  ;;  %v2006_v60 = vpop.xlane.xlu0 %2005 }
0x1674   :  { %2335 = vlog2.f32 %v2006_v60 }
0x1675   :  { %v1064_v46 = vadd.f32 %v1063_v20, %v3066_v61 }
0x1677   :  { %v1065_v1 = vsub.f32 %v3057_v28, %v1064_v46 }
0x1679   :  { %1067 = vst.msk [vmem:[#allocation4 + $0x8] sm:$0xf] %vm423_vm12, %v1065_v1 }
0x167a   :  { %v2336_v30 = vpop.eup %2335 }
0x167b   :  { %v2008_v23 = vmul.f32 0.6931472, %v2336_v30 }
0x167d   :  { %v2009_v32 = vadd.f32 %v2008_v23, %v2000_v63 }
0x167f   :  { %v2010_v19 = vsub.f32 %v3278_v42, %v2009_v32 }
0x1681   :  { %2012 = vst.msk [vmem:[#allocation4 + $0x14] sm:$0xf] %vm423_vm12, %v2010_v19 }
0x1682   :  { %2061 = dma.vmem_to_hbm [thread:$0]  %s2054_s6, 384, %s2056_s8, [#allocation5], %s2424_s26, %s2424_s26, %s2427_s12  }
0x16e9   :  { %v2041_v28 = vpop.f32.mrf.mxu3 }
0x16ea   :  { %v2042_v61 = vadd.f32 %v2041_v28, %v2754_v39 }
0x16ec   :  { %2044 = vst.msk [vmem:[#allocation3] sm:$0xf] %vm94_vm7, %v2042_v61 }
0x16ed   :  { %2417 = dma.done.wait [#allocation5], 384  }
0x16ee   :  { %2418 = vsyncadd [#allocation5], 4294966912 }
0x16ef   :  { %2419 = dma.done.wait [#allocation7], 64  }
0x16f0   :  { %2420 = vsyncadd [#allocation7], 4294967232 }
0x16f1   :  { %2081 = vsyncpa [#allocation5], 1 }
0x16f2   :  { %2082 = vsyncpa [#allocation7], 1 }

</bundles_post_ra>
